<compile_context>
chip_gen: v7x
topology: tpu7x:2x2x1
jax: 0.10.0
libtpu: 0.0.40
codegen_flags: <defaults>
</compile_context>

<pallas_src>
import functools

import jax
import jax.numpy as jnp
import numpy as np
from jax.experimental import pallas as pl
from jax.experimental.pallas import tpu as pltpu


def _round_up(x, m):
    return ((x + m - 1) // m) * m


def _decoding_kernel(x_ref,
                     w1i_ref, w1h_ref, b1i_ref, b1hn_ref,
                     w2i_ref, w2h_ref, b2i_ref, b2hn_ref,
                     out_ref,
                     g1r_ref, g1z_ref, g1n_ref, y1_ref,
                     g2r_ref, g2z_ref, g2n_ref,
                     *, seq_len, batch_p):
    """Fused 2-layer GRU + ELU.  Single invocation; everything VMEM-resident."""
    f32 = jnp.float32

    def elu(v):
        # ELU(alpha=1).  Clamp the false branch so exp never overflows
        # (jnp.where evaluates both branches).
        return jnp.where(v > 0, v, jnp.exp(jnp.minimum(v, 0.0)) - 1.0)

    # ---------------- layer 1: hoisted per-gate input projections ----------
    x = x_ref[...]                                                # (T*BP, n_in)
    g1r_ref[...] = jnp.dot(x, w1i_ref[0], preferred_element_type=f32) + b1i_ref[0]
    g1z_ref[...] = jnp.dot(x, w1i_ref[1], preferred_element_type=f32) + b1i_ref[1]
    g1n_ref[...] = jnp.dot(x, w1i_ref[2], preferred_element_type=f32) + b1i_ref[2]

    # recurrent weights stay resident in vregs across the unrolled time loop
    wh_r1, wh_z1, wh_n1 = w1h_ref[0], w1h_ref[1], w1h_ref[2]      # (H1, H1)
    b_hn1 = b1hn_ref[...]                                         # (1, H1)
    n_hid = wh_r1.shape[-1]

    h = jnp.zeros((batch_p, n_hid), f32)
    for t in range(seq_len):                                      # static unroll
        sl = slice(t * batch_p, (t + 1) * batch_p)                # sublane-aligned
        r = jax.nn.sigmoid(g1r_ref[sl, :] +
                           jnp.dot(h, wh_r1, preferred_element_type=f32))
        z = jax.nn.sigmoid(g1z_ref[sl, :] +
                           jnp.dot(h, wh_z1, preferred_element_type=f32))
        n = jnp.tanh(g1n_ref[sl, :] +
                     r * (jnp.dot(h, wh_n1, preferred_element_type=f32) + b_hn1))
        h = (1.0 - z) * n + z * h
        y1_ref[sl, :] = elu(h)                                    # layer-1 output

    # ---------------- layer 2: hoisted per-gate input projections ----------
    y1 = y1_ref[...]                                              # (T*BP, H1)
    g2r_ref[...] = jnp.dot(y1, w2i_ref[0], preferred_element_type=f32) + b2i_ref[0]
    g2z_ref[...] = jnp.dot(y1, w2i_ref[1], preferred_element_type=f32) + b2i_ref[1]
    g2n_ref[...] = jnp.dot(y1, w2i_ref[2], preferred_element_type=f32) + b2i_ref[2]

    wh_r2, wh_z2, wh_n2 = w2h_ref[0], w2h_ref[1], w2h_ref[2]      # (H2, H2)
    b_hn2 = b2hn_ref[...]                                         # (1, H2)
    n_out = wh_r2.shape[-1]

    h2 = jnp.zeros((batch_p, n_out), f32)
    for t in range(seq_len):
        sl = slice(t * batch_p, (t + 1) * batch_p)
        r = jax.nn.sigmoid(g2r_ref[sl, :] +
                           jnp.dot(h2, wh_r2, preferred_element_type=f32))
        z = jax.nn.sigmoid(g2z_ref[sl, :] +
                           jnp.dot(h2, wh_z2, preferred_element_type=f32))
        n = jnp.tanh(g2n_ref[sl, :] +
                     r * (jnp.dot(h2, wh_n2, preferred_element_type=f32) + b_hn2))
        h2 = (1.0 - z) * n + z * h2
        out_ref[sl, :] = elu(h2)                                  # final output


def _prep_gru_params(w_ih, w_hh, b_ih, b_hh):
    """Repack torch nn.GRU params into a per-gate, MXU-friendly layout."""
    H = w_hh.shape[1]
    w_ih = jnp.asarray(w_ih, jnp.float32)
    w_hh = jnp.asarray(w_hh, jnp.float32)
    b_ih = jnp.asarray(b_ih, jnp.float32)
    b_hh = jnp.asarray(b_hh, jnp.float32)
    # torch gate order: r, z, n — pre-transposed so kernel does x @ W.
    wi = jnp.stack([w_ih[0:H].T, w_ih[H:2 * H].T, w_ih[2 * H:3 * H].T])   # (3, Din, H)
    wh = jnp.stack([w_hh[0:H].T, w_hh[H:2 * H].T, w_hh[2 * H:3 * H].T])   # (3, H,  H)
    # combined biases folded into the hoisted input GEMM (b_hn stays separate,
    # it sits inside r * (.)).
    bi = jnp.stack([(b_ih[0:H] + b_hh[0:H])[None, :],
                    (b_ih[H:2 * H] + b_hh[H:2 * H])[None, :],
                    b_ih[2 * H:3 * H][None, :]])                          # (3, 1, H)
    bhn = b_hh[2 * H:3 * H][None, :]                                      # (1, H)
    return wi, wh, bi, bhn


@jax.jit
def _decoding_forward(x, p1, p2):
    """x: (T, B, n_in) f32.  p1/p2: packed params from _prep_gru_params."""
    T, B, n_in = x.shape
    w1i, w1h, b1i, b1hn = p1
    w2i, w2h, b2i, b2hn = p2
    H1 = w1h.shape[-1]
    H2 = w2h.shape[-1]

    BP = _round_up(B, 8)                    # pad batch to a full sublane tile
    x_p = jnp.pad(jnp.asarray(x, jnp.float32), ((0, 0), (0, BP - B), (0, 0)))
    x2d = x_p.reshape(T * BP, n_in)

    kernel = functools.partial(_decoding_kernel, seq_len=T, batch_p=BP)
    vmem_spec = pl.BlockSpec(memory_space=pltpu.MemorySpace.VMEM)

    out2d = pl.pallas_call(
        kernel,
        out_shape=jax.ShapeDtypeStruct((T * BP, H2), jnp.float32),
        in_specs=[vmem_spec] * 9,
        out_specs=vmem_spec,
        scratch_shapes=[
            pltpu.VMEM((T * BP, H1), jnp.float32),   # g1_r  (hoisted x proj)
            pltpu.VMEM((T * BP, H1), jnp.float32),   # g1_z
            pltpu.VMEM((T * BP, H1), jnp.float32),   # g1_n
            pltpu.VMEM((T * BP, H1), jnp.float32),   # y1 = elu(gru1 output)
            pltpu.VMEM((T * BP, H2), jnp.float32),   # g2_r
            pltpu.VMEM((T * BP, H2), jnp.float32),   # g2_z
            pltpu.VMEM((T * BP, H2), jnp.float32),   # g2_n
        ],
    )(x2d, w1i, w1h, b1i, b1hn, w2i, w2h, b2i, b2hn)

    return out2d.reshape(T, BP, H2)[:, :B, :]


class Decoding:
    """JAX/Pallas port of the PyTorch Decoding module (two GRUs + ELU),
    fused into a single TPU kernel."""

    def __init__(self, n_in, n_hid, n_out, key):
        def init_gru(key, in_dim, hid_dim):
            k = 1.0 / np.sqrt(hid_dim)
            ks = jax.random.split(key, 4)
            w_ih = jax.random.uniform(ks[0], (3 * hid_dim, in_dim), jnp.float32, -k, k)
            w_hh = jax.random.uniform(ks[1], (3 * hid_dim, hid_dim), jnp.float32, -k, k)
            b_ih = jax.random.uniform(ks[2], (3 * hid_dim,), jnp.float32, -k, k)
            b_hh = jax.random.uniform(ks[3], (3 * hid_dim,), jnp.float32, -k, k)
            return (w_ih, w_hh, b_ih, b_hh)

        k1, k2 = jax.random.split(key)
        self.g1 = init_gru(k1, n_in, n_hid)       # nn.GRU(n_in, n_hid)
        self.g2 = init_gru(k2, n_hid, n_out)      # nn.GRU(n_hid, n_out)
        self.p1 = _prep_gru_params(*self.g1)      # packed per-gate layout
        self.p2 = _prep_gru_params(*self.g2)

    def forward(self, inputs):
        # elu(g2(elu(g1(inputs)))) — fused into one pallas_call.
        return _decoding_forward(inputs, self.p1, self.p2)


# --------------------------- pure-JAX reference ---------------------------
def _gru_elu_ref(x, w_ih, w_hh, b_ih, b_hh):
    H = w_hh.shape[1]
    B = x.shape[1]

    def step(h, x_t):
        gi = x_t @ w_ih.T + b_ih
        gh = h @ w_hh.T + b_hh
        i_r, i_z, i_n = gi[:, :H], gi[:, H:2 * H], gi[:, 2 * H:]
        h_r, h_z, h_n = gh[:, :H], gh[:, H:2 * H], gh[:, 2 * H:]
        r = jax.nn.sigmoid(i_r + h_r)
        z = jax.nn.sigmoid(i_z + h_z)
        n = jnp.tanh(i_n + r * h_n)
        h_new = (1.0 - z) * n + z * h
        return h_new, jax.nn.elu(h_new)

    h0 = jnp.zeros((B, H), jnp.float32)
    _, out = jax.lax.scan(step, h0, x)
    return out


if __name__ == "__main__":
    # Small shapes consistent with the module: seq=8, batch=2, n_in=16,
    # n_hid=32, n_out=16.
    T, B, N_IN, N_HID, N_OUT = 8, 2, 16, 32, 16

    key = jax.random.PRNGKey(0)
    k_params, k_x = jax.random.split(key)

    model = Decoding(N_IN, N_HID, N_OUT, k_params)
    x = jax.random.normal(k_x, (T, B, N_IN), jnp.float32)   # [seq, batch, feat]

    out = model.forward(x)
    out = jax.block_until_ready(out)
    assert out.shape == (T, B, N_OUT), out.shape

    # verify against the pure-JAX reference
    ref = _gru_elu_ref(_gru_elu_ref(x, *model.g1), *model.g2)
    np.testing.assert_allclose(np.asarray(out), np.asarray(ref),
                               rtol=1e-4, atol=1e-5)

    print("KERNEL_OK")
</pallas_src>

<mosaic_0001>
module attributes {stable_mosaic.version = 11 : i64} {
  func.func @_decoding_kernel(%arg0: memref<64x16xf32, #tpu.memory_space<vmem>>, %arg1: memref<3x16x32xf32, #tpu.memory_space<vmem>>, %arg2: memref<3x32x32xf32, #tpu.memory_space<vmem>>, %arg3: memref<3x1x32xf32, #tpu.memory_space<vmem>>, %arg4: memref<1x32xf32, #tpu.memory_space<vmem>>, %arg5: memref<3x32x16xf32, #tpu.memory_space<vmem>>, %arg6: memref<3x16x16xf32, #tpu.memory_space<vmem>>, %arg7: memref<3x1x16xf32, #tpu.memory_space<vmem>>, %arg8: memref<1x16xf32, #tpu.memory_space<vmem>>, %arg9: memref<64x16xf32, #tpu.memory_space<vmem>>, %arg10: memref<64x32xf32, #tpu.memory_space<vmem>>, %arg11: memref<64x32xf32, #tpu.memory_space<vmem>>, %arg12: memref<64x32xf32, #tpu.memory_space<vmem>>, %arg13: memref<64x32xf32, #tpu.memory_space<vmem>>, %arg14: memref<64x16xf32, #tpu.memory_space<vmem>>, %arg15: memref<64x16xf32, #tpu.memory_space<vmem>>, %arg16: memref<64x16xf32, #tpu.memory_space<vmem>>) attributes {dimension_semantics = [], scalar_prefetch = 0 : i64, scratch_operands = 7 : i64, tpu.core_type = #tpu.core_type<tc>} {
    %c0 = arith.constant 0 : index
    %c0_0 = arith.constant 0 : index
    %0 = vector.load %arg0[%c0, %c0_0] : memref<64x16xf32, #tpu.memory_space<vmem>>, vector<64x16xf32>
    %c0_1 = arith.constant 0 : index
    %c0_2 = arith.constant 0 : index
    %c0_3 = arith.constant 0 : index
    %1 = vector.load %arg1[%c0_1, %c0_2, %c0_3] : memref<3x16x32xf32, #tpu.memory_space<vmem>>, vector<1x16x32xf32>
    %2 = vector.shape_cast %1 : vector<1x16x32xf32> to vector<16x32xf32>
    %cst = arith.constant dense<0.000000e+00> : vector<64x32xf32>
    %3 = tpu.matmul %0, %2, %cst {dimension_numbers = #tpu.dot_dimension_numbers<[1], [0], [0], [1], [0, 0, 1, 1], [], []>} : vector<64x16xf32>, vector<16x32xf32>, vector<64x32xf32> -> vector<64x32xf32>
    %c0_4 = arith.constant 0 : index
    %c0_5 = arith.constant 0 : index
    %c0_6 = arith.constant 0 : index
    %4 = vector.load %arg3[%c0_4, %c0_5, %c0_6] : memref<3x1x32xf32, #tpu.memory_space<vmem>>, vector<1x1x32xf32>
    %5 = vector.shape_cast %4 : vector<1x1x32xf32> to vector<1x32xf32>
    %6 = vector.broadcast %5 : vector<1x32xf32> to vector<64x32xf32>
    %7 = arith.addf %3, %6 : vector<64x32xf32>
    %c0_7 = arith.constant 0 : index
    %c0_8 = arith.constant 0 : index
    %8 = vector.load %arg10[%c0_7, %c0_8] : memref<64x32xf32, #tpu.memory_space<vmem>>, vector<64x32xf32>
    tpu.vector_store %arg10[%c0_7, %c0_8], %7 {strides = array<i32>} : memref<64x32xf32, #tpu.memory_space<vmem>>, vector<64x32xf32>,
    %c1 = arith.constant 1 : index
    %c0_9 = arith.constant 0 : index
    %c0_10 = arith.constant 0 : index
    %9 = vector.load %arg1[%c1, %c0_9, %c0_10] : memref<3x16x32xf32, #tpu.memory_space<vmem>>, vector<1x16x32xf32>
    %10 = vector.shape_cast %9 : vector<1x16x32xf32> to vector<16x32xf32>
    %cst_11 = arith.constant dense<0.000000e+00> : vector<64x32xf32>
    %11 = tpu.matmul %0, %10, %cst_11 {dimension_numbers = #tpu.dot_dimension_numbers<[1], [0], [0], [1], [0, 0, 1, 1], [], []>} : vector<64x16xf32>, vector<16x32xf32>, vector<64x32xf32> -> vector<64x32xf32>
    %c1_12 = arith.constant 1 : index
    %c0_13 = arith.constant 0 : index
    %c0_14 = arith.constant 0 : index
    %12 = vector.load %arg3[%c1_12, %c0_13, %c0_14] : memref<3x1x32xf32, #tpu.memory_space<vmem>>, vector<1x1x32xf32>
    %13 = vector.shape_cast %12 : vector<1x1x32xf32> to vector<1x32xf32>
    %14 = vector.broadcast %13 : vector<1x32xf32> to vector<64x32xf32>
    %15 = arith.addf %11, %14 : vector<64x32xf32>
    %c0_15 = arith.constant 0 : index
    %c0_16 = arith.constant 0 : index
    %16 = vector.load %arg11[%c0_15, %c0_16] : memref<64x32xf32, #tpu.memory_space<vmem>>, vector<64x32xf32>
    tpu.vector_store %arg11[%c0_15, %c0_16], %15 {strides = array<i32>} : memref<64x32xf32, #tpu.memory_space<vmem>>, vector<64x32xf32>,
    %c2 = arith.constant 2 : index
    %c0_17 = arith.constant 0 : index
    %c0_18 = arith.constant 0 : index
    %17 = vector.load %arg1[%c2, %c0_17, %c0_18] : memref<3x16x32xf32, #tpu.memory_space<vmem>>, vector<1x16x32xf32>
    %18 = vector.shape_cast %17 : vector<1x16x32xf32> to vector<16x32xf32>
    %cst_19 = arith.constant dense<0.000000e+00> : vector<64x32xf32>
    %19 = tpu.matmul %0, %18, %cst_19 {dimension_numbers = #tpu.dot_dimension_numbers<[1], [0], [0], [1], [0, 0, 1, 1], [], []>} : vector<64x16xf32>, vector<16x32xf32>, vector<64x32xf32> -> vector<64x32xf32>
    %c2_20 = arith.constant 2 : index
    %c0_21 = arith.constant 0 : index
    %c0_22 = arith.constant 0 : index
    %20 = vector.load %arg3[%c2_20, %c0_21, %c0_22] : memref<3x1x32xf32, #tpu.memory_space<vmem>>, vector<1x1x32xf32>
    %21 = vector.shape_cast %20 : vector<1x1x32xf32> to vector<1x32xf32>
    %22 = vector.broadcast %21 : vector<1x32xf32> to vector<64x32xf32>
    %23 = arith.addf %19, %22 : vector<64x32xf32>
    %c0_23 = arith.constant 0 : index
    %c0_24 = arith.constant 0 : index
    %24 = vector.load %arg12[%c0_23, %c0_24] : memref<64x32xf32, #tpu.memory_space<vmem>>, vector<64x32xf32>
    tpu.vector_store %arg12[%c0_23, %c0_24], %23 {strides = array<i32>} : memref<64x32xf32, #tpu.memory_space<vmem>>, vector<64x32xf32>,
    %c0_25 = arith.constant 0 : index
    %c0_26 = arith.constant 0 : index
    %c0_27 = arith.constant 0 : index
    %25 = vector.load %arg2[%c0_25, %c0_26, %c0_27] : memref<3x32x32xf32, #tpu.memory_space<vmem>>, vector<1x32x32xf32>
    %26 = vector.shape_cast %25 : vector<1x32x32xf32> to vector<32x32xf32>
    %c1_28 = arith.constant 1 : index
    %c0_29 = arith.constant 0 : index
    %c0_30 = arith.constant 0 : index
    %27 = vector.load %arg2[%c1_28, %c0_29, %c0_30] : memref<3x32x32xf32, #tpu.memory_space<vmem>>, vector<1x32x32xf32>
    %28 = vector.shape_cast %27 : vector<1x32x32xf32> to vector<32x32xf32>
    %c2_31 = arith.constant 2 : index
    %c0_32 = arith.constant 0 : index
    %c0_33 = arith.constant 0 : index
    %29 = vector.load %arg2[%c2_31, %c0_32, %c0_33] : memref<3x32x32xf32, #tpu.memory_space<vmem>>, vector<1x32x32xf32>
    %30 = vector.shape_cast %29 : vector<1x32x32xf32> to vector<32x32xf32>
    %c0_34 = arith.constant 0 : index
    %c0_35 = arith.constant 0 : index
    %31 = vector.load %arg4[%c0_34, %c0_35] : memref<1x32xf32, #tpu.memory_space<vmem>>, vector<1x32xf32>
    %cst_36 = arith.constant 0.000000e+00 : f32
    %32 = vector.broadcast %cst_36 : f32 to vector<8x32xf32>
    %c0_37 = arith.constant 0 : index
    %c0_38 = arith.constant 0 : index
    %33 = vector.load %arg10[%c0_37, %c0_38] : memref<64x32xf32, #tpu.memory_space<vmem>>, vector<8x32xf32>
    %cst_39 = arith.constant dense<0.000000e+00> : vector<8x32xf32>
    %34 = tpu.matmul %32, %26, %cst_39 {dimension_numbers = #tpu.dot_dimension_numbers<[1], [0], [0], [1], [0, 0, 1, 1], [], []>} : vector<8x32xf32>, vector<32x32xf32>, vector<8x32xf32> -> vector<8x32xf32>
    %35 = arith.addf %33, %34 : vector<8x32xf32>
    %36 = arith.negf %35 : vector<8x32xf32>
    %37 = math.exp %36 : vector<8x32xf32>
    %cst_40 = arith.constant 1.000000e+00 : f32
    %38 = vector.broadcast %cst_40 : f32 to vector<8x32xf32>
    %39 = arith.addf %38, %37 : vector<8x32xf32>
    %40 = arith.divf %38, %39 : vector<8x32xf32>
    %c0_41 = arith.constant 0 : index
    %c0_42 = arith.constant 0 : index
    %41 = vector.load %arg11[%c0_41, %c0_42] : memref<64x32xf32, #tpu.memory_space<vmem>>, vector<8x32xf32>
    %cst_43 = arith.constant dense<0.000000e+00> : vector<8x32xf32>
    %42 = tpu.matmul %32, %28, %cst_43 {dimension_numbers = #tpu.dot_dimension_numbers<[1], [0], [0], [1], [0, 0, 1, 1], [], []>} : vector<8x32xf32>, vector<32x32xf32>, vector<8x32xf32> -> vector<8x32xf32>
    %43 = arith.addf %41, %42 : vector<8x32xf32>
    %44 = arith.negf %43 : vector<8x32xf32>
    %45 = math.exp %44 : vector<8x32xf32>
    %cst_44 = arith.constant 1.000000e+00 : f32
    %46 = vector.broadcast %cst_44 : f32 to vector<8x32xf32>
    %47 = arith.addf %46, %45 : vector<8x32xf32>
    %48 = arith.divf %46, %47 : vector<8x32xf32>
    %c0_45 = arith.constant 0 : index
    %c0_46 = arith.constant 0 : index
    %49 = vector.load %arg12[%c0_45, %c0_46] : memref<64x32xf32, #tpu.memory_space<vmem>>, vector<8x32xf32>
    %cst_47 = arith.constant dense<0.000000e+00> : vector<8x32xf32>
    %50 = tpu.matmul %32, %30, %cst_47 {dimension_numbers = #tpu.dot_dimension_numbers<[1], [0], [0], [1], [0, 0, 1, 1], [], []>} : vector<8x32xf32>, vector<32x32xf32>, vector<8x32xf32> -> vector<8x32xf32>
    %51 = vector.broadcast %31 : vector<1x32xf32> to vector<8x32xf32>
    %52 = arith.addf %50, %51 : vector<8x32xf32>
    %53 = arith.mulf %40, %52 : vector<8x32xf32>
    %54 = arith.addf %49, %53 : vector<8x32xf32>
    %55 = math.tanh %54 : vector<8x32xf32>
    %cst_48 = arith.constant 1.000000e+00 : f32
    %56 = vector.broadcast %cst_48 : f32 to vector<8x32xf32>
    %57 = arith.subf %56, %48 : vector<8x32xf32>
    %58 = arith.mulf %57, %55 : vector<8x32xf32>
    %59 = arith.mulf %48, %32 : vector<8x32xf32>
    %60 = arith.addf %58, %59 : vector<8x32xf32>
    %cst_49 = arith.constant 0.000000e+00 : f32
    %61 = vector.broadcast %cst_49 : f32 to vector<8x32xf32>
    %62 = arith.cmpf ogt, %60, %61 : vector<8x32xf32>
    %cst_50 = arith.constant 0.000000e+00 : f32
    %63 = vector.broadcast %cst_50 : f32 to vector<8x32xf32>
    %64 = arith.minimumf %60, %63 : vector<8x32xf32>
    %65 = math.exp %64 : vector<8x32xf32>
    %cst_51 = arith.constant 1.000000e+00 : f32
    %66 = vector.broadcast %cst_51 : f32 to vector<8x32xf32>
    %67 = arith.subf %65, %66 : vector<8x32xf32>
    %68 = arith.select %62, %60, %67 : vector<8x32xi1>, vector<8x32xf32>
    %c0_52 = arith.constant 0 : index
    %c0_53 = arith.constant 0 : index
    %69 = vector.load %arg13[%c0_52, %c0_53] : memref<64x32xf32, #tpu.memory_space<vmem>>, vector<8x32xf32>
    tpu.vector_store %arg13[%c0_52, %c0_53], %68 {strides = array<i32>} : memref<64x32xf32, #tpu.memory_space<vmem>>, vector<8x32xf32>,
    %c8 = arith.constant 8 : index
    %c0_54 = arith.constant 0 : index
    %70 = vector.load %arg10[%c8, %c0_54] : memref<64x32xf32, #tpu.memory_space<vmem>>, vector<8x32xf32>
    %cst_55 = arith.constant dense<0.000000e+00> : vector<8x32xf32>
    %71 = tpu.matmul %60, %26, %cst_55 {dimension_numbers = #tpu.dot_dimension_numbers<[1], [0], [0], [1], [0, 0, 1, 1], [], []>} : vector<8x32xf32>, vector<32x32xf32>, vector<8x32xf32> -> vector<8x32xf32>
    %72 = arith.addf %70, %71 : vector<8x32xf32>
    %73 = arith.negf %72 : vector<8x32xf32>
    %74 = math.exp %73 : vector<8x32xf32>
    %cst_56 = arith.constant 1.000000e+00 : f32
    %75 = vector.broadcast %cst_56 : f32 to vector<8x32xf32>
    %76 = arith.addf %75, %74 : vector<8x32xf32>
    %77 = arith.divf %75, %76 : vector<8x32xf32>
    %c8_57 = arith.constant 8 : index
    %c0_58 = arith.constant 0 : index
    %78 = vector.load %arg11[%c8_57, %c0_58] : memref<64x32xf32, #tpu.memory_space<vmem>>, vector<8x32xf32>
    %cst_59 = arith.constant dense<0.000000e+00> : vector<8x32xf32>
    %79 = tpu.matmul %60, %28, %cst_59 {dimension_numbers = #tpu.dot_dimension_numbers<[1], [0], [0], [1], [0, 0, 1, 1], [], []>} : vector<8x32xf32>, vector<32x32xf32>, vector<8x32xf32> -> vector<8x32xf32>
    %80 = arith.addf %78, %79 : vector<8x32xf32>
    %81 = arith.negf %80 : vector<8x32xf32>
    %82 = math.exp %81 : vector<8x32xf32>
    %cst_60 = arith.constant 1.000000e+00 : f32
    %83 = vector.broadcast %cst_60 : f32 to vector<8x32xf32>
    %84 = arith.addf %83, %82 : vector<8x32xf32>
    %85 = arith.divf %83, %84 : vector<8x32xf32>
    %c8_61 = arith.constant 8 : index
    %c0_62 = arith.constant 0 : index
    %86 = vector.load %arg12[%c8_61, %c0_62] : memref<64x32xf32, #tpu.memory_space<vmem>>, vector<8x32xf32>
    %cst_63 = arith.constant dense<0.000000e+00> : vector<8x32xf32>
    %87 = tpu.matmul %60, %30, %cst_63 {dimension_numbers = #tpu.dot_dimension_numbers<[1], [0], [0], [1], [0, 0, 1, 1], [], []>} : vector<8x32xf32>, vector<32x32xf32>, vector<8x32xf32> -> vector<8x32xf32>
    %88 = vector.broadcast %31 : vector<1x32xf32> to vector<8x32xf32>
    %89 = arith.addf %87, %88 : vector<8x32xf32>
    %90 = arith.mulf %77, %89 : vector<8x32xf32>
    %91 = arith.addf %86, %90 : vector<8x32xf32>
    %92 = math.tanh %91 : vector<8x32xf32>
    %cst_64 = arith.constant 1.000000e+00 : f32
    %93 = vector.broadcast %cst_64 : f32 to vector<8x32xf32>
    %94 = arith.subf %93, %85 : vector<8x32xf32>
    %95 = arith.mulf %94, %92 : vector<8x32xf32>
    %96 = arith.mulf %85, %60 : vector<8x32xf32>
    %97 = arith.addf %95, %96 : vector<8x32xf32>
    %cst_65 = arith.constant 0.000000e+00 : f32
    %98 = vector.broadcast %cst_65 : f32 to vector<8x32xf32>
    %99 = arith.cmpf ogt, %97, %98 : vector<8x32xf32>
    %cst_66 = arith.constant 0.000000e+00 : f32
    %100 = vector.broadcast %cst_66 : f32 to vector<8x32xf32>
    %101 = arith.minimumf %97, %100 : vector<8x32xf32>
    %102 = math.exp %101 : vector<8x32xf32>
    %cst_67 = arith.constant 1.000000e+00 : f32
    %103 = vector.broadcast %cst_67 : f32 to vector<8x32xf32>
    %104 = arith.subf %102, %103 : vector<8x32xf32>
    %105 = arith.select %99, %97, %104 : vector<8x32xi1>, vector<8x32xf32>
    %c8_68 = arith.constant 8 : index
    %c0_69 = arith.constant 0 : index
    %106 = vector.load %arg13[%c8_68, %c0_69] : memref<64x32xf32, #tpu.memory_space<vmem>>, vector<8x32xf32>
    tpu.vector_store %arg13[%c8_68, %c0_69], %105 {strides = array<i32>} : memref<64x32xf32, #tpu.memory_space<vmem>>, vector<8x32xf32>,
    %c16 = arith.constant 16 : index
    %c0_70 = arith.constant 0 : index
    %107 = vector.load %arg10[%c16, %c0_70] : memref<64x32xf32, #tpu.memory_space<vmem>>, vector<8x32xf32>
    %cst_71 = arith.constant dense<0.000000e+00> : vector<8x32xf32>
    %108 = tpu.matmul %97, %26, %cst_71 {dimension_numbers = #tpu.dot_dimension_numbers<[1], [0], [0], [1], [0, 0, 1, 1], [], []>} : vector<8x32xf32>, vector<32x32xf32>, vector<8x32xf32> -> vector<8x32xf32>
    %109 = arith.addf %107, %108 : vector<8x32xf32>
    %110 = arith.negf %109 : vector<8x32xf32>
    %111 = math.exp %110 : vector<8x32xf32>
    %cst_72 = arith.constant 1.000000e+00 : f32
    %112 = vector.broadcast %cst_72 : f32 to vector<8x32xf32>
    %113 = arith.addf %112, %111 : vector<8x32xf32>
    %114 = arith.divf %112, %113 : vector<8x32xf32>
    %c16_73 = arith.constant 16 : index
    %c0_74 = arith.constant 0 : index
    %115 = vector.load %arg11[%c16_73, %c0_74] : memref<64x32xf32, #tpu.memory_space<vmem>>, vector<8x32xf32>
    %cst_75 = arith.constant dense<0.000000e+00> : vector<8x32xf32>
    %116 = tpu.matmul %97, %28, %cst_75 {dimension_numbers = #tpu.dot_dimension_numbers<[1], [0], [0], [1], [0, 0, 1, 1], [], []>} : vector<8x32xf32>, vector<32x32xf32>, vector<8x32xf32> -> vector<8x32xf32>
    %117 = arith.addf %115, %116 : vector<8x32xf32>
    %118 = arith.negf %117 : vector<8x32xf32>
    %119 = math.exp %118 : vector<8x32xf32>
    %cst_76 = arith.constant 1.000000e+00 : f32
    %120 = vector.broadcast %cst_76 : f32 to vector<8x32xf32>
    %121 = arith.addf %120, %119 : vector<8x32xf32>
    %122 = arith.divf %120, %121 : vector<8x32xf32>
    %c16_77 = arith.constant 16 : index
    %c0_78 = arith.constant 0 : index
    %123 = vector.load %arg12[%c16_77, %c0_78] : memref<64x32xf32, #tpu.memory_space<vmem>>, vector<8x32xf32>
    %cst_79 = arith.constant dense<0.000000e+00> : vector<8x32xf32>
    %124 = tpu.matmul %97, %30, %cst_79 {dimension_numbers = #tpu.dot_dimension_numbers<[1], [0], [0], [1], [0, 0, 1, 1], [], []>} : vector<8x32xf32>, vector<32x32xf32>, vector<8x32xf32> -> vector<8x32xf32>
    %125 = vector.broadcast %31 : vector<1x32xf32> to vector<8x32xf32>
    %126 = arith.addf %124, %125 : vector<8x32xf32>
    %127 = arith.mulf %114, %126 : vector<8x32xf32>
    %128 = arith.addf %123, %127 : vector<8x32xf32>
    %129 = math.tanh %128 : vector<8x32xf32>
    %cst_80 = arith.constant 1.000000e+00 : f32
    %130 = vector.broadcast %cst_80 : f32 to vector<8x32xf32>
    %131 = arith.subf %130, %122 : vector<8x32xf32>
    %132 = arith.mulf %131, %129 : vector<8x32xf32>
    %133 = arith.mulf %122, %97 : vector<8x32xf32>
    %134 = arith.addf %132, %133 : vector<8x32xf32>
    %cst_81 = arith.constant 0.000000e+00 : f32
    %135 = vector.broadcast %cst_81 : f32 to vector<8x32xf32>
    %136 = arith.cmpf ogt, %134, %135 : vector<8x32xf32>
    %cst_82 = arith.constant 0.000000e+00 : f32
    %137 = vector.broadcast %cst_82 : f32 to vector<8x32xf32>
    %138 = arith.minimumf %134, %137 : vector<8x32xf32>
    %139 = math.exp %138 : vector<8x32xf32>
    %cst_83 = arith.constant 1.000000e+00 : f32
    %140 = vector.broadcast %cst_83 : f32 to vector<8x32xf32>
    %141 = arith.subf %139, %140 : vector<8x32xf32>
    %142 = arith.select %136, %134, %141 : vector<8x32xi1>, vector<8x32xf32>
    %c16_84 = arith.constant 16 : index
    %c0_85 = arith.constant 0 : index
    %143 = vector.load %arg13[%c16_84, %c0_85] : memref<64x32xf32, #tpu.memory_space<vmem>>, vector<8x32xf32>
    tpu.vector_store %arg13[%c16_84, %c0_85], %142 {strides = array<i32>} : memref<64x32xf32, #tpu.memory_space<vmem>>, vector<8x32xf32>,
    %c24 = arith.constant 24 : index
    %c0_86 = arith.constant 0 : index
    %144 = vector.load %arg10[%c24, %c0_86] : memref<64x32xf32, #tpu.memory_space<vmem>>, vector<8x32xf32>
    %cst_87 = arith.constant dense<0.000000e+00> : vector<8x32xf32>
    %145 = tpu.matmul %134, %26, %cst_87 {dimension_numbers = #tpu.dot_dimension_numbers<[1], [0], [0], [1], [0, 0, 1, 1], [], []>} : vector<8x32xf32>, vector<32x32xf32>, vector<8x32xf32> -> vector<8x32xf32>
    %146 = arith.addf %144, %145 : vector<8x32xf32>
    %147 = arith.negf %146 : vector<8x32xf32>
    %148 = math.exp %147 : vector<8x32xf32>
    %cst_88 = arith.constant 1.000000e+00 : f32
    %149 = vector.broadcast %cst_88 : f32 to vector<8x32xf32>
    %150 = arith.addf %149, %148 : vector<8x32xf32>
    %151 = arith.divf %149, %150 : vector<8x32xf32>
    %c24_89 = arith.constant 24 : index
    %c0_90 = arith.constant 0 : index
    %152 = vector.load %arg11[%c24_89, %c0_90] : memref<64x32xf32, #tpu.memory_space<vmem>>, vector<8x32xf32>
    %cst_91 = arith.constant dense<0.000000e+00> : vector<8x32xf32>
    %153 = tpu.matmul %134, %28, %cst_91 {dimension_numbers = #tpu.dot_dimension_numbers<[1], [0], [0], [1], [0, 0, 1, 1], [], []>} : vector<8x32xf32>, vector<32x32xf32>, vector<8x32xf32> -> vector<8x32xf32>
    %154 = arith.addf %152, %153 : vector<8x32xf32>
    %155 = arith.negf %154 : vector<8x32xf32>
    %156 = math.exp %155 : vector<8x32xf32>
    %cst_92 = arith.constant 1.000000e+00 : f32
    %157 = vector.broadcast %cst_92 : f32 to vector<8x32xf32>
    %158 = arith.addf %157, %156 : vector<8x32xf32>
    %159 = arith.divf %157, %158 : vector<8x32xf32>
    %c24_93 = arith.constant 24 : index
    %c0_94 = arith.constant 0 : index
    %160 = vector.load %arg12[%c24_93, %c0_94] : memref<64x32xf32, #tpu.memory_space<vmem>>, vector<8x32xf32>
    %cst_95 = arith.constant dense<0.000000e+00> : vector<8x32xf32>
    %161 = tpu.matmul %134, %30, %cst_95 {dimension_numbers = #tpu.dot_dimension_numbers<[1], [0], [0], [1], [0, 0, 1, 1], [], []>} : vector<8x32xf32>, vector<32x32xf32>, vector<8x32xf32> -> vector<8x32xf32>
    %162 = vector.broadcast %31 : vector<1x32xf32> to vector<8x32xf32>
    %163 = arith.addf %161, %162 : vector<8x32xf32>
    %164 = arith.mulf %151, %163 : vector<8x32xf32>
    %165 = arith.addf %160, %164 : vector<8x32xf32>
    %166 = math.tanh %165 : vector<8x32xf32>
    %cst_96 = arith.constant 1.000000e+00 : f32
    %167 = vector.broadcast %cst_96 : f32 to vector<8x32xf32>
    %168 = arith.subf %167, %159 : vector<8x32xf32>
    %169 = arith.mulf %168, %166 : vector<8x32xf32>
    %170 = arith.mulf %159, %134 : vector<8x32xf32>
    %171 = arith.addf %169, %170 : vector<8x32xf32>
    %cst_97 = arith.constant 0.000000e+00 : f32
    %172 = vector.broadcast %cst_97 : f32 to vector<8x32xf32>
    %173 = arith.cmpf ogt, %171, %172 : vector<8x32xf32>
    %cst_98 = arith.constant 0.000000e+00 : f32
    %174 = vector.broadcast %cst_98 : f32 to vector<8x32xf32>
    %175 = arith.minimumf %171, %174 : vector<8x32xf32>
    %176 = math.exp %175 : vector<8x32xf32>
    %cst_99 = arith.constant 1.000000e+00 : f32
    %177 = vector.broadcast %cst_99 : f32 to vector<8x32xf32>
    %178 = arith.subf %176, %177 : vector<8x32xf32>
    %179 = arith.select %173, %171, %178 : vector<8x32xi1>, vector<8x32xf32>
    %c24_100 = arith.constant 24 : index
    %c0_101 = arith.constant 0 : index
    %180 = vector.load %arg13[%c24_100, %c0_101] : memref<64x32xf32, #tpu.memory_space<vmem>>, vector<8x32xf32>
    tpu.vector_store %arg13[%c24_100, %c0_101], %179 {strides = array<i32>} : memref<64x32xf32, #tpu.memory_space<vmem>>, vector<8x32xf32>,
    %c32 = arith.constant 32 : index
    %c0_102 = arith.constant 0 : index
    %181 = vector.load %arg10[%c32, %c0_102] : memref<64x32xf32, #tpu.memory_space<vmem>>, vector<8x32xf32>
    %cst_103 = arith.constant dense<0.000000e+00> : vector<8x32xf32>
    %182 = tpu.matmul %171, %26, %cst_103 {dimension_numbers = #tpu.dot_dimension_numbers<[1], [0], [0], [1], [0, 0, 1, 1], [], []>} : vector<8x32xf32>, vector<32x32xf32>, vector<8x32xf32> -> vector<8x32xf32>
    %183 = arith.addf %181, %182 : vector<8x32xf32>
    %184 = arith.negf %183 : vector<8x32xf32>
    %185 = math.exp %184 : vector<8x32xf32>
    %cst_104 = arith.constant 1.000000e+00 : f32
    %186 = vector.broadcast %cst_104 : f32 to vector<8x32xf32>
    %187 = arith.addf %186, %185 : vector<8x32xf32>
    %188 = arith.divf %186, %187 : vector<8x32xf32>
    %c32_105 = arith.constant 32 : index
    %c0_106 = arith.constant 0 : index
    %189 = vector.load %arg11[%c32_105, %c0_106] : memref<64x32xf32, #tpu.memory_space<vmem>>, vector<8x32xf32>
    %cst_107 = arith.constant dense<0.000000e+00> : vector<8x32xf32>
    %190 = tpu.matmul %171, %28, %cst_107 {dimension_numbers = #tpu.dot_dimension_numbers<[1], [0], [0], [1], [0, 0, 1, 1], [], []>} : vector<8x32xf32>, vector<32x32xf32>, vector<8x32xf32> -> vector<8x32xf32>
    %191 = arith.addf %189, %190 : vector<8x32xf32>
    %192 = arith.negf %191 : vector<8x32xf32>
    %193 = math.exp %192 : vector<8x32xf32>
    %cst_108 = arith.constant 1.000000e+00 : f32
    %194 = vector.broadcast %cst_108 : f32 to vector<8x32xf32>
    %195 = arith.addf %194, %193 : vector<8x32xf32>
    %196 = arith.divf %194, %195 : vector<8x32xf32>
    %c32_109 = arith.constant 32 : index
    %c0_110 = arith.constant 0 : index
    %197 = vector.load %arg12[%c32_109, %c0_110] : memref<64x32xf32, #tpu.memory_space<vmem>>, vector<8x32xf32>
    %cst_111 = arith.constant dense<0.000000e+00> : vector<8x32xf32>
    %198 = tpu.matmul %171, %30, %cst_111 {dimension_numbers = #tpu.dot_dimension_numbers<[1], [0], [0], [1], [0, 0, 1, 1], [], []>} : vector<8x32xf32>, vector<32x32xf32>, vector<8x32xf32> -> vector<8x32xf32>
    %199 = vector.broadcast %31 : vector<1x32xf32> to vector<8x32xf32>
    %200 = arith.addf %198, %199 : vector<8x32xf32>
    %201 = arith.mulf %188, %200 : vector<8x32xf32>
    %202 = arith.addf %197, %201 : vector<8x32xf32>
    %203 = math.tanh %202 : vector<8x32xf32>
    %cst_112 = arith.constant 1.000000e+00 : f32
    %204 = vector.broadcast %cst_112 : f32 to vector<8x32xf32>
    %205 = arith.subf %204, %196 : vector<8x32xf32>
    %206 = arith.mulf %205, %203 : vector<8x32xf32>
    %207 = arith.mulf %196, %171 : vector<8x32xf32>
    %208 = arith.addf %206, %207 : vector<8x32xf32>
    %cst_113 = arith.constant 0.000000e+00 : f32
    %209 = vector.broadcast %cst_113 : f32 to vector<8x32xf32>
    %210 = arith.cmpf ogt, %208, %209 : vector<8x32xf32>
    %cst_114 = arith.constant 0.000000e+00 : f32
    %211 = vector.broadcast %cst_114 : f32 to vector<8x32xf32>
    %212 = arith.minimumf %208, %211 : vector<8x32xf32>
    %213 = math.exp %212 : vector<8x32xf32>
    %cst_115 = arith.constant 1.000000e+00 : f32
    %214 = vector.broadcast %cst_115 : f32 to vector<8x32xf32>
    %215 = arith.subf %213, %214 : vector<8x32xf32>
    %216 = arith.select %210, %208, %215 : vector<8x32xi1>, vector<8x32xf32>
    %c32_116 = arith.constant 32 : index
    %c0_117 = arith.constant 0 : index
    %217 = vector.load %arg13[%c32_116, %c0_117] : memref<64x32xf32, #tpu.memory_space<vmem>>, vector<8x32xf32>
    tpu.vector_store %arg13[%c32_116, %c0_117], %216 {strides = array<i32>} : memref<64x32xf32, #tpu.memory_space<vmem>>, vector<8x32xf32>,
    %c40 = arith.constant 40 : index
    %c0_118 = arith.constant 0 : index
    %218 = vector.load %arg10[%c40, %c0_118] : memref<64x32xf32, #tpu.memory_space<vmem>>, vector<8x32xf32>
    %cst_119 = arith.constant dense<0.000000e+00> : vector<8x32xf32>
    %219 = tpu.matmul %208, %26, %cst_119 {dimension_numbers = #tpu.dot_dimension_numbers<[1], [0], [0], [1], [0, 0, 1, 1], [], []>} : vector<8x32xf32>, vector<32x32xf32>, vector<8x32xf32> -> vector<8x32xf32>
    %220 = arith.addf %218, %219 : vector<8x32xf32>
    %221 = arith.negf %220 : vector<8x32xf32>
    %222 = math.exp %221 : vector<8x32xf32>
    %cst_120 = arith.constant 1.000000e+00 : f32
    %223 = vector.broadcast %cst_120 : f32 to vector<8x32xf32>
    %224 = arith.addf %223, %222 : vector<8x32xf32>
    %225 = arith.divf %223, %224 : vector<8x32xf32>
    %c40_121 = arith.constant 40 : index
    %c0_122 = arith.constant 0 : index
    %226 = vector.load %arg11[%c40_121, %c0_122] : memref<64x32xf32, #tpu.memory_space<vmem>>, vector<8x32xf32>
    %cst_123 = arith.constant dense<0.000000e+00> : vector<8x32xf32>
    %227 = tpu.matmul %208, %28, %cst_123 {dimension_numbers = #tpu.dot_dimension_numbers<[1], [0], [0], [1], [0, 0, 1, 1], [], []>} : vector<8x32xf32>, vector<32x32xf32>, vector<8x32xf32> -> vector<8x32xf32>
    %228 = arith.addf %226, %227 : vector<8x32xf32>
    %229 = arith.negf %228 : vector<8x32xf32>
    %230 = math.exp %229 : vector<8x32xf32>
    %cst_124 = arith.constant 1.000000e+00 : f32
    %231 = vector.broadcast %cst_124 : f32 to vector<8x32xf32>
    %232 = arith.addf %231, %230 : vector<8x32xf32>
    %233 = arith.divf %231, %232 : vector<8x32xf32>
    %c40_125 = arith.constant 40 : index
    %c0_126 = arith.constant 0 : index
    %234 = vector.load %arg12[%c40_125, %c0_126] : memref<64x32xf32, #tpu.memory_space<vmem>>, vector<8x32xf32>
    %cst_127 = arith.constant dense<0.000000e+00> : vector<8x32xf32>
    %235 = tpu.matmul %208, %30, %cst_127 {dimension_numbers = #tpu.dot_dimension_numbers<[1], [0], [0], [1], [0, 0, 1, 1], [], []>} : vector<8x32xf32>, vector<32x32xf32>, vector<8x32xf32> -> vector<8x32xf32>
    %236 = vector.broadcast %31 : vector<1x32xf32> to vector<8x32xf32>
    %237 = arith.addf %235, %236 : vector<8x32xf32>
    %238 = arith.mulf %225, %237 : vector<8x32xf32>
    %239 = arith.addf %234, %238 : vector<8x32xf32>
    %240 = math.tanh %239 : vector<8x32xf32>
    %cst_128 = arith.constant 1.000000e+00 : f32
    %241 = vector.broadcast %cst_128 : f32 to vector<8x32xf32>
    %242 = arith.subf %241, %233 : vector<8x32xf32>
    %243 = arith.mulf %242, %240 : vector<8x32xf32>
    %244 = arith.mulf %233, %208 : vector<8x32xf32>
    %245 = arith.addf %243, %244 : vector<8x32xf32>
    %cst_129 = arith.constant 0.000000e+00 : f32
    %246 = vector.broadcast %cst_129 : f32 to vector<8x32xf32>
    %247 = arith.cmpf ogt, %245, %246 : vector<8x32xf32>
    %cst_130 = arith.constant 0.000000e+00 : f32
    %248 = vector.broadcast %cst_130 : f32 to vector<8x32xf32>
    %249 = arith.minimumf %245, %248 : vector<8x32xf32>
    %250 = math.exp %249 : vector<8x32xf32>
    %cst_131 = arith.constant 1.000000e+00 : f32
    %251 = vector.broadcast %cst_131 : f32 to vector<8x32xf32>
    %252 = arith.subf %250, %251 : vector<8x32xf32>
    %253 = arith.select %247, %245, %252 : vector<8x32xi1>, vector<8x32xf32>
    %c40_132 = arith.constant 40 : index
    %c0_133 = arith.constant 0 : index
    %254 = vector.load %arg13[%c40_132, %c0_133] : memref<64x32xf32, #tpu.memory_space<vmem>>, vector<8x32xf32>
    tpu.vector_store %arg13[%c40_132, %c0_133], %253 {strides = array<i32>} : memref<64x32xf32, #tpu.memory_space<vmem>>, vector<8x32xf32>,
    %c48 = arith.constant 48 : index
    %c0_134 = arith.constant 0 : index
    %255 = vector.load %arg10[%c48, %c0_134] : memref<64x32xf32, #tpu.memory_space<vmem>>, vector<8x32xf32>
    %cst_135 = arith.constant dense<0.000000e+00> : vector<8x32xf32>
    %256 = tpu.matmul %245, %26, %cst_135 {dimension_numbers = #tpu.dot_dimension_numbers<[1], [0], [0], [1], [0, 0, 1, 1], [], []>} : vector<8x32xf32>, vector<32x32xf32>, vector<8x32xf32> -> vector<8x32xf32>
    %257 = arith.addf %255, %256 : vector<8x32xf32>
    %258 = arith.negf %257 : vector<8x32xf32>
    %259 = math.exp %258 : vector<8x32xf32>
    %cst_136 = arith.constant 1.000000e+00 : f32
    %260 = vector.broadcast %cst_136 : f32 to vector<8x32xf32>
    %261 = arith.addf %260, %259 : vector<8x32xf32>
    %262 = arith.divf %260, %261 : vector<8x32xf32>
    %c48_137 = arith.constant 48 : index
    %c0_138 = arith.constant 0 : index
    %263 = vector.load %arg11[%c48_137, %c0_138] : memref<64x32xf32, #tpu.memory_space<vmem>>, vector<8x32xf32>
    %cst_139 = arith.constant dense<0.000000e+00> : vector<8x32xf32>
    %264 = tpu.matmul %245, %28, %cst_139 {dimension_numbers = #tpu.dot_dimension_numbers<[1], [0], [0], [1], [0, 0, 1, 1], [], []>} : vector<8x32xf32>, vector<32x32xf32>, vector<8x32xf32> -> vector<8x32xf32>
    %265 = arith.addf %263, %264 : vector<8x32xf32>
    %266 = arith.negf %265 : vector<8x32xf32>
    %267 = math.exp %266 : vector<8x32xf32>
    %cst_140 = arith.constant 1.000000e+00 : f32
    %268 = vector.broadcast %cst_140 : f32 to vector<8x32xf32>
    %269 = arith.addf %268, %267 : vector<8x32xf32>
    %270 = arith.divf %268, %269 : vector<8x32xf32>
    %c48_141 = arith.constant 48 : index
    %c0_142 = arith.constant 0 : index
    %271 = vector.load %arg12[%c48_141, %c0_142] : memref<64x32xf32, #tpu.memory_space<vmem>>, vector<8x32xf32>
    %cst_143 = arith.constant dense<0.000000e+00> : vector<8x32xf32>
    %272 = tpu.matmul %245, %30, %cst_143 {dimension_numbers = #tpu.dot_dimension_numbers<[1], [0], [0], [1], [0, 0, 1, 1], [], []>} : vector<8x32xf32>, vector<32x32xf32>, vector<8x32xf32> -> vector<8x32xf32>
    %273 = vector.broadcast %31 : vector<1x32xf32> to vector<8x32xf32>
    %274 = arith.addf %272, %273 : vector<8x32xf32>
    %275 = arith.mulf %262, %274 : vector<8x32xf32>
    %276 = arith.addf %271, %275 : vector<8x32xf32>
    %277 = math.tanh %276 : vector<8x32xf32>
    %cst_144 = arith.constant 1.000000e+00 : f32
    %278 = vector.broadcast %cst_144 : f32 to vector<8x32xf32>
    %279 = arith.subf %278, %270 : vector<8x32xf32>
    %280 = arith.mulf %279, %277 : vector<8x32xf32>
    %281 = arith.mulf %270, %245 : vector<8x32xf32>
    %282 = arith.addf %280, %281 : vector<8x32xf32>
    %cst_145 = arith.constant 0.000000e+00 : f32
    %283 = vector.broadcast %cst_145 : f32 to vector<8x32xf32>
    %284 = arith.cmpf ogt, %282, %283 : vector<8x32xf32>
    %cst_146 = arith.constant 0.000000e+00 : f32
    %285 = vector.broadcast %cst_146 : f32 to vector<8x32xf32>
    %286 = arith.minimumf %282, %285 : vector<8x32xf32>
    %287 = math.exp %286 : vector<8x32xf32>
    %cst_147 = arith.constant 1.000000e+00 : f32
    %288 = vector.broadcast %cst_147 : f32 to vector<8x32xf32>
    %289 = arith.subf %287, %288 : vector<8x32xf32>
    %290 = arith.select %284, %282, %289 : vector<8x32xi1>, vector<8x32xf32>
    %c48_148 = arith.constant 48 : index
    %c0_149 = arith.constant 0 : index
    %291 = vector.load %arg13[%c48_148, %c0_149] : memref<64x32xf32, #tpu.memory_space<vmem>>, vector<8x32xf32>
    tpu.vector_store %arg13[%c48_148, %c0_149], %290 {strides = array<i32>} : memref<64x32xf32, #tpu.memory_space<vmem>>, vector<8x32xf32>,
    %c56 = arith.constant 56 : index
    %c0_150 = arith.constant 0 : index
    %292 = vector.load %arg10[%c56, %c0_150] : memref<64x32xf32, #tpu.memory_space<vmem>>, vector<8x32xf32>
    %cst_151 = arith.constant dense<0.000000e+00> : vector<8x32xf32>
    %293 = tpu.matmul %282, %26, %cst_151 {dimension_numbers = #tpu.dot_dimension_numbers<[1], [0], [0], [1], [0, 0, 1, 1], [], []>} : vector<8x32xf32>, vector<32x32xf32>, vector<8x32xf32> -> vector<8x32xf32>
    %294 = arith.addf %292, %293 : vector<8x32xf32>
    %295 = arith.negf %294 : vector<8x32xf32>
    %296 = math.exp %295 : vector<8x32xf32>
    %cst_152 = arith.constant 1.000000e+00 : f32
    %297 = vector.broadcast %cst_152 : f32 to vector<8x32xf32>
    %298 = arith.addf %297, %296 : vector<8x32xf32>
    %299 = arith.divf %297, %298 : vector<8x32xf32>
    %c56_153 = arith.constant 56 : index
    %c0_154 = arith.constant 0 : index
    %300 = vector.load %arg11[%c56_153, %c0_154] : memref<64x32xf32, #tpu.memory_space<vmem>>, vector<8x32xf32>
    %cst_155 = arith.constant dense<0.000000e+00> : vector<8x32xf32>
    %301 = tpu.matmul %282, %28, %cst_155 {dimension_numbers = #tpu.dot_dimension_numbers<[1], [0], [0], [1], [0, 0, 1, 1], [], []>} : vector<8x32xf32>, vector<32x32xf32>, vector<8x32xf32> -> vector<8x32xf32>
    %302 = arith.addf %300, %301 : vector<8x32xf32>
    %303 = arith.negf %302 : vector<8x32xf32>
    %304 = math.exp %303 : vector<8x32xf32>
    %cst_156 = arith.constant 1.000000e+00 : f32
    %305 = vector.broadcast %cst_156 : f32 to vector<8x32xf32>
    %306 = arith.addf %305, %304 : vector<8x32xf32>
    %307 = arith.divf %305, %306 : vector<8x32xf32>
    %c56_157 = arith.constant 56 : index
    %c0_158 = arith.constant 0 : index
    %308 = vector.load %arg12[%c56_157, %c0_158] : memref<64x32xf32, #tpu.memory_space<vmem>>, vector<8x32xf32>
    %cst_159 = arith.constant dense<0.000000e+00> : vector<8x32xf32>
    %309 = tpu.matmul %282, %30, %cst_159 {dimension_numbers = #tpu.dot_dimension_numbers<[1], [0], [0], [1], [0, 0, 1, 1], [], []>} : vector<8x32xf32>, vector<32x32xf32>, vector<8x32xf32> -> vector<8x32xf32>
    %310 = vector.broadcast %31 : vector<1x32xf32> to vector<8x32xf32>
    %311 = arith.addf %309, %310 : vector<8x32xf32>
    %312 = arith.mulf %299, %311 : vector<8x32xf32>
    %313 = arith.addf %308, %312 : vector<8x32xf32>
    %314 = math.tanh %313 : vector<8x32xf32>
    %cst_160 = arith.constant 1.000000e+00 : f32
    %315 = vector.broadcast %cst_160 : f32 to vector<8x32xf32>
    %316 = arith.subf %315, %307 : vector<8x32xf32>
    %317 = arith.mulf %316, %314 : vector<8x32xf32>
    %318 = arith.mulf %307, %282 : vector<8x32xf32>
    %319 = arith.addf %317, %318 : vector<8x32xf32>
    %cst_161 = arith.constant 0.000000e+00 : f32
    %320 = vector.broadcast %cst_161 : f32 to vector<8x32xf32>
    %321 = arith.cmpf ogt, %319, %320 : vector<8x32xf32>
    %cst_162 = arith.constant 0.000000e+00 : f32
    %322 = vector.broadcast %cst_162 : f32 to vector<8x32xf32>
    %323 = arith.minimumf %319, %322 : vector<8x32xf32>
    %324 = math.exp %323 : vector<8x32xf32>
    %cst_163 = arith.constant 1.000000e+00 : f32
    %325 = vector.broadcast %cst_163 : f32 to vector<8x32xf32>
    %326 = arith.subf %324, %325 : vector<8x32xf32>
    %327 = arith.select %321, %319, %326 : vector<8x32xi1>, vector<8x32xf32>
    %c56_164 = arith.constant 56 : index
    %c0_165 = arith.constant 0 : index
    %328 = vector.load %arg13[%c56_164, %c0_165] : memref<64x32xf32, #tpu.memory_space<vmem>>, vector<8x32xf32>
    tpu.vector_store %arg13[%c56_164, %c0_165], %327 {strides = array<i32>} : memref<64x32xf32, #tpu.memory_space<vmem>>, vector<8x32xf32>,
    %c0_166 = arith.constant 0 : index
    %c0_167 = arith.constant 0 : index
    %329 = vector.load %arg13[%c0_166, %c0_167] : memref<64x32xf32, #tpu.memory_space<vmem>>, vector<64x32xf32>
    %c0_168 = arith.constant 0 : index
    %c0_169 = arith.constant 0 : index
    %c0_170 = arith.constant 0 : index
    %330 = vector.load %arg5[%c0_168, %c0_169, %c0_170] : memref<3x32x16xf32, #tpu.memory_space<vmem>>, vector<1x32x16xf32>
    %331 = vector.shape_cast %330 : vector<1x32x16xf32> to vector<32x16xf32>
    %cst_171 = arith.constant dense<0.000000e+00> : vector<64x16xf32>
    %332 = tpu.matmul %329, %331, %cst_171 {dimension_numbers = #tpu.dot_dimension_numbers<[1], [0], [0], [1], [0, 0, 1, 1], [], []>} : vector<64x32xf32>, vector<32x16xf32>, vector<64x16xf32> -> vector<64x16xf32>
    %c0_172 = arith.constant 0 : index
    %c0_173 = arith.constant 0 : index
    %c0_174 = arith.constant 0 : index
    %333 = vector.load %arg7[%c0_172, %c0_173, %c0_174] : memref<3x1x16xf32, #tpu.memory_space<vmem>>, vector<1x1x16xf32>
    %334 = vector.shape_cast %333 : vector<1x1x16xf32> to vector<1x16xf32>
    %335 = vector.broadcast %334 : vector<1x16xf32> to vector<64x16xf32>
    %336 = arith.addf %332, %335 : vector<64x16xf32>
    %c0_175 = arith.constant 0 : index
    %c0_176 = arith.constant 0 : index
    %337 = vector.load %arg14[%c0_175, %c0_176] : memref<64x16xf32, #tpu.memory_space<vmem>>, vector<64x16xf32>
    tpu.vector_store %arg14[%c0_175, %c0_176], %336 {strides = array<i32>} : memref<64x16xf32, #tpu.memory_space<vmem>>, vector<64x16xf32>,
    %c1_177 = arith.constant 1 : index
    %c0_178 = arith.constant 0 : index
    %c0_179 = arith.constant 0 : index
    %338 = vector.load %arg5[%c1_177, %c0_178, %c0_179] : memref<3x32x16xf32, #tpu.memory_space<vmem>>, vector<1x32x16xf32>
    %339 = vector.shape_cast %338 : vector<1x32x16xf32> to vector<32x16xf32>
    %cst_180 = arith.constant dense<0.000000e+00> : vector<64x16xf32>
    %340 = tpu.matmul %329, %339, %cst_180 {dimension_numbers = #tpu.dot_dimension_numbers<[1], [0], [0], [1], [0, 0, 1, 1], [], []>} : vector<64x32xf32>, vector<32x16xf32>, vector<64x16xf32> -> vector<64x16xf32>
    %c1_181 = arith.constant 1 : index
    %c0_182 = arith.constant 0 : index
    %c0_183 = arith.constant 0 : index
    %341 = vector.load %arg7[%c1_181, %c0_182, %c0_183] : memref<3x1x16xf32, #tpu.memory_space<vmem>>, vector<1x1x16xf32>
    %342 = vector.shape_cast %341 : vector<1x1x16xf32> to vector<1x16xf32>
    %343 = vector.broadcast %342 : vector<1x16xf32> to vector<64x16xf32>
    %344 = arith.addf %340, %343 : vector<64x16xf32>
    %c0_184 = arith.constant 0 : index
    %c0_185 = arith.constant 0 : index
    %345 = vector.load %arg15[%c0_184, %c0_185] : memref<64x16xf32, #tpu.memory_space<vmem>>, vector<64x16xf32>
    tpu.vector_store %arg15[%c0_184, %c0_185], %344 {strides = array<i32>} : memref<64x16xf32, #tpu.memory_space<vmem>>, vector<64x16xf32>,
    %c2_186 = arith.constant 2 : index
    %c0_187 = arith.constant 0 : index
    %c0_188 = arith.constant 0 : index
    %346 = vector.load %arg5[%c2_186, %c0_187, %c0_188] : memref<3x32x16xf32, #tpu.memory_space<vmem>>, vector<1x32x16xf32>
    %347 = vector.shape_cast %346 : vector<1x32x16xf32> to vector<32x16xf32>
    %cst_189 = arith.constant dense<0.000000e+00> : vector<64x16xf32>
    %348 = tpu.matmul %329, %347, %cst_189 {dimension_numbers = #tpu.dot_dimension_numbers<[1], [0], [0], [1], [0, 0, 1, 1], [], []>} : vector<64x32xf32>, vector<32x16xf32>, vector<64x16xf32> -> vector<64x16xf32>
    %c2_190 = arith.constant 2 : index
    %c0_191 = arith.constant 0 : index
    %c0_192 = arith.constant 0 : index
    %349 = vector.load %arg7[%c2_190, %c0_191, %c0_192] : memref<3x1x16xf32, #tpu.memory_space<vmem>>, vector<1x1x16xf32>
    %350 = vector.shape_cast %349 : vector<1x1x16xf32> to vector<1x16xf32>
    %351 = vector.broadcast %350 : vector<1x16xf32> to vector<64x16xf32>
    %352 = arith.addf %348, %351 : vector<64x16xf32>
    %c0_193 = arith.constant 0 : index
    %c0_194 = arith.constant 0 : index
    %353 = vector.load %arg16[%c0_193, %c0_194] : memref<64x16xf32, #tpu.memory_space<vmem>>, vector<64x16xf32>
    tpu.vector_store %arg16[%c0_193, %c0_194], %352 {strides = array<i32>} : memref<64x16xf32, #tpu.memory_space<vmem>>, vector<64x16xf32>,
    %c0_195 = arith.constant 0 : index
    %c0_196 = arith.constant 0 : index
    %c0_197 = arith.constant 0 : index
    %354 = vector.load %arg6[%c0_195, %c0_196, %c0_197] : memref<3x16x16xf32, #tpu.memory_space<vmem>>, vector<1x16x16xf32>
    %355 = vector.shape_cast %354 : vector<1x16x16xf32> to vector<16x16xf32>
    %c1_198 = arith.constant 1 : index
    %c0_199 = arith.constant 0 : index
    %c0_200 = arith.constant 0 : index
    %356 = vector.load %arg6[%c1_198, %c0_199, %c0_200] : memref<3x16x16xf32, #tpu.memory_space<vmem>>, vector<1x16x16xf32>
    %357 = vector.shape_cast %356 : vector<1x16x16xf32> to vector<16x16xf32>
    %c2_201 = arith.constant 2 : index
    %c0_202 = arith.constant 0 : index
    %c0_203 = arith.constant 0 : index
    %358 = vector.load %arg6[%c2_201, %c0_202, %c0_203] : memref<3x16x16xf32, #tpu.memory_space<vmem>>, vector<1x16x16xf32>
    %359 = vector.shape_cast %358 : vector<1x16x16xf32> to vector<16x16xf32>
    %c0_204 = arith.constant 0 : index
    %c0_205 = arith.constant 0 : index
    %360 = vector.load %arg8[%c0_204, %c0_205] : memref<1x16xf32, #tpu.memory_space<vmem>>, vector<1x16xf32>
    %cst_206 = arith.constant 0.000000e+00 : f32
    %361 = vector.broadcast %cst_206 : f32 to vector<8x16xf32>
    %c0_207 = arith.constant 0 : index
    %c0_208 = arith.constant 0 : index
    %362 = vector.load %arg14[%c0_207, %c0_208] : memref<64x16xf32, #tpu.memory_space<vmem>>, vector<8x16xf32>
    %cst_209 = arith.constant dense<0.000000e+00> : vector<8x16xf32>
    %363 = tpu.matmul %361, %355, %cst_209 {dimension_numbers = #tpu.dot_dimension_numbers<[1], [0], [0], [1], [0, 0, 1, 1], [], []>} : vector<8x16xf32>, vector<16x16xf32>, vector<8x16xf32> -> vector<8x16xf32>
    %364 = arith.addf %362, %363 : vector<8x16xf32>
    %365 = arith.negf %364 : vector<8x16xf32>
    %366 = math.exp %365 : vector<8x16xf32>
    %cst_210 = arith.constant 1.000000e+00 : f32
    %367 = vector.broadcast %cst_210 : f32 to vector<8x16xf32>
    %368 = arith.addf %367, %366 : vector<8x16xf32>
    %369 = arith.divf %367, %368 : vector<8x16xf32>
    %c0_211 = arith.constant 0 : index
    %c0_212 = arith.constant 0 : index
    %370 = vector.load %arg15[%c0_211, %c0_212] : memref<64x16xf32, #tpu.memory_space<vmem>>, vector<8x16xf32>
    %cst_213 = arith.constant dense<0.000000e+00> : vector<8x16xf32>
    %371 = tpu.matmul %361, %357, %cst_213 {dimension_numbers = #tpu.dot_dimension_numbers<[1], [0], [0], [1], [0, 0, 1, 1], [], []>} : vector<8x16xf32>, vector<16x16xf32>, vector<8x16xf32> -> vector<8x16xf32>
    %372 = arith.addf %370, %371 : vector<8x16xf32>
    %373 = arith.negf %372 : vector<8x16xf32>
    %374 = math.exp %373 : vector<8x16xf32>
    %cst_214 = arith.constant 1.000000e+00 : f32
    %375 = vector.broadcast %cst_214 : f32 to vector<8x16xf32>
    %376 = arith.addf %375, %374 : vector<8x16xf32>
    %377 = arith.divf %375, %376 : vector<8x16xf32>
    %c0_215 = arith.constant 0 : index
    %c0_216 = arith.constant 0 : index
    %378 = vector.load %arg16[%c0_215, %c0_216] : memref<64x16xf32, #tpu.memory_space<vmem>>, vector<8x16xf32>
    %cst_217 = arith.constant dense<0.000000e+00> : vector<8x16xf32>
    %379 = tpu.matmul %361, %359, %cst_217 {dimension_numbers = #tpu.dot_dimension_numbers<[1], [0], [0], [1], [0, 0, 1, 1], [], []>} : vector<8x16xf32>, vector<16x16xf32>, vector<8x16xf32> -> vector<8x16xf32>
    %380 = vector.broadcast %360 : vector<1x16xf32> to vector<8x16xf32>
    %381 = arith.addf %379, %380 : vector<8x16xf32>
    %382 = arith.mulf %369, %381 : vector<8x16xf32>
    %383 = arith.addf %378, %382 : vector<8x16xf32>
    %384 = math.tanh %383 : vector<8x16xf32>
    %cst_218 = arith.constant 1.000000e+00 : f32
    %385 = vector.broadcast %cst_218 : f32 to vector<8x16xf32>
    %386 = arith.subf %385, %377 : vector<8x16xf32>
    %387 = arith.mulf %386, %384 : vector<8x16xf32>
    %388 = arith.mulf %377, %361 : vector<8x16xf32>
    %389 = arith.addf %387, %388 : vector<8x16xf32>
    %cst_219 = arith.constant 0.000000e+00 : f32
    %390 = vector.broadcast %cst_219 : f32 to vector<8x16xf32>
    %391 = arith.cmpf ogt, %389, %390 : vector<8x16xf32>
    %cst_220 = arith.constant 0.000000e+00 : f32
    %392 = vector.broadcast %cst_220 : f32 to vector<8x16xf32>
    %393 = arith.minimumf %389, %392 : vector<8x16xf32>
    %394 = math.exp %393 : vector<8x16xf32>
    %cst_221 = arith.constant 1.000000e+00 : f32
    %395 = vector.broadcast %cst_221 : f32 to vector<8x16xf32>
    %396 = arith.subf %394, %395 : vector<8x16xf32>
    %397 = arith.select %391, %389, %396 : vector<8x16xi1>, vector<8x16xf32>
    %c0_222 = arith.constant 0 : index
    %c0_223 = arith.constant 0 : index
    %398 = vector.load %arg9[%c0_222, %c0_223] : memref<64x16xf32, #tpu.memory_space<vmem>>, vector<8x16xf32>
    tpu.vector_store %arg9[%c0_222, %c0_223], %397 {strides = array<i32>} : memref<64x16xf32, #tpu.memory_space<vmem>>, vector<8x16xf32>,
    %c8_224 = arith.constant 8 : index
    %c0_225 = arith.constant 0 : index
    %399 = vector.load %arg14[%c8_224, %c0_225] : memref<64x16xf32, #tpu.memory_space<vmem>>, vector<8x16xf32>
    %cst_226 = arith.constant dense<0.000000e+00> : vector<8x16xf32>
    %400 = tpu.matmul %389, %355, %cst_226 {dimension_numbers = #tpu.dot_dimension_numbers<[1], [0], [0], [1], [0, 0, 1, 1], [], []>} : vector<8x16xf32>, vector<16x16xf32>, vector<8x16xf32> -> vector<8x16xf32>
    %401 = arith.addf %399, %400 : vector<8x16xf32>
    %402 = arith.negf %401 : vector<8x16xf32>
    %403 = math.exp %402 : vector<8x16xf32>
    %cst_227 = arith.constant 1.000000e+00 : f32
    %404 = vector.broadcast %cst_227 : f32 to vector<8x16xf32>
    %405 = arith.addf %404, %403 : vector<8x16xf32>
    %406 = arith.divf %404, %405 : vector<8x16xf32>
    %c8_228 = arith.constant 8 : index
    %c0_229 = arith.constant 0 : index
    %407 = vector.load %arg15[%c8_228, %c0_229] : memref<64x16xf32, #tpu.memory_space<vmem>>, vector<8x16xf32>
    %cst_230 = arith.constant dense<0.000000e+00> : vector<8x16xf32>
    %408 = tpu.matmul %389, %357, %cst_230 {dimension_numbers = #tpu.dot_dimension_numbers<[1], [0], [0], [1], [0, 0, 1, 1], [], []>} : vector<8x16xf32>, vector<16x16xf32>, vector<8x16xf32> -> vector<8x16xf32>
    %409 = arith.addf %407, %408 : vector<8x16xf32>
    %410 = arith.negf %409 : vector<8x16xf32>
    %411 = math.exp %410 : vector<8x16xf32>
    %cst_231 = arith.constant 1.000000e+00 : f32
    %412 = vector.broadcast %cst_231 : f32 to vector<8x16xf32>
    %413 = arith.addf %412, %411 : vector<8x16xf32>
    %414 = arith.divf %412, %413 : vector<8x16xf32>
    %c8_232 = arith.constant 8 : index
    %c0_233 = arith.constant 0 : index
    %415 = vector.load %arg16[%c8_232, %c0_233] : memref<64x16xf32, #tpu.memory_space<vmem>>, vector<8x16xf32>
    %cst_234 = arith.constant dense<0.000000e+00> : vector<8x16xf32>
    %416 = tpu.matmul %389, %359, %cst_234 {dimension_numbers = #tpu.dot_dimension_numbers<[1], [0], [0], [1], [0, 0, 1, 1], [], []>} : vector<8x16xf32>, vector<16x16xf32>, vector<8x16xf32> -> vector<8x16xf32>
    %417 = vector.broadcast %360 : vector<1x16xf32> to vector<8x16xf32>
    %418 = arith.addf %416, %417 : vector<8x16xf32>
    %419 = arith.mulf %406, %418 : vector<8x16xf32>
    %420 = arith.addf %415, %419 : vector<8x16xf32>
    %421 = math.tanh %420 : vector<8x16xf32>
    %cst_235 = arith.constant 1.000000e+00 : f32
    %422 = vector.broadcast %cst_235 : f32 to vector<8x16xf32>
    %423 = arith.subf %422, %414 : vector<8x16xf32>
    %424 = arith.mulf %423, %421 : vector<8x16xf32>
    %425 = arith.mulf %414, %389 : vector<8x16xf32>
    %426 = arith.addf %424, %425 : vector<8x16xf32>
    %cst_236 = arith.constant 0.000000e+00 : f32
    %427 = vector.broadcast %cst_236 : f32 to vector<8x16xf32>
    %428 = arith.cmpf ogt, %426, %427 : vector<8x16xf32>
    %cst_237 = arith.constant 0.000000e+00 : f32
    %429 = vector.broadcast %cst_237 : f32 to vector<8x16xf32>
    %430 = arith.minimumf %426, %429 : vector<8x16xf32>
    %431 = math.exp %430 : vector<8x16xf32>
    %cst_238 = arith.constant 1.000000e+00 : f32
    %432 = vector.broadcast %cst_238 : f32 to vector<8x16xf32>
    %433 = arith.subf %431, %432 : vector<8x16xf32>
    %434 = arith.select %428, %426, %433 : vector<8x16xi1>, vector<8x16xf32>
    %c8_239 = arith.constant 8 : index
    %c0_240 = arith.constant 0 : index
    %435 = vector.load %arg9[%c8_239, %c0_240] : memref<64x16xf32, #tpu.memory_space<vmem>>, vector<8x16xf32>
    tpu.vector_store %arg9[%c8_239, %c0_240], %434 {strides = array<i32>} : memref<64x16xf32, #tpu.memory_space<vmem>>, vector<8x16xf32>,
    %c16_241 = arith.constant 16 : index
    %c0_242 = arith.constant 0 : index
    %436 = vector.load %arg14[%c16_241, %c0_242] : memref<64x16xf32, #tpu.memory_space<vmem>>, vector<8x16xf32>
    %cst_243 = arith.constant dense<0.000000e+00> : vector<8x16xf32>
    %437 = tpu.matmul %426, %355, %cst_243 {dimension_numbers = #tpu.dot_dimension_numbers<[1], [0], [0], [1], [0, 0, 1, 1], [], []>} : vector<8x16xf32>, vector<16x16xf32>, vector<8x16xf32> -> vector<8x16xf32>
    %438 = arith.addf %436, %437 : vector<8x16xf32>
    %439 = arith.negf %438 : vector<8x16xf32>
    %440 = math.exp %439 : vector<8x16xf32>
    %cst_244 = arith.constant 1.000000e+00 : f32
    %441 = vector.broadcast %cst_244 : f32 to vector<8x16xf32>
    %442 = arith.addf %441, %440 : vector<8x16xf32>
    %443 = arith.divf %441, %442 : vector<8x16xf32>
    %c16_245 = arith.constant 16 : index
    %c0_246 = arith.constant 0 : index
    %444 = vector.load %arg15[%c16_245, %c0_246] : memref<64x16xf32, #tpu.memory_space<vmem>>, vector<8x16xf32>
    %cst_247 = arith.constant dense<0.000000e+00> : vector<8x16xf32>
    %445 = tpu.matmul %426, %357, %cst_247 {dimension_numbers = #tpu.dot_dimension_numbers<[1], [0], [0], [1], [0, 0, 1, 1], [], []>} : vector<8x16xf32>, vector<16x16xf32>, vector<8x16xf32> -> vector<8x16xf32>
    %446 = arith.addf %444, %445 : vector<8x16xf32>
    %447 = arith.negf %446 : vector<8x16xf32>
    %448 = math.exp %447 : vector<8x16xf32>
    %cst_248 = arith.constant 1.000000e+00 : f32
    %449 = vector.broadcast %cst_248 : f32 to vector<8x16xf32>
    %450 = arith.addf %449, %448 : vector<8x16xf32>
    %451 = arith.divf %449, %450 : vector<8x16xf32>
    %c16_249 = arith.constant 16 : index
    %c0_250 = arith.constant 0 : index
    %452 = vector.load %arg16[%c16_249, %c0_250] : memref<64x16xf32, #tpu.memory_space<vmem>>, vector<8x16xf32>
    %cst_251 = arith.constant dense<0.000000e+00> : vector<8x16xf32>
    %453 = tpu.matmul %426, %359, %cst_251 {dimension_numbers = #tpu.dot_dimension_numbers<[1], [0], [0], [1], [0, 0, 1, 1], [], []>} : vector<8x16xf32>, vector<16x16xf32>, vector<8x16xf32> -> vector<8x16xf32>
    %454 = vector.broadcast %360 : vector<1x16xf32> to vector<8x16xf32>
    %455 = arith.addf %453, %454 : vector<8x16xf32>
    %456 = arith.mulf %443, %455 : vector<8x16xf32>
    %457 = arith.addf %452, %456 : vector<8x16xf32>
    %458 = math.tanh %457 : vector<8x16xf32>
    %cst_252 = arith.constant 1.000000e+00 : f32
    %459 = vector.broadcast %cst_252 : f32 to vector<8x16xf32>
    %460 = arith.subf %459, %451 : vector<8x16xf32>
    %461 = arith.mulf %460, %458 : vector<8x16xf32>
    %462 = arith.mulf %451, %426 : vector<8x16xf32>
    %463 = arith.addf %461, %462 : vector<8x16xf32>
    %cst_253 = arith.constant 0.000000e+00 : f32
    %464 = vector.broadcast %cst_253 : f32 to vector<8x16xf32>
    %465 = arith.cmpf ogt, %463, %464 : vector<8x16xf32>
    %cst_254 = arith.constant 0.000000e+00 : f32
    %466 = vector.broadcast %cst_254 : f32 to vector<8x16xf32>
    %467 = arith.minimumf %463, %466 : vector<8x16xf32>
    %468 = math.exp %467 : vector<8x16xf32>
    %cst_255 = arith.constant 1.000000e+00 : f32
    %469 = vector.broadcast %cst_255 : f32 to vector<8x16xf32>
    %470 = arith.subf %468, %469 : vector<8x16xf32>
    %471 = arith.select %465, %463, %470 : vector<8x16xi1>, vector<8x16xf32>
    %c16_256 = arith.constant 16 : index
    %c0_257 = arith.constant 0 : index
    %472 = vector.load %arg9[%c16_256, %c0_257] : memref<64x16xf32, #tpu.memory_space<vmem>>, vector<8x16xf32>
    tpu.vector_store %arg9[%c16_256, %c0_257], %471 {strides = array<i32>} : memref<64x16xf32, #tpu.memory_space<vmem>>, vector<8x16xf32>,
    %c24_258 = arith.constant 24 : index
    %c0_259 = arith.constant 0 : index
    %473 = vector.load %arg14[%c24_258, %c0_259] : memref<64x16xf32, #tpu.memory_space<vmem>>, vector<8x16xf32>
    %cst_260 = arith.constant dense<0.000000e+00> : vector<8x16xf32>
    %474 = tpu.matmul %463, %355, %cst_260 {dimension_numbers = #tpu.dot_dimension_numbers<[1], [0], [0], [1], [0, 0, 1, 1], [], []>} : vector<8x16xf32>, vector<16x16xf32>, vector<8x16xf32> -> vector<8x16xf32>
    %475 = arith.addf %473, %474 : vector<8x16xf32>
    %476 = arith.negf %475 : vector<8x16xf32>
    %477 = math.exp %476 : vector<8x16xf32>
    %cst_261 = arith.constant 1.000000e+00 : f32
    %478 = vector.broadcast %cst_261 : f32 to vector<8x16xf32>
    %479 = arith.addf %478, %477 : vector<8x16xf32>
    %480 = arith.divf %478, %479 : vector<8x16xf32>
    %c24_262 = arith.constant 24 : index
    %c0_263 = arith.constant 0 : index
    %481 = vector.load %arg15[%c24_262, %c0_263] : memref<64x16xf32, #tpu.memory_space<vmem>>, vector<8x16xf32>
    %cst_264 = arith.constant dense<0.000000e+00> : vector<8x16xf32>
    %482 = tpu.matmul %463, %357, %cst_264 {dimension_numbers = #tpu.dot_dimension_numbers<[1], [0], [0], [1], [0, 0, 1, 1], [], []>} : vector<8x16xf32>, vector<16x16xf32>, vector<8x16xf32> -> vector<8x16xf32>
    %483 = arith.addf %481, %482 : vector<8x16xf32>
    %484 = arith.negf %483 : vector<8x16xf32>
    %485 = math.exp %484 : vector<8x16xf32>
    %cst_265 = arith.constant 1.000000e+00 : f32
    %486 = vector.broadcast %cst_265 : f32 to vector<8x16xf32>
    %487 = arith.addf %486, %485 : vector<8x16xf32>
    %488 = arith.divf %486, %487 : vector<8x16xf32>
    %c24_266 = arith.constant 24 : index
    %c0_267 = arith.constant 0 : index
    %489 = vector.load %arg16[%c24_266, %c0_267] : memref<64x16xf32, #tpu.memory_space<vmem>>, vector<8x16xf32>
    %cst_268 = arith.constant dense<0.000000e+00> : vector<8x16xf32>
    %490 = tpu.matmul %463, %359, %cst_268 {dimension_numbers = #tpu.dot_dimension_numbers<[1], [0], [0], [1], [0, 0, 1, 1], [], []>} : vector<8x16xf32>, vector<16x16xf32>, vector<8x16xf32> -> vector<8x16xf32>
    %491 = vector.broadcast %360 : vector<1x16xf32> to vector<8x16xf32>
    %492 = arith.addf %490, %491 : vector<8x16xf32>
    %493 = arith.mulf %480, %492 : vector<8x16xf32>
    %494 = arith.addf %489, %493 : vector<8x16xf32>
    %495 = math.tanh %494 : vector<8x16xf32>
    %cst_269 = arith.constant 1.000000e+00 : f32
    %496 = vector.broadcast %cst_269 : f32 to vector<8x16xf32>
    %497 = arith.subf %496, %488 : vector<8x16xf32>
    %498 = arith.mulf %497, %495 : vector<8x16xf32>
    %499 = arith.mulf %488, %463 : vector<8x16xf32>
    %500 = arith.addf %498, %499 : vector<8x16xf32>
    %cst_270 = arith.constant 0.000000e+00 : f32
    %501 = vector.broadcast %cst_270 : f32 to vector<8x16xf32>
    %502 = arith.cmpf ogt, %500, %501 : vector<8x16xf32>
    %cst_271 = arith.constant 0.000000e+00 : f32
    %503 = vector.broadcast %cst_271 : f32 to vector<8x16xf32>
    %504 = arith.minimumf %500, %503 : vector<8x16xf32>
    %505 = math.exp %504 : vector<8x16xf32>
    %cst_272 = arith.constant 1.000000e+00 : f32
    %506 = vector.broadcast %cst_272 : f32 to vector<8x16xf32>
    %507 = arith.subf %505, %506 : vector<8x16xf32>
    %508 = arith.select %502, %500, %507 : vector<8x16xi1>, vector<8x16xf32>
    %c24_273 = arith.constant 24 : index
    %c0_274 = arith.constant 0 : index
    %509 = vector.load %arg9[%c24_273, %c0_274] : memref<64x16xf32, #tpu.memory_space<vmem>>, vector<8x16xf32>
    tpu.vector_store %arg9[%c24_273, %c0_274], %508 {strides = array<i32>} : memref<64x16xf32, #tpu.memory_space<vmem>>, vector<8x16xf32>,
    %c32_275 = arith.constant 32 : index
    %c0_276 = arith.constant 0 : index
    %510 = vector.load %arg14[%c32_275, %c0_276] : memref<64x16xf32, #tpu.memory_space<vmem>>, vector<8x16xf32>
    %cst_277 = arith.constant dense<0.000000e+00> : vector<8x16xf32>
    %511 = tpu.matmul %500, %355, %cst_277 {dimension_numbers = #tpu.dot_dimension_numbers<[1], [0], [0], [1], [0, 0, 1, 1], [], []>} : vector<8x16xf32>, vector<16x16xf32>, vector<8x16xf32> -> vector<8x16xf32>
    %512 = arith.addf %510, %511 : vector<8x16xf32>
    %513 = arith.negf %512 : vector<8x16xf32>
    %514 = math.exp %513 : vector<8x16xf32>
    %cst_278 = arith.constant 1.000000e+00 : f32
    %515 = vector.broadcast %cst_278 : f32 to vector<8x16xf32>
    %516 = arith.addf %515, %514 : vector<8x16xf32>
    %517 = arith.divf %515, %516 : vector<8x16xf32>
    %c32_279 = arith.constant 32 : index
    %c0_280 = arith.constant 0 : index
    %518 = vector.load %arg15[%c32_279, %c0_280] : memref<64x16xf32, #tpu.memory_space<vmem>>, vector<8x16xf32>
    %cst_281 = arith.constant dense<0.000000e+00> : vector<8x16xf32>
    %519 = tpu.matmul %500, %357, %cst_281 {dimension_numbers = #tpu.dot_dimension_numbers<[1], [0], [0], [1], [0, 0, 1, 1], [], []>} : vector<8x16xf32>, vector<16x16xf32>, vector<8x16xf32> -> vector<8x16xf32>
    %520 = arith.addf %518, %519 : vector<8x16xf32>
    %521 = arith.negf %520 : vector<8x16xf32>
    %522 = math.exp %521 : vector<8x16xf32>
    %cst_282 = arith.constant 1.000000e+00 : f32
    %523 = vector.broadcast %cst_282 : f32 to vector<8x16xf32>
    %524 = arith.addf %523, %522 : vector<8x16xf32>
    %525 = arith.divf %523, %524 : vector<8x16xf32>
    %c32_283 = arith.constant 32 : index
    %c0_284 = arith.constant 0 : index
    %526 = vector.load %arg16[%c32_283, %c0_284] : memref<64x16xf32, #tpu.memory_space<vmem>>, vector<8x16xf32>
    %cst_285 = arith.constant dense<0.000000e+00> : vector<8x16xf32>
    %527 = tpu.matmul %500, %359, %cst_285 {dimension_numbers = #tpu.dot_dimension_numbers<[1], [0], [0], [1], [0, 0, 1, 1], [], []>} : vector<8x16xf32>, vector<16x16xf32>, vector<8x16xf32> -> vector<8x16xf32>
    %528 = vector.broadcast %360 : vector<1x16xf32> to vector<8x16xf32>
    %529 = arith.addf %527, %528 : vector<8x16xf32>
    %530 = arith.mulf %517, %529 : vector<8x16xf32>
    %531 = arith.addf %526, %530 : vector<8x16xf32>
    %532 = math.tanh %531 : vector<8x16xf32>
    %cst_286 = arith.constant 1.000000e+00 : f32
    %533 = vector.broadcast %cst_286 : f32 to vector<8x16xf32>
    %534 = arith.subf %533, %525 : vector<8x16xf32>
    %535 = arith.mulf %534, %532 : vector<8x16xf32>
    %536 = arith.mulf %525, %500 : vector<8x16xf32>
    %537 = arith.addf %535, %536 : vector<8x16xf32>
    %cst_287 = arith.constant 0.000000e+00 : f32
    %538 = vector.broadcast %cst_287 : f32 to vector<8x16xf32>
    %539 = arith.cmpf ogt, %537, %538 : vector<8x16xf32>
    %cst_288 = arith.constant 0.000000e+00 : f32
    %540 = vector.broadcast %cst_288 : f32 to vector<8x16xf32>
    %541 = arith.minimumf %537, %540 : vector<8x16xf32>
    %542 = math.exp %541 : vector<8x16xf32>
    %cst_289 = arith.constant 1.000000e+00 : f32
    %543 = vector.broadcast %cst_289 : f32 to vector<8x16xf32>
    %544 = arith.subf %542, %543 : vector<8x16xf32>
    %545 = arith.select %539, %537, %544 : vector<8x16xi1>, vector<8x16xf32>
    %c32_290 = arith.constant 32 : index
    %c0_291 = arith.constant 0 : index
    %546 = vector.load %arg9[%c32_290, %c0_291] : memref<64x16xf32, #tpu.memory_space<vmem>>, vector<8x16xf32>
    tpu.vector_store %arg9[%c32_290, %c0_291], %545 {strides = array<i32>} : memref<64x16xf32, #tpu.memory_space<vmem>>, vector<8x16xf32>,
    %c40_292 = arith.constant 40 : index
    %c0_293 = arith.constant 0 : index
    %547 = vector.load %arg14[%c40_292, %c0_293] : memref<64x16xf32, #tpu.memory_space<vmem>>, vector<8x16xf32>
    %cst_294 = arith.constant dense<0.000000e+00> : vector<8x16xf32>
    %548 = tpu.matmul %537, %355, %cst_294 {dimension_numbers = #tpu.dot_dimension_numbers<[1], [0], [0], [1], [0, 0, 1, 1], [], []>} : vector<8x16xf32>, vector<16x16xf32>, vector<8x16xf32> -> vector<8x16xf32>
    %549 = arith.addf %547, %548 : vector<8x16xf32>
    %550 = arith.negf %549 : vector<8x16xf32>
    %551 = math.exp %550 : vector<8x16xf32>
    %cst_295 = arith.constant 1.000000e+00 : f32
    %552 = vector.broadcast %cst_295 : f32 to vector<8x16xf32>
    %553 = arith.addf %552, %551 : vector<8x16xf32>
    %554 = arith.divf %552, %553 : vector<8x16xf32>
    %c40_296 = arith.constant 40 : index
    %c0_297 = arith.constant 0 : index
    %555 = vector.load %arg15[%c40_296, %c0_297] : memref<64x16xf32, #tpu.memory_space<vmem>>, vector<8x16xf32>
    %cst_298 = arith.constant dense<0.000000e+00> : vector<8x16xf32>
    %556 = tpu.matmul %537, %357, %cst_298 {dimension_numbers = #tpu.dot_dimension_numbers<[1], [0], [0], [1], [0, 0, 1, 1], [], []>} : vector<8x16xf32>, vector<16x16xf32>, vector<8x16xf32> -> vector<8x16xf32>
    %557 = arith.addf %555, %556 : vector<8x16xf32>
    %558 = arith.negf %557 : vector<8x16xf32>
    %559 = math.exp %558 : vector<8x16xf32>
    %cst_299 = arith.constant 1.000000e+00 : f32
    %560 = vector.broadcast %cst_299 : f32 to vector<8x16xf32>
    %561 = arith.addf %560, %559 : vector<8x16xf32>
    %562 = arith.divf %560, %561 : vector<8x16xf32>
    %c40_300 = arith.constant 40 : index
    %c0_301 = arith.constant 0 : index
    %563 = vector.load %arg16[%c40_300, %c0_301] : memref<64x16xf32, #tpu.memory_space<vmem>>, vector<8x16xf32>
    %cst_302 = arith.constant dense<0.000000e+00> : vector<8x16xf32>
    %564 = tpu.matmul %537, %359, %cst_302 {dimension_numbers = #tpu.dot_dimension_numbers<[1], [0], [0], [1], [0, 0, 1, 1], [], []>} : vector<8x16xf32>, vector<16x16xf32>, vector<8x16xf32> -> vector<8x16xf32>
    %565 = vector.broadcast %360 : vector<1x16xf32> to vector<8x16xf32>
    %566 = arith.addf %564, %565 : vector<8x16xf32>
    %567 = arith.mulf %554, %566 : vector<8x16xf32>
    %568 = arith.addf %563, %567 : vector<8x16xf32>
    %569 = math.tanh %568 : vector<8x16xf32>
    %cst_303 = arith.constant 1.000000e+00 : f32
    %570 = vector.broadcast %cst_303 : f32 to vector<8x16xf32>
    %571 = arith.subf %570, %562 : vector<8x16xf32>
    %572 = arith.mulf %571, %569 : vector<8x16xf32>
    %573 = arith.mulf %562, %537 : vector<8x16xf32>
    %574 = arith.addf %572, %573 : vector<8x16xf32>
    %cst_304 = arith.constant 0.000000e+00 : f32
    %575 = vector.broadcast %cst_304 : f32 to vector<8x16xf32>
    %576 = arith.cmpf ogt, %574, %575 : vector<8x16xf32>
    %cst_305 = arith.constant 0.000000e+00 : f32
    %577 = vector.broadcast %cst_305 : f32 to vector<8x16xf32>
    %578 = arith.minimumf %574, %577 : vector<8x16xf32>
    %579 = math.exp %578 : vector<8x16xf32>
    %cst_306 = arith.constant 1.000000e+00 : f32
    %580 = vector.broadcast %cst_306 : f32 to vector<8x16xf32>
    %581 = arith.subf %579, %580 : vector<8x16xf32>
    %582 = arith.select %576, %574, %581 : vector<8x16xi1>, vector<8x16xf32>
    %c40_307 = arith.constant 40 : index
    %c0_308 = arith.constant 0 : index
    %583 = vector.load %arg9[%c40_307, %c0_308] : memref<64x16xf32, #tpu.memory_space<vmem>>, vector<8x16xf32>
    tpu.vector_store %arg9[%c40_307, %c0_308], %582 {strides = array<i32>} : memref<64x16xf32, #tpu.memory_space<vmem>>, vector<8x16xf32>,
    %c48_309 = arith.constant 48 : index
    %c0_310 = arith.constant 0 : index
    %584 = vector.load %arg14[%c48_309, %c0_310] : memref<64x16xf32, #tpu.memory_space<vmem>>, vector<8x16xf32>
    %cst_311 = arith.constant dense<0.000000e+00> : vector<8x16xf32>
    %585 = tpu.matmul %574, %355, %cst_311 {dimension_numbers = #tpu.dot_dimension_numbers<[1], [0], [0], [1], [0, 0, 1, 1], [], []>} : vector<8x16xf32>, vector<16x16xf32>, vector<8x16xf32> -> vector<8x16xf32>
    %586 = arith.addf %584, %585 : vector<8x16xf32>
    %587 = arith.negf %586 : vector<8x16xf32>
    %588 = math.exp %587 : vector<8x16xf32>
    %cst_312 = arith.constant 1.000000e+00 : f32
    %589 = vector.broadcast %cst_312 : f32 to vector<8x16xf32>
    %590 = arith.addf %589, %588 : vector<8x16xf32>
    %591 = arith.divf %589, %590 : vector<8x16xf32>
    %c48_313 = arith.constant 48 : index
    %c0_314 = arith.constant 0 : index
    %592 = vector.load %arg15[%c48_313, %c0_314] : memref<64x16xf32, #tpu.memory_space<vmem>>, vector<8x16xf32>
    %cst_315 = arith.constant dense<0.000000e+00> : vector<8x16xf32>
    %593 = tpu.matmul %574, %357, %cst_315 {dimension_numbers = #tpu.dot_dimension_numbers<[1], [0], [0], [1], [0, 0, 1, 1], [], []>} : vector<8x16xf32>, vector<16x16xf32>, vector<8x16xf32> -> vector<8x16xf32>
    %594 = arith.addf %592, %593 : vector<8x16xf32>
    %595 = arith.negf %594 : vector<8x16xf32>
    %596 = math.exp %595 : vector<8x16xf32>
    %cst_316 = arith.constant 1.000000e+00 : f32
    %597 = vector.broadcast %cst_316 : f32 to vector<8x16xf32>
    %598 = arith.addf %597, %596 : vector<8x16xf32>
    %599 = arith.divf %597, %598 : vector<8x16xf32>
    %c48_317 = arith.constant 48 : index
    %c0_318 = arith.constant 0 : index
    %600 = vector.load %arg16[%c48_317, %c0_318] : memref<64x16xf32, #tpu.memory_space<vmem>>, vector<8x16xf32>
    %cst_319 = arith.constant dense<0.000000e+00> : vector<8x16xf32>
    %601 = tpu.matmul %574, %359, %cst_319 {dimension_numbers = #tpu.dot_dimension_numbers<[1], [0], [0], [1], [0, 0, 1, 1], [], []>} : vector<8x16xf32>, vector<16x16xf32>, vector<8x16xf32> -> vector<8x16xf32>
    %602 = vector.broadcast %360 : vector<1x16xf32> to vector<8x16xf32>
    %603 = arith.addf %601, %602 : vector<8x16xf32>
    %604 = arith.mulf %591, %603 : vector<8x16xf32>
    %605 = arith.addf %600, %604 : vector<8x16xf32>
    %606 = math.tanh %605 : vector<8x16xf32>
    %cst_320 = arith.constant 1.000000e+00 : f32
    %607 = vector.broadcast %cst_320 : f32 to vector<8x16xf32>
    %608 = arith.subf %607, %599 : vector<8x16xf32>
    %609 = arith.mulf %608, %606 : vector<8x16xf32>
    %610 = arith.mulf %599, %574 : vector<8x16xf32>
    %611 = arith.addf %609, %610 : vector<8x16xf32>
    %cst_321 = arith.constant 0.000000e+00 : f32
    %612 = vector.broadcast %cst_321 : f32 to vector<8x16xf32>
    %613 = arith.cmpf ogt, %611, %612 : vector<8x16xf32>
    %cst_322 = arith.constant 0.000000e+00 : f32
    %614 = vector.broadcast %cst_322 : f32 to vector<8x16xf32>
    %615 = arith.minimumf %611, %614 : vector<8x16xf32>
    %616 = math.exp %615 : vector<8x16xf32>
    %cst_323 = arith.constant 1.000000e+00 : f32
    %617 = vector.broadcast %cst_323 : f32 to vector<8x16xf32>
    %618 = arith.subf %616, %617 : vector<8x16xf32>
    %619 = arith.select %613, %611, %618 : vector<8x16xi1>, vector<8x16xf32>
    %c48_324 = arith.constant 48 : index
    %c0_325 = arith.constant 0 : index
    %620 = vector.load %arg9[%c48_324, %c0_325] : memref<64x16xf32, #tpu.memory_space<vmem>>, vector<8x16xf32>
    tpu.vector_store %arg9[%c48_324, %c0_325], %619 {strides = array<i32>} : memref<64x16xf32, #tpu.memory_space<vmem>>, vector<8x16xf32>,
    %c56_326 = arith.constant 56 : index
    %c0_327 = arith.constant 0 : index
    %621 = vector.load %arg14[%c56_326, %c0_327] : memref<64x16xf32, #tpu.memory_space<vmem>>, vector<8x16xf32>
    %cst_328 = arith.constant dense<0.000000e+00> : vector<8x16xf32>
    %622 = tpu.matmul %611, %355, %cst_328 {dimension_numbers = #tpu.dot_dimension_numbers<[1], [0], [0], [1], [0, 0, 1, 1], [], []>} : vector<8x16xf32>, vector<16x16xf32>, vector<8x16xf32> -> vector<8x16xf32>
    %623 = arith.addf %621, %622 : vector<8x16xf32>
    %624 = arith.negf %623 : vector<8x16xf32>
    %625 = math.exp %624 : vector<8x16xf32>
    %cst_329 = arith.constant 1.000000e+00 : f32
    %626 = vector.broadcast %cst_329 : f32 to vector<8x16xf32>
    %627 = arith.addf %626, %625 : vector<8x16xf32>
    %628 = arith.divf %626, %627 : vector<8x16xf32>
    %c56_330 = arith.constant 56 : index
    %c0_331 = arith.constant 0 : index
    %629 = vector.load %arg15[%c56_330, %c0_331] : memref<64x16xf32, #tpu.memory_space<vmem>>, vector<8x16xf32>
    %cst_332 = arith.constant dense<0.000000e+00> : vector<8x16xf32>
    %630 = tpu.matmul %611, %357, %cst_332 {dimension_numbers = #tpu.dot_dimension_numbers<[1], [0], [0], [1], [0, 0, 1, 1], [], []>} : vector<8x16xf32>, vector<16x16xf32>, vector<8x16xf32> -> vector<8x16xf32>
    %631 = arith.addf %629, %630 : vector<8x16xf32>
    %632 = arith.negf %631 : vector<8x16xf32>
    %633 = math.exp %632 : vector<8x16xf32>
    %cst_333 = arith.constant 1.000000e+00 : f32
    %634 = vector.broadcast %cst_333 : f32 to vector<8x16xf32>
    %635 = arith.addf %634, %633 : vector<8x16xf32>
    %636 = arith.divf %634, %635 : vector<8x16xf32>
    %c56_334 = arith.constant 56 : index
    %c0_335 = arith.constant 0 : index
    %637 = vector.load %arg16[%c56_334, %c0_335] : memref<64x16xf32, #tpu.memory_space<vmem>>, vector<8x16xf32>
    %cst_336 = arith.constant dense<0.000000e+00> : vector<8x16xf32>
    %638 = tpu.matmul %611, %359, %cst_336 {dimension_numbers = #tpu.dot_dimension_numbers<[1], [0], [0], [1], [0, 0, 1, 1], [], []>} : vector<8x16xf32>, vector<16x16xf32>, vector<8x16xf32> -> vector<8x16xf32>
    %639 = vector.broadcast %360 : vector<1x16xf32> to vector<8x16xf32>
    %640 = arith.addf %638, %639 : vector<8x16xf32>
    %641 = arith.mulf %628, %640 : vector<8x16xf32>
    %642 = arith.addf %637, %641 : vector<8x16xf32>
    %643 = math.tanh %642 : vector<8x16xf32>
    %cst_337 = arith.constant 1.000000e+00 : f32
    %644 = vector.broadcast %cst_337 : f32 to vector<8x16xf32>
    %645 = arith.subf %644, %636 : vector<8x16xf32>
    %646 = arith.mulf %645, %643 : vector<8x16xf32>
    %647 = arith.mulf %636, %611 : vector<8x16xf32>
    %648 = arith.addf %646, %647 : vector<8x16xf32>
    %cst_338 = arith.constant 0.000000e+00 : f32
    %649 = vector.broadcast %cst_338 : f32 to vector<8x16xf32>
    %650 = arith.cmpf ogt, %648, %649 : vector<8x16xf32>
    %cst_339 = arith.constant 0.000000e+00 : f32
    %651 = vector.broadcast %cst_339 : f32 to vector<8x16xf32>
    %652 = arith.minimumf %648, %651 : vector<8x16xf32>
    %653 = math.exp %652 : vector<8x16xf32>
    %cst_340 = arith.constant 1.000000e+00 : f32
    %654 = vector.broadcast %cst_340 : f32 to vector<8x16xf32>
    %655 = arith.subf %653, %654 : vector<8x16xf32>
    %656 = arith.select %650, %648, %655 : vector<8x16xi1>, vector<8x16xf32>
    %c56_341 = arith.constant 56 : index
    %c0_342 = arith.constant 0 : index
    %657 = vector.load %arg9[%c56_341, %c0_342] : memref<64x16xf32, #tpu.memory_space<vmem>>, vector<8x16xf32>
    tpu.vector_store %arg9[%c56_341, %c0_342], %656 {strides = array<i32>} : memref<64x16xf32, #tpu.memory_space<vmem>>, vector<8x16xf32>,
    return
  }
}

</mosaic_0001>

<bundles_post_ra>
// kernel: _decoding_forward.1
= control target key start
LH: loop header
LB: loop body
LE: loop exit
PB: predicated region body
PF: predicated region fallthrough
CT: control target
= control target key end

     0   :  { %14 = vsyncpa [#allocation10], 0  ;;  %s6246_s30 = smov [#allocation9]   ;;  %s6987_s0 = inlined_call_operand.vmem [shape: f32[64,16], index: 0, kind: input, shape index: {}]   ;;  %s6988_s1 = inlined_call_operand.vmem [shape: f32[3,16,32], index: 1, kind: input, shape index: {}]   ;;  %s6989_s2 = inlined_call_operand.vmem [shape: f32[3,32,32], index: 2, kind: input, shape index: {}]   ;;  %s6990_s3 = inlined_call_operand.hbm [shape: f32[3,1,32], index: 3, kind: input, shape index: {}]   ;;  %s6991_s4 = inlined_call_operand.vmem [shape: f32[1,32], index: 4, kind: input, shape index: {}]   ;;  %s6992_s5 = inlined_call_operand.vmem [shape: f32[3,32,16], index: 5, kind: input, shape index: {}]   ;;  %s6993_s6 = inlined_call_operand.vmem [shape: f32[3,16,16], index: 6, kind: input, shape index: {}]   ;;  %s6994_s7 = inlined_call_operand.vmem [shape: f32[3,1,16], index: 7, kind: input, shape index: {}]   ;;  %s6995_s8 = inlined_call_operand.vmem [shape: f32[1,16], index: 8, kind: input, shape index: {}]   ;;  %s6996_s9 = inlined_call_operand.vmem [shape: f32[64,16], index: 9, kind: output, shape index: {}]  }
   0x1   :  { %s26_s10 = sshll.u32 %s6246_s30, 4  ;;  %s6222_s13 = scalar_lea.hbm %s6990_s3, 48  ;;  %s27_s10 = int_to_ptr.vmem [resolvable:$true] %s26_s10 }
   0x2   :  { %p6223_p0 = scmp.ne.s32.totalorder %s6990_s3, %s6222_s13  ;;  %p6226_p1 = scmp.lt.u32.totalorder %s6222_s13, %s6990_s3 }
   0x4   :  { %p6228_p2 = pnand %p6226_p1, %p6223_p0 }
   0x6   :  { %6231 = shalt.err (!%p6228_p2)
}
   0x7   :  { %s6232_s18 = scalar_lea.vmem %s27_s10, 48  ;;  %s6236_s19 = scalar_lea.vmem %s27_s10, 64 }
   0x8   :  { %p6233_p3 = scmp.ne.s32.totalorder %s27_s10, %s6232_s18  ;;  %p6237_p4 = scmp.lt.s32.totalorder %s27_s10, %s27_s10 }
   0x9   :  { %p6238_p5 = scmp.lt.s32.totalorder %s6236_s19, %s6232_s18 }
   0xb   :  { %p6239_p6 = por %p6238_p5, %p6237_p4 }
   0xd   :  { %p6240_p7 = pnand %p6239_p6, %p6233_p3 }
   0xf   :  { %6243 = shalt.err (!%p6240_p7)
}
  0x10   :  { %s6247_s20 = smov 16   ;;  %s6248_s21 = smov 1  }
  0x11   :  { %32 = dma.hbm_to_vmem [thread:$0]  %s6990_s3, 48, %s27_s10, [#allocation10], %s6247_s20, %s6247_s20, %s6248_s21  }
  0x12   :  { %6244 = dma.done.wait [#allocation10], 48  }
  0x13   :  { %6245 = vsyncadd [#allocation10], 4294967248  ;;  %vm63_vm0 = vcmask 130048   ;;  %v4811_v0 = vld [vmem:[%s6988_s1 + $0x10] sm:$0xff]  ;;  %v4812_v1 = vld [vmem:[%s6988_s1 + $0x18] sm:$0xff]  ;;  %v6249_v13 = vmov 0.0|0.0  }
  0x14   :  { %v46_v2 = vld [vmem:[%s6987_s0] sm:$0xff]  ;;  %v5776_v3 = vpack.c.bf16 %v4812_v1, %v4811_v0  ;;  %v55_v5 = vld [vmem:[%s6988_s1 + $0x8] sm:$0xff]  ;;  %v48_v11 = vld [vmem:[%s6987_s0 + $0x10] sm:$0xff]  ;;  %vm6250_vm1 = vmmov 0   ;;  %v6251_v28 = vmov 0.0   ;;  %vm193_vm2 = vcmask 261120  }
  0x15   :  { %5252 = vmatprep.mubr.msk.f32.mxu1 %vm63_vm0, %v46_v2  ;;  %v54_v4 = vld [vmem:[%s6988_s1] sm:$0xff]  ;;  %5236 = vmatprep.mubr.msk.f32.mxu0 %vm63_vm0, %v46_v2  ;;  %v451_v8 = vld [vmem:[%s6989_s2 + $0x8] sm:$0xff]  ;;  %v452_v14 = vld [vmem:[%s6989_s2 + $0x10] sm:$0xff] }
  0x16   :  { %v5772_v6 = vpack.c.bf16 %v55_v5, %v54_v4  ;;  %v450_v7 = vld [vmem:[%s6989_s2] sm:$0xff]  ;;  %5777 = vmatprep.subr.bf16.mxu1 %v5776_v3  ;;  %v47_v9 = vld [vmem:[%s6987_s0 + $0x8] sm:$0xff]  ;;  %v453_v15 = vld [vmem:[%s6989_s2 + $0x18] sm:$0xff] }
  0x17   :  { %5779 = vmatpush3.bf16.msra.mxu1 %v5776_v3  ;;  %v6340_v10 = vpack.c.bf16 %v451_v8, %v450_v7  ;;  %v4822_v12 = vld [vmem:[%s6988_s1 + $0x20] sm:$0xff]  ;;  %v4823_v16 = vld [vmem:[%s6988_s1 + $0x28] sm:$0xff]  ;;  %v49_v18 = vld [vmem:[%s6987_s0 + $0x18] sm:$0xff]  ;;  %v6364_v19 = vpack.c.bf16 %v453_v15, %v452_v14 }
  0x18   :  { %5773 = vmatprep.subr.bf16.mxu0 %v5772_v6  ;;  %5784 = vmatprep.subr.bf16.mxu1 %v6249_v13  ;;  %v5780_v17 = vpack.c.bf16 %v4823_v16, %v4822_v12  ;;  %v50_v20 = vld [vmem:[%s6987_s0 + $0x20] sm:$0xff]  ;;  %v51_v21 = vld [vmem:[%s6987_s0 + $0x28] sm:$0xff]  ;;  %v52_v22 = vld [vmem:[%s6987_s0 + $0x30] sm:$0xff] }
  0x19   :  { %5775 = vmatpush3.bf16.msra.mxu0 %v5772_v6  ;;  %v53_v23 = vld [vmem:[%s6987_s0 + $0x38] sm:$0xff]  ;;  %v4833_v24 = vld [vmem:[%s6989_s2 + $0x20] sm:$0xff]  ;;  %v4834_v25 = vld [vmem:[%s6989_s2 + $0x28] sm:$0xff] }
  0x1a   :  { %5253 = vmatmul.mubr.msk.f32.vlgmr.msra.gmra.mrb[0].mxu1 %vm63_vm0, %v47_v9  ;;  %5781 = vmatprep.subr.bf16.mxu0 %v5780_v17  ;;  %v4837_v26 = vld [vmem:[%s6989_s2 + $0x40] sm:$0xff]  ;;  %v4838_v27 = vld [vmem:[%s6989_s2 + $0x48] sm:$0xff]  ;;  %v6407_v29 = vpack.c.bf16 %v4834_v25, %v4833_v24  ;;  %v4835_v30 = vld [vmem:[%s6989_s2 + $0x30] sm:$0xff] }
  0x1b   :  { %5786 = vmatpush3.bf16.msra.mxu1 %v6340_v10  ;;  %5255 = vmatprep.mubr.msk.f32.mxu1 %vm63_vm0, %v48_v11  ;;  %v4836_v31 = vld [vmem:[%s6989_s2 + $0x38] sm:$0xff]  ;;  %v6417_v32 = vpack.c.bf16 %v4838_v27, %v4837_v26  ;;  %v4839_v33 = vld [vmem:[%s6989_s2 + $0x50] sm:$0xff]  ;;  %v4813_v37 = vld [vmem:[#allocation9 + $0x1] ss:$0 sm:$0xff] }
  0x1c   :  { %5237 = vmatmul.mubr.msk.f32.vlgmr.msra.gmra.mrb[0].mxu0 %vm63_vm0, %v47_v9  ;;  %5787 = vmatprep.subr.bf16.mxu1 %v6249_v13  ;;  %v4840_v34 = vld [vmem:[%s6989_s2 + $0x58] sm:$0xff]  ;;  %v6427_v35 = vpack.c.bf16 %v4836_v31, %v4835_v30  ;;  %v4802_v39 = vld [vmem:[#allocation9] ss:$0 sm:$0xff] }
  0x1d   :  { %5239 = vmatprep.mubr.msk.f32.mxu0 %vm63_vm0, %v48_v11  ;;  %5783 = vmatpush3.bf16.msra.mxu0 %v5780_v17  ;;  %v6435_v36 = vpack.c.bf16 %v4840_v34, %v4839_v33 }
  0x1e   :  { %5256 = vmatmul.mubr.msk.f32.gmra.mrb[2].mxu1 %vm63_vm0, %v49_v18  ;;  %5796 = vmatprep.subr.bf16.mxu0 %v6249_v13 }
  0x1f   :  { %5258 = vmatprep.mubr.msk.f32.mxu1 %vm63_vm0, %v50_v20  ;;  %5789 = vmatpush3.bf16.msra.mxu1 %v6364_v19 }
  0x20   :  { %5240 = vmatmul.mubr.msk.f32.gmra.mrb[2].mxu0 %vm63_vm0, %v49_v18  ;;  %5790 = vmatprep.subr.bf16.mxu1 %v6249_v13 }
  0x21   :  { %5242 = vmatprep.mubr.msk.f32.mxu0 %vm63_vm0, %v50_v20 }
  0x22   :  { %5259 = vmatmul.mubr.msk.f32.gmra.mrb[4].mxu1 %vm63_vm0, %v51_v21 }
  0x23   :  { %5261 = vmatprep.mubr.msk.f32.mxu1 %vm63_vm0, %v52_v22 }
  0x24   :  { %5243 = vmatmul.mubr.msk.f32.gmra.mrb[4].mxu0 %vm63_vm0, %v51_v21 }
  0x25   :  { %5245 = vmatprep.mubr.msk.f32.mxu0 %vm63_vm0, %v52_v22 }
  0x26   :  { %5262 = vmatmul.mubr.msk.f32.gmra.mrb[6].mxu1 %vm63_vm0, %v53_v23 }
  0x27   :  { %5288 = vmatprep.mubr.msk.f32.mxu1 %vm6250_vm1, %v6251_v28 }
  0x28   :  { %5246 = vmatmul.mubr.msk.f32.gmra.mrb[6].mxu0 %vm63_vm0, %v53_v23 }
  0x29   :  { %5268 = vmatprep.mubr.msk.f32.mxu0 %vm63_vm0, %v46_v2 }
  0x2a   :  { %5289 = vmatmul.mubr.f32.vlgmr.msra.gmra.mrb[8].mxu1 %v6251_v28 }
  0x2b   :  { %5792 = vmatpush3.bf16.msra.mxu1 %v6407_v29  ;;  %5299 = vmatprep.mubr.msk.f32.mxu1 %vm6250_vm1, %v6251_v28 }
  0x2c   :  { %5793 = vmatprep.subr.bf16.mxu1 %v6249_v13  ;;  %5269 = vmatmul.mubr.msk.f32.vlgmr.msra.gmra.mrb[8].mxu0 %vm63_vm0, %v47_v9  ;;  %v4824_v9 = vld [vmem:[#allocation9 + $0x2] ss:$0 sm:$0xff] }
  0x2d   :  { %5798 = vmatpush3.bf16.msra.mxu0 %v6417_v32  ;;  %5271 = vmatprep.mubr.msk.f32.mxu0 %vm63_vm0, %v48_v11 }
  0x2e   :  { %5799 = vmatprep.subr.bf16.mxu0 %v6249_v13 }
  0x2f   :  { %5795 = vmatpush3.bf16.msra.mxu1 %v6427_v35 }
  0x30   :  { %5272 = vmatmul.mubr.msk.f32.gmra.mrb[10].mxu0 %vm63_vm0, %v49_v18  ;;  %5802 = vmatprep.subr.bf16.mxu1 %v6249_v13 }
  0x31   :  { %5274 = vmatprep.mubr.msk.f32.mxu0 %vm63_vm0, %v50_v20  ;;  %5801 = vmatpush3.bf16.msra.mxu0 %v6435_v36 }
  0x32   :  { %5300 = vmatmul.mubr.f32.vlgmr.msra.gmra.mrb[10].mxu1 %v6251_v28  ;;  %5808 = vmatprep.subr.bf16.mxu0 %v6249_v13 }
  0x33   :  { %5804 = vmatpush3.bf16.msra.mxu1 %v6340_v10  ;;  %5321 = vmatprep.mubr.msk.f32.mxu1 %vm6250_vm1, %v6251_v28 }
  0x34   :  { %5275 = vmatmul.mubr.msk.f32.gmra.mrb[12].mxu0 %vm63_vm0, %v51_v21  ;;  %5805 = vmatprep.subr.bf16.mxu1 %v6249_v13 }
  0x35   :  { %5277 = vmatprep.mubr.msk.f32.mxu0 %vm63_vm0, %v52_v22 }
  0x37   :  { %5807 = vmatpush3.bf16.msra.mxu1 %v6364_v19 }
  0x38   :  { %5278 = vmatmul.mubr.msk.f32.gmra.mrb[14].mxu0 %vm63_vm0, %v53_v23  ;;  %5814 = vmatprep.subr.bf16.mxu1 %v6249_v13 }
  0x39   :  { %5310 = vmatprep.mubr.msk.f32.mxu0 %vm6250_vm1, %v6251_v28 }
  0x3c   :  { %5311 = vmatmul.mubr.f32.vlgmr.msra.gmra.mrb[16].mxu0 %v6251_v28 }
  0x3d   :  { %5810 = vmatpush3.bf16.msra.mxu0 %v6407_v29  ;;  %5332 = vmatprep.mubr.msk.f32.mxu0 %vm6250_vm1, %v6251_v28 }
  0x3e   :  { %5811 = vmatprep.subr.bf16.mxu0 %v6249_v13 }
  0x41   :  { %5813 = vmatpush3.bf16.msra.mxu0 %v6427_v35 }
  0x42   :  { %5820 = vmatprep.subr.bf16.mxu0 %v6249_v13 }
  0xed   :  { %v5254_v38 = vpop.f32.mrb[0].mxu1 }
  0xee   :  { %v285_v40 = vadd.f32 %v5254_v38, %v4813_v37  ;;  %v279_v41 = vpop.f32.mrb[1].mxu1 }
  0xef   :  { %v280_v42 = vadd.f32 %v4813_v37, %v279_v41  ;;  %v5238_v43 = vpop.f32.mrb[0].mxu0 }
  0xf0   :  { %319 = vst.msk [vmem:[#allocation3 + $0x8] sm:$0xff] %vm193_vm2, %v285_v40  ;;  %v160_v44 = vadd.f32 %v5238_v43, %v4802_v39  ;;  %v154_v45 = vpop.f32.mrb[1].mxu0 }
  0xf1   :  { %318 = vst.msk [vmem:[#allocation3] sm:$0xff] %vm193_vm2, %v280_v42  ;;  %v5257_v46 = vpop.f32.mrb[2].mxu1  ;;  %v155_v47 = vadd.f32 %v4802_v39, %v154_v45 }
  0xf2   :  { %v295_v48 = vadd.f32 %v5257_v46, %v4813_v37  ;;  %195 = vst.msk [vmem:[#allocation2 + $0x8] sm:$0xff] %vm193_vm2, %v160_v44  ;;  %v289_v49 = vpop.f32.mrb[3].mxu1  ;;  %v6490_v46 = vld [vmem:[%s6991_s4] ss:$0 sm:$0xff] }
  0xf3   :  { %v290_v50 = vadd.f32 %v4813_v37, %v289_v49  ;;  %194 = vst.msk [vmem:[#allocation2] sm:$0xff] %vm193_vm2, %v155_v47  ;;  %v5241_v51 = vpop.f32.mrb[2].mxu0 }
  0xf4   :  { %321 = vst.msk [vmem:[#allocation3 + $0x18] sm:$0xff] %vm193_vm2, %v295_v48  ;;  %v170_v52 = vadd.f32 %v5241_v51, %v4802_v39  ;;  %v164_v53 = vpop.f32.mrb[3].mxu0 }
  0xf5   :  { %320 = vst.msk [vmem:[#allocation3 + $0x10] sm:$0xff] %vm193_vm2, %v290_v50  ;;  %v5260_v54 = vpop.f32.mrb[4].mxu1  ;;  %v165_v55 = vadd.f32 %v4802_v39, %v164_v53 }
  0xf6   :  { %v305_v56 = vadd.f32 %v5260_v54, %v4813_v37  ;;  %v299_v57 = vpop.f32.mrb[5].mxu1  ;;  %197 = vst.msk [vmem:[#allocation2 + $0x18] sm:$0xff] %vm193_vm2, %v170_v52 }
  0xf7   :  { %v300_v58 = vadd.f32 %v4813_v37, %v299_v57  ;;  %196 = vst.msk [vmem:[#allocation2 + $0x10] sm:$0xff] %vm193_vm2, %v165_v55  ;;  %v5244_v59 = vpop.f32.mrb[4].mxu0 }
  0xf8   :  { %323 = vst.msk [vmem:[#allocation3 + $0x28] sm:$0xff] %vm193_vm2, %v305_v56  ;;  %v180_v60 = vadd.f32 %v5244_v59, %v4802_v39  ;;  %v174_v61 = vpop.f32.mrb[5].mxu0  ;;  %v546_v23 = vld [vmem:[#allocation3] sm:$0xff] }
  0xf9   :  { %322 = vst.msk [vmem:[#allocation3 + $0x20] sm:$0xff] %vm193_vm2, %v300_v58  ;;  %v5263_v62 = vpop.f32.mrb[6].mxu1  ;;  %v175_v63 = vadd.f32 %v4802_v39, %v174_v61 }
  0xfa   :  { %v315_v0 = vadd.f32 %v5263_v62, %v4813_v37  ;;  %v309_v1 = vpop.f32.mrb[7].mxu1  ;;  %199 = vst.msk [vmem:[#allocation2 + $0x28] sm:$0xff] %vm193_vm2, %v180_v60  ;;  %v465_v3 = vld [vmem:[#allocation2] sm:$0xff] }
  0xfb   :  { %v310_v2 = vadd.f32 %v4813_v37, %v309_v1  ;;  %198 = vst.msk [vmem:[#allocation2 + $0x20] sm:$0xff] %vm193_vm2, %v175_v63  ;;  %v5247_v4 = vpop.f32.mrb[6].mxu0  ;;  %v715_v1 = vld [vmem:[#allocation2 + $0x8] sm:$0xff] }
  0xfc   :  { %325 = vst.msk [vmem:[#allocation3 + $0x38] sm:$0xff] %vm193_vm2, %v315_v0  ;;  %v190_v5 = vadd.f32 %v5247_v4, %v4802_v39  ;;  %v184_v6 = vpop.f32.mrb[7].mxu0 }
  0xfd   :  { %324 = vst.msk [vmem:[#allocation3 + $0x30] sm:$0xff] %vm193_vm2, %v310_v2  ;;  %v535_v7 = vpop.f32.mrb[8].mxu1  ;;  %v185_v8 = vadd.f32 %v4802_v39, %v184_v6 }
  0xfe   :  { %v539_v11 = vadd.f32 %v535_v7, %v465_v3  ;;  %v5290_v12 = vpop.f32.mrb[9].mxu1  ;;  %201 = vst.msk [vmem:[#allocation2 + $0x38] sm:$0xff] %vm193_vm2, %v190_v5 }
  0xff   :  { %200 = vst.msk [vmem:[#allocation2 + $0x30] sm:$0xff] %vm193_vm2, %v185_v8  ;;  %v5270_v14 = vpop.f32.mrb[8].mxu0  ;;  %v796_v8 = vld [vmem:[#allocation3 + $0x8] sm:$0xff] }
 0x100   :  { %v4841_v15 = vmul.f32 -1.442695, %v539_v11  ;;  %v409_v16 = vadd.f32 %v5270_v14, %v4824_v9  ;;  %v403_v17 = vpop.f32.mrb[9].mxu0 }
 0x101   :  { %v404_v18 = vadd.f32 %v4824_v9, %v403_v17 }
 0x102   :  { %6030 = vpow2.f32 %v4841_v15  ;;  %443 = vst.msk [vmem:[#allocation4 + $0x8] sm:$0xff] %vm193_vm2, %v409_v16 }
 0x103   :  { %442 = vst.msk [vmem:[#allocation4] sm:$0xff] %vm193_vm2, %v404_v18  ;;  %v5273_v20 = vpop.f32.mrb[10].mxu0 }
 0x104   :  { %v419_v21 = vadd.f32 %v5273_v20, %v4824_v9  ;;  %v413_v22 = vpop.f32.mrb[11].mxu0 }
 0x105   :  { %v613_v24 = vpop.f32.mrb[10].mxu1  ;;  %v414_v25 = vadd.f32 %v4824_v9, %v413_v22 }
 0x106   :  { %v617_v26 = vadd.f32 %v613_v24, %v546_v23  ;;  %445 = vst.msk [vmem:[#allocation4 + $0x18] sm:$0xff] %vm193_vm2, %v419_v21  ;;  %v5301_v27 = vpop.f32.mrb[11].mxu1 }
 0x107   :  { %444 = vst.msk [vmem:[#allocation4 + $0x10] sm:$0xff] %vm193_vm2, %v414_v25  ;;  %v5276_v30 = vpop.f32.mrb[12].mxu0 }
 0x108   :  { %v4842_v31 = vmul.f32 -1.442695, %v617_v26  ;;  %v429_v33 = vadd.f32 %v5276_v30, %v4824_v9  ;;  %v423_v34 = vpop.f32.mrb[13].mxu0 }
 0x109   :  { %v424_v37 = vadd.f32 %v4824_v9, %v423_v34  ;;  %v874_v23 = vld [vmem:[#allocation4 + $0x8] sm:$0xff] }
 0x10a   :  { %6032 = vpow2.f32 %v4842_v31  ;;  %447 = vst.msk [vmem:[#allocation4 + $0x28] sm:$0xff] %vm193_vm2, %v429_v33  ;;  %v624_v52 = vld [vmem:[#allocation4] sm:$0xff] }
 0x10b   :  { %446 = vst.msk [vmem:[#allocation4 + $0x20] sm:$0xff] %vm193_vm2, %v424_v37  ;;  %v5279_v38 = vpop.f32.mrb[14].mxu0 }
 0x10c   :  { %v6031_v39 = vpop.eup %6030  ;;  %v439_v40 = vadd.f32 %v5279_v38, %v4824_v9  ;;  %v433_v41 = vpop.f32.mrb[15].mxu0 }
 0x10d   :  { %v543_v42 = vadd.f32 1.0, %v6031_v39  ;;  %v434_v43 = vadd.f32 %v4824_v9, %v433_v41  ;;  %v959_v41 = vld [vmem:[#allocation2 + $0x10] sm:$0xff] }
 0x10e   :  { %449 = vst.msk [vmem:[#allocation4 + $0x38] sm:$0xff] %vm193_vm2, %v439_v40 }
 0x10f   :  { %6034 = vrcp.f32 %v543_v42  ;;  %448 = vst.msk [vmem:[#allocation4 + $0x30] sm:$0xff] %vm193_vm2, %v434_v43  ;;  %v697_v44 = vpop.f32.mrb[16].mxu0 }
 0x110   :  { %v5312_v45 = vpop.f32.mrb[17].mxu0  ;;  %v698_v49 = vadd.f32 %v6490_v46, %v697_v44 }
 0x114   :  { %v6033_v47 = vpop.eup %6032 }
 0x115   :  { %v621_v48 = vadd.f32 1.0, %v6033_v47 }
 0x117   :  { %6036 = vrcp.f32 %v621_v48 }
 0x119   :  { %v6035_v50 = vpop.eup %6034 }
 0x11a   :  { %v701_v51 = vmul.f32 %v6035_v50, %v698_v49  ;;  %v1040_v49 = vld [vmem:[#allocation3 + $0x10] sm:$0xff] }
 0x11c   :  { %v702_v53 = vadd.f32 %v701_v51, %v624_v52 }
 0x11e   :  { %6038 = vtanh.f32 %v702_v53 }
 0x121   :  { %v6037_v54 = vpop.eup %6036 }
 0x122   :  { %v704_v55 = vsub.f32 1.0, %v6037_v54  ;;  %v706_v57 = vmul.f32 0.0, %v6037_v54 }
 0x128   :  { %v6039_v56 = vpop.eup %6038 }
 0x129   :  { %v705_v58 = vmul.f32 %v6039_v56, %v704_v55 }
 0x12b   :  { %v707_v59 = vadd.f32 %v706_v57, %v705_v58 }
 0x12d   :  { %v709_v60 = vmin.f32 %v707_v59, 0.0  ;;  %5322 = vmatmul.mubr.msk.f32.vlgmr.msra.gmra.mrb[12].mxu1 %vm193_vm2, %v707_v59  ;;  %5333 = vmatmul.mubr.msk.f32.vlgmr.msra.gmra.mrb[18].mxu0 %vm193_vm2, %v707_v59  ;;  %vm708_vm3 = vcmp.gt.f32.partialorder %v707_v59, 0.0 }
 0x12e   :  { %5816 = vmatpush3.bf16.msra.mxu1 %v6417_v32  ;;  %5343 = vmatprep.mubr.msk.f32.mxu1 %vm6250_vm1, %v6251_v28 }
 0x12f   :  { %v710_v61 = vmul.f32 1.442695, %v709_v60  ;;  %5817 = vmatprep.subr.bf16.mxu1 %v6249_v13  ;;  %5822 = vmatpush3.bf16.msra.mxu0 %v6340_v10 }
 0x130   :  { %5823 = vmatprep.subr.bf16.mxu0 %v6249_v13  ;;  %5354 = vmatprep.mubr.msk.f32.mxu0 %vm6250_vm1, %v6251_v28 }
 0x131   :  { %6040 = vpow2.f32 %v710_v61  ;;  %v1118_v61 = vld [vmem:[#allocation4 + $0x10] sm:$0xff] }
 0x132   :  { %5819 = vmatpush3.bf16.msra.mxu1 %v6435_v36 }
 0x133   :  { %5826 = vmatprep.subr.bf16.mxu1 %v6249_v13  ;;  %5825 = vmatpush3.bf16.msra.mxu0 %v6364_v19 }
 0x134   :  { %5832 = vmatprep.subr.bf16.mxu0 %v6249_v13 }
 0x135   :  { %5344 = vmatmul.mubr.msk.f32.vlgmr.msra.gmra.mrb[14].mxu1 %vm193_vm2, %v707_v59 }
 0x136   :  { %5828 = vmatpush3.bf16.msra.mxu1 %v6407_v29  ;;  %5365 = vmatprep.mubr.msk.f32.mxu1 %vm6250_vm1, %v6251_v28 }
 0x137   :  { %5829 = vmatprep.subr.bf16.mxu1 %v6249_v13 }
 0x13a   :  { %5831 = vmatpush3.bf16.msra.mxu1 %v6427_v35 }
 0x13b   :  { %v6041_v62 = vpop.eup %6040  ;;  %5838 = vmatprep.subr.bf16.mxu1 %v6249_v13 }
 0x13c   :  { %v4844_v63 = vadd.f32 -1.0, %v6041_v62 }
 0x13e   :  { %v713_v0 = vsel %vm708_vm3, %v707_v59, %v4844_v63 }
 0x13f   :  { %714 = vst.msk [vmem:[#allocation5] sm:$0xff] %vm193_vm2, %v713_v0 }
 0x200   :  { %v785_v2 = vpop.f32.mrb[12].mxu1  ;;  %v863_v3 = vpop.f32.mrb[18].mxu0 }
 0x201   :  { %v789_v4 = vadd.f32 %v785_v2, %v715_v1  ;;  %v5323_v5 = vpop.f32.mrb[13].mxu1  ;;  %v5334_v6 = vpop.f32.mrb[19].mxu0  ;;  %v867_v9 = vadd.f32 %v863_v3, %v796_v8 }
 0x203   :  { %v4846_v7 = vmul.f32 -1.442695, %v789_v4  ;;  %v4848_v11 = vmul.f32 -1.442695, %v867_v9 }
 0x205   :  { %6042 = vpow2.f32 %v4846_v7 }
 0x206   :  { %6044 = vpow2.f32 %v4848_v11  ;;  %v1203_v11 = vld [vmem:[#allocation2 + $0x18] sm:$0xff] }
 0x208   :  { %v941_v12 = vpop.f32.mrb[14].mxu1 }
 0x209   :  { %v5345_v14 = vpop.f32.mrb[15].mxu1  ;;  %v942_v20 = vadd.f32 %v6490_v46, %v941_v12 }
 0x20f   :  { %v6043_v15 = vpop.eup %6042 }
 0x210   :  { %v793_v16 = vadd.f32 1.0, %v6043_v15  ;;  %v6045_v17 = vpop.eup %6044 }
 0x211   :  { %v871_v18 = vadd.f32 1.0, %v6045_v17 }
 0x212   :  { %6046 = vrcp.f32 %v793_v16 }
 0x213   :  { %6048 = vrcp.f32 %v871_v18 }
 0x21c   :  { %v6047_v21 = vpop.eup %6046 }
 0x21d   :  { %v945_v22 = vmul.f32 %v6047_v21, %v942_v20  ;;  %v6049_v25 = vpop.eup %6048  ;;  %v1284_v20 = vld [vmem:[#allocation3 + $0x18] sm:$0xff] }
 0x21e   :  { %v948_v26 = vsub.f32 1.0, %v6049_v25  ;;  %v950_v30 = vmul.f32 %v6049_v25, %v707_v59 }
 0x21f   :  { %v946_v24 = vadd.f32 %v945_v22, %v874_v23 }
 0x221   :  { %6050 = vtanh.f32 %v946_v24 }
 0x22b   :  { %v6051_v27 = vpop.eup %6050 }
 0x22c   :  { %v949_v31 = vmul.f32 %v6051_v27, %v948_v26 }
 0x22e   :  { %v951_v33 = vadd.f32 %v950_v30, %v949_v31 }
 0x230   :  { %v953_v34 = vmin.f32 %v951_v33, 0.0  ;;  %5355 = vmatmul.mubr.msk.f32.vlgmr.msra.gmra.mrb[20].mxu0 %vm193_vm2, %v951_v33  ;;  %5366 = vmatmul.mubr.msk.f32.vlgmr.msra.gmra.mrb[16].mxu1 %vm193_vm2, %v951_v33  ;;  %vm952_vm4 = vcmp.gt.f32.partialorder %v951_v33, 0.0 }
 0x231   :  { %5834 = vmatpush3.bf16.msra.mxu0 %v6417_v32  ;;  %5376 = vmatprep.mubr.msk.f32.mxu0 %vm6250_vm1, %v6251_v28 }
 0x232   :  { %v954_v37 = vmul.f32 1.442695, %v953_v34  ;;  %5835 = vmatprep.subr.bf16.mxu0 %v6249_v13  ;;  %5840 = vmatpush3.bf16.msra.mxu1 %v6340_v10 }
 0x233   :  { %5841 = vmatprep.subr.bf16.mxu1 %v6249_v13  ;;  %5387 = vmatprep.mubr.msk.f32.mxu1 %vm6250_vm1, %v6251_v28 }
 0x234   :  { %6052 = vpow2.f32 %v954_v37  ;;  %v1362_v37 = vld [vmem:[#allocation4 + $0x18] sm:$0xff] }
 0x235   :  { %5837 = vmatpush3.bf16.msra.mxu0 %v6435_v36 }
 0x236   :  { %5844 = vmatprep.subr.bf16.mxu0 %v6249_v13  ;;  %5843 = vmatpush3.bf16.msra.mxu1 %v6364_v19 }
 0x237   :  { %5850 = vmatprep.subr.bf16.mxu1 %v6249_v13 }
 0x238   :  { %5377 = vmatmul.mubr.msk.f32.vlgmr.msra.gmra.mrb[22].mxu0 %vm193_vm2, %v951_v33 }
 0x239   :  { %5846 = vmatpush3.bf16.msra.mxu0 %v6407_v29  ;;  %5398 = vmatprep.mubr.msk.f32.mxu0 %vm6250_vm1, %v6251_v28 }
 0x23a   :  { %5847 = vmatprep.subr.bf16.mxu0 %v6249_v13 }
 0x23d   :  { %5849 = vmatpush3.bf16.msra.mxu0 %v6427_v35 }
 0x23e   :  { %v6053_v38 = vpop.eup %6052  ;;  %5856 = vmatprep.subr.bf16.mxu0 %v6249_v13 }
 0x23f   :  { %v4850_v39 = vadd.f32 -1.0, %v6053_v38 }
 0x241   :  { %v957_v40 = vsel %vm952_vm4, %v951_v33, %v4850_v39 }
 0x242   :  { %958 = vst.msk [vmem:[#allocation5 + $0x8] sm:$0xff] %vm193_vm2, %v957_v40 }
 0x303   :  { %v1029_v42 = vpop.f32.mrb[20].mxu0  ;;  %v1107_v43 = vpop.f32.mrb[16].mxu1 }
 0x304   :  { %v1033_v44 = vadd.f32 %v1029_v42, %v959_v41  ;;  %v5356_v45 = vpop.f32.mrb[21].mxu0  ;;  %v5367_v47 = vpop.f32.mrb[17].mxu1  ;;  %v1111_v50 = vadd.f32 %v1107_v43, %v1040_v49 }
 0x306   :  { %v4852_v48 = vmul.f32 -1.442695, %v1033_v44  ;;  %v4854_v51 = vmul.f32 -1.442695, %v1111_v50 }
 0x308   :  { %6054 = vpow2.f32 %v4852_v48 }
 0x309   :  { %6056 = vpow2.f32 %v4854_v51  ;;  %v1447_v51 = vld [vmem:[#allocation2 + $0x20] sm:$0xff] }
 0x30b   :  { %v1185_v52 = vpop.f32.mrb[22].mxu0 }
 0x30c   :  { %v5378_v53 = vpop.f32.mrb[23].mxu0  ;;  %v1186_v58 = vadd.f32 %v6490_v46, %v1185_v52 }
 0x312   :  { %v6055_v54 = vpop.eup %6054 }
 0x313   :  { %v1037_v55 = vadd.f32 1.0, %v6055_v54  ;;  %v6057_v56 = vpop.eup %6056 }
 0x314   :  { %v1115_v57 = vadd.f32 1.0, %v6057_v56 }
 0x315   :  { %6058 = vrcp.f32 %v1037_v55 }
 0x316   :  { %6060 = vrcp.f32 %v1115_v57 }
 0x31f   :  { %v6059_v59 = vpop.eup %6058 }
 0x320   :  { %v1189_v60 = vmul.f32 %v6059_v59, %v1186_v58  ;;  %v6061_v63 = vpop.eup %6060  ;;  %v1528_v58 = vld [vmem:[#allocation3 + $0x20] sm:$0xff] }
 0x321   :  { %v1192_v0 = vsub.f32 1.0, %v6061_v63  ;;  %v1194_v2 = vmul.f32 %v6061_v63, %v951_v33 }
 0x322   :  { %v1190_v62 = vadd.f32 %v1189_v60, %v1118_v61 }
 0x324   :  { %6062 = vtanh.f32 %v1190_v62 }
 0x32e   :  { %v6063_v1 = vpop.eup %6062 }
 0x32f   :  { %v1193_v3 = vmul.f32 %v6063_v1, %v1192_v0 }
 0x331   :  { %v1195_v4 = vadd.f32 %v1194_v2, %v1193_v3 }
 0x333   :  { %v1197_v5 = vmin.f32 %v1195_v4, 0.0  ;;  %5388 = vmatmul.mubr.msk.f32.vlgmr.msra.gmra.mrb[18].mxu1 %vm193_vm2, %v1195_v4  ;;  %5399 = vmatmul.mubr.msk.f32.vlgmr.msra.gmra.mrb[24].mxu0 %vm193_vm2, %v1195_v4  ;;  %vm1196_vm5 = vcmp.gt.f32.partialorder %v1195_v4, 0.0 }
 0x334   :  { %5852 = vmatpush3.bf16.msra.mxu1 %v6417_v32  ;;  %5409 = vmatprep.mubr.msk.f32.mxu1 %vm6250_vm1, %v6251_v28 }
 0x335   :  { %v1198_v6 = vmul.f32 1.442695, %v1197_v5  ;;  %5853 = vmatprep.subr.bf16.mxu1 %v6249_v13  ;;  %5858 = vmatpush3.bf16.msra.mxu0 %v6340_v10 }
 0x336   :  { %5859 = vmatprep.subr.bf16.mxu0 %v6249_v13  ;;  %5420 = vmatprep.mubr.msk.f32.mxu0 %vm6250_vm1, %v6251_v28 }
 0x337   :  { %6064 = vpow2.f32 %v1198_v6  ;;  %v1606_v6 = vld [vmem:[#allocation4 + $0x20] sm:$0xff] }
 0x338   :  { %5855 = vmatpush3.bf16.msra.mxu1 %v6435_v36 }
 0x339   :  { %5862 = vmatprep.subr.bf16.mxu1 %v6249_v13  ;;  %5861 = vmatpush3.bf16.msra.mxu0 %v6364_v19 }
 0x33a   :  { %5868 = vmatprep.subr.bf16.mxu0 %v6249_v13 }
 0x33b   :  { %5410 = vmatmul.mubr.msk.f32.vlgmr.msra.gmra.mrb[20].mxu1 %vm193_vm2, %v1195_v4 }
 0x33c   :  { %5864 = vmatpush3.bf16.msra.mxu1 %v6407_v29  ;;  %5431 = vmatprep.mubr.msk.f32.mxu1 %vm6250_vm1, %v6251_v28 }
 0x33d   :  { %5865 = vmatprep.subr.bf16.mxu1 %v6249_v13 }
 0x340   :  { %5867 = vmatpush3.bf16.msra.mxu1 %v6427_v35 }
 0x341   :  { %v6065_v7 = vpop.eup %6064  ;;  %5874 = vmatprep.subr.bf16.mxu1 %v6249_v13 }
 0x342   :  { %v4856_v8 = vadd.f32 -1.0, %v6065_v7 }
 0x344   :  { %v1201_v9 = vsel %vm1196_vm5, %v1195_v4, %v4856_v8 }
 0x345   :  { %1202 = vst.msk [vmem:[#allocation5 + $0x10] sm:$0xff] %vm193_vm2, %v1201_v9 }
 0x406   :  { %v1273_v12 = vpop.f32.mrb[18].mxu1  ;;  %v1351_v14 = vpop.f32.mrb[24].mxu0 }
 0x407   :  { %v1277_v15 = vadd.f32 %v1273_v12, %v1203_v11  ;;  %v5389_v16 = vpop.f32.mrb[19].mxu1  ;;  %v5400_v17 = vpop.f32.mrb[25].mxu0  ;;  %v1355_v21 = vadd.f32 %v1351_v14, %v1284_v20 }
 0x409   :  { %v4858_v18 = vmul.f32 -1.442695, %v1277_v15  ;;  %v4860_v22 = vmul.f32 -1.442695, %v1355_v21 }
 0x40b   :  { %6066 = vpow2.f32 %v4858_v18 }
 0x40c   :  { %6068 = vpow2.f32 %v4860_v22  ;;  %v1691_v22 = vld [vmem:[#allocation2 + $0x28] sm:$0xff] }
 0x40e   :  { %v1429_v23 = vpop.f32.mrb[20].mxu1 }
 0x40f   :  { %v5411_v24 = vpop.f32.mrb[21].mxu1  ;;  %v1430_v31 = vadd.f32 %v6490_v46, %v1429_v23 }
 0x415   :  { %v6067_v25 = vpop.eup %6066 }
 0x416   :  { %v1281_v26 = vadd.f32 1.0, %v6067_v25  ;;  %v6069_v27 = vpop.eup %6068 }
 0x417   :  { %v1359_v30 = vadd.f32 1.0, %v6069_v27 }
 0x418   :  { %6070 = vrcp.f32 %v1281_v26 }
 0x419   :  { %6072 = vrcp.f32 %v1359_v30 }
 0x422   :  { %v6071_v33 = vpop.eup %6070 }
 0x423   :  { %v1433_v34 = vmul.f32 %v6071_v33, %v1430_v31  ;;  %v6073_v39 = vpop.eup %6072  ;;  %v1772_v31 = vld [vmem:[#allocation3 + $0x28] sm:$0xff] }
 0x424   :  { %v1436_v40 = vsub.f32 1.0, %v6073_v39  ;;  %v1438_v42 = vmul.f32 %v6073_v39, %v1195_v4 }
 0x425   :  { %v1434_v38 = vadd.f32 %v1433_v34, %v1362_v37 }
 0x427   :  { %6074 = vtanh.f32 %v1434_v38 }
 0x431   :  { %v6075_v41 = vpop.eup %6074 }
 0x432   :  { %v1437_v43 = vmul.f32 %v6075_v41, %v1436_v40 }
 0x434   :  { %v1439_v44 = vadd.f32 %v1438_v42, %v1437_v43 }
 0x436   :  { %v1441_v45 = vmin.f32 %v1439_v44, 0.0  ;;  %5421 = vmatmul.mubr.msk.f32.vlgmr.msra.gmra.mrb[26].mxu0 %vm193_vm2, %v1439_v44  ;;  %5432 = vmatmul.mubr.msk.f32.vlgmr.msra.gmra.mrb[22].mxu1 %vm193_vm2, %v1439_v44  ;;  %vm1440_vm6 = vcmp.gt.f32.partialorder %v1439_v44, 0.0 }
 0x437   :  { %5870 = vmatpush3.bf16.msra.mxu0 %v6417_v32  ;;  %5442 = vmatprep.mubr.msk.f32.mxu0 %vm6250_vm1, %v6251_v28 }
 0x438   :  { %v1442_v47 = vmul.f32 1.442695, %v1441_v45  ;;  %5871 = vmatprep.subr.bf16.mxu0 %v6249_v13  ;;  %5876 = vmatpush3.bf16.msra.mxu1 %v6340_v10 }
 0x439   :  { %5877 = vmatprep.subr.bf16.mxu1 %v6249_v13  ;;  %5453 = vmatprep.mubr.msk.f32.mxu1 %vm6250_vm1, %v6251_v28 }
 0x43a   :  { %6076 = vpow2.f32 %v1442_v47  ;;  %v1850_v47 = vld [vmem:[#allocation4 + $0x28] sm:$0xff] }
 0x43b   :  { %5873 = vmatpush3.bf16.msra.mxu0 %v6435_v36 }
 0x43c   :  { %5880 = vmatprep.subr.bf16.mxu0 %v6249_v13  ;;  %5879 = vmatpush3.bf16.msra.mxu1 %v6364_v19 }
 0x43d   :  { %5886 = vmatprep.subr.bf16.mxu1 %v6249_v13 }
 0x43e   :  { %5443 = vmatmul.mubr.msk.f32.vlgmr.msra.gmra.mrb[28].mxu0 %vm193_vm2, %v1439_v44 }
 0x43f   :  { %5882 = vmatpush3.bf16.msra.mxu0 %v6407_v29  ;;  %5464 = vmatprep.mubr.msk.f32.mxu0 %vm6250_vm1, %v6251_v28 }
 0x440   :  { %5883 = vmatprep.subr.bf16.mxu0 %v6249_v13 }
 0x443   :  { %5885 = vmatpush3.bf16.msra.mxu0 %v6427_v35 }
 0x444   :  { %v6077_v48 = vpop.eup %6076  ;;  %5892 = vmatprep.subr.bf16.mxu0 %v6249_v13 }
 0x445   :  { %v4862_v49 = vadd.f32 -1.0, %v6077_v48 }
 0x447   :  { %v1445_v50 = vsel %vm1440_vm6, %v1439_v44, %v4862_v49 }
 0x448   :  { %1446 = vst.msk [vmem:[#allocation5 + $0x18] sm:$0xff] %vm193_vm2, %v1445_v50 }
 0x509   :  { %v1517_v52 = vpop.f32.mrb[26].mxu0  ;;  %v1595_v53 = vpop.f32.mrb[22].mxu1 }
 0x50a   :  { %v1521_v54 = vadd.f32 %v1517_v52, %v1447_v51  ;;  %v5422_v55 = vpop.f32.mrb[27].mxu0  ;;  %v5433_v56 = vpop.f32.mrb[23].mxu1  ;;  %v1599_v59 = vadd.f32 %v1595_v53, %v1528_v58 }
 0x50c   :  { %v4864_v57 = vmul.f32 -1.442695, %v1521_v54  ;;  %v4866_v60 = vmul.f32 -1.442695, %v1599_v59 }
 0x50e   :  { %6078 = vpow2.f32 %v4864_v57 }
 0x50f   :  { %6080 = vpow2.f32 %v4866_v60  ;;  %v1935_v60 = vld [vmem:[#allocation2 + $0x30] sm:$0xff] }
 0x511   :  { %v1673_v61 = vpop.f32.mrb[28].mxu0 }
 0x512   :  { %v5444_v62 = vpop.f32.mrb[29].mxu0  ;;  %v1674_v3 = vadd.f32 %v6490_v46, %v1673_v61 }
 0x518   :  { %v6079_v63 = vpop.eup %6078 }
 0x519   :  { %v1525_v0 = vadd.f32 1.0, %v6079_v63  ;;  %v6081_v1 = vpop.eup %6080 }
 0x51a   :  { %v1603_v2 = vadd.f32 1.0, %v6081_v1 }
 0x51b   :  { %6082 = vrcp.f32 %v1525_v0 }
 0x51c   :  { %6084 = vrcp.f32 %v1603_v2  ;;  %v2016_v2 = vld [vmem:[#allocation3 + $0x30] sm:$0xff] }
 0x525   :  { %v6083_v4 = vpop.eup %6082 }
 0x526   :  { %v1677_v5 = vmul.f32 %v6083_v4, %v1674_v3  ;;  %v6085_v8 = vpop.eup %6084 }
 0x527   :  { %v1680_v9 = vsub.f32 1.0, %v6085_v8  ;;  %v1682_v12 = vmul.f32 %v6085_v8, %v1439_v44 }
 0x528   :  { %v1678_v7 = vadd.f32 %v1677_v5, %v1606_v6 }
 0x52a   :  { %6086 = vtanh.f32 %v1678_v7 }
 0x534   :  { %v6087_v11 = vpop.eup %6086 }
 0x535   :  { %v1681_v14 = vmul.f32 %v6087_v11, %v1680_v9 }
 0x537   :  { %v1683_v15 = vadd.f32 %v1682_v12, %v1681_v14 }
 0x539   :  { %v1685_v16 = vmin.f32 %v1683_v15, 0.0  ;;  %5454 = vmatmul.mubr.msk.f32.vlgmr.msra.gmra.mrb[24].mxu1 %vm193_vm2, %v1683_v15  ;;  %5465 = vmatmul.mubr.msk.f32.vlgmr.msra.gmra.mrb[30].mxu0 %vm193_vm2, %v1683_v15  ;;  %vm1684_vm7 = vcmp.gt.f32.partialorder %v1683_v15, 0.0 }
 0x53a   :  { %5888 = vmatpush3.bf16.msra.mxu1 %v6417_v32  ;;  %5475 = vmatprep.mubr.msk.f32.mxu1 %vm6250_vm1, %v6251_v28 }
 0x53b   :  { %v1686_v17 = vmul.f32 1.442695, %v1685_v16  ;;  %5889 = vmatprep.subr.bf16.mxu1 %v6249_v13  ;;  %5894 = vmatpush3.bf16.msra.mxu0 %v6340_v10  ;;  %v2094_v16 = vld [vmem:[#allocation4 + $0x30] sm:$0xff] }
 0x53c   :  { %5895 = vmatprep.subr.bf16.mxu0 %v6249_v13  ;;  %5486 = vmatprep.mubr.msk.f32.mxu0 %vm6250_vm1, %v6251_v28 }
 0x53d   :  { %6088 = vpow2.f32 %v1686_v17 }
 0x53e   :  { %5891 = vmatpush3.bf16.msra.mxu1 %v6435_v36 }
 0x53f   :  { %5898 = vmatprep.subr.bf16.mxu1 %v6249_v13  ;;  %5897 = vmatpush3.bf16.msra.mxu0 %v6364_v19 }
 0x540   :  { %5904 = vmatprep.subr.bf16.mxu0 %v6249_v13 }
 0x541   :  { %5476 = vmatmul.mubr.msk.f32.vlgmr.msra.gmra.mrb[26].mxu1 %vm193_vm2, %v1683_v15 }
 0x542   :  { %5900 = vmatpush3.bf16.msra.mxu1 %v6407_v29  ;;  %5497 = vmatprep.mubr.msk.f32.mxu1 %vm6250_vm1, %v6251_v28 }
 0x543   :  { %5901 = vmatprep.subr.bf16.mxu1 %v6249_v13 }
 0x546   :  { %5903 = vmatpush3.bf16.msra.mxu1 %v6427_v35 }
 0x547   :  { %v6089_v18 = vpop.eup %6088  ;;  %5910 = vmatprep.subr.bf16.mxu1 %v6249_v13 }
 0x548   :  { %v4868_v20 = vadd.f32 -1.0, %v6089_v18 }
 0x54a   :  { %v1689_v21 = vsel %vm1684_vm7, %v1683_v15, %v4868_v20 }
 0x54b   :  { %1690 = vst.msk [vmem:[#allocation5 + $0x20] sm:$0xff] %vm193_vm2, %v1689_v21 }
 0x60c   :  { %v1761_v23 = vpop.f32.mrb[24].mxu1  ;;  %v1839_v24 = vpop.f32.mrb[30].mxu0 }
 0x60d   :  { %v1765_v25 = vadd.f32 %v1761_v23, %v1691_v22  ;;  %v5455_v26 = vpop.f32.mrb[25].mxu1  ;;  %v5466_v27 = vpop.f32.mrb[31].mxu0  ;;  %v1843_v33 = vadd.f32 %v1839_v24, %v1772_v31  ;;  %v2433_v24 = vld [vmem:[%s6992_s5 + $0x10] sm:$0xff]  ;;  %v4897_v31 = vld [vmem:[%s6992_s5 + $0x28] sm:$0xff] }
 0x60f   :  { %v4870_v30 = vmul.f32 -1.442695, %v1765_v25  ;;  %v4872_v34 = vmul.f32 -1.442695, %v1843_v33  ;;  %v2434_v25 = vld [vmem:[%s6992_s5 + $0x18] sm:$0xff] }
 0x610   :  { %v5932_v27 = vpack.c.bf16 %v2434_v25, %v2433_v24 }
 0x611   :  { %6090 = vpow2.f32 %v4870_v30  ;;  %v4896_v30 = vld [vmem:[%s6992_s5 + $0x20] sm:$0xff] }
 0x612   :  { %6092 = vpow2.f32 %v4872_v34  ;;  %v6656_v34 = vld [vmem:[#allocation5] sm:$0xff] }
 0x614   :  { %v1917_v37 = vpop.f32.mrb[26].mxu1 }
 0x615   :  { %v5477_v38 = vpop.f32.mrb[27].mxu1  ;;  %v1918_v43 = vadd.f32 %v6490_v46, %v1917_v37 }
 0x616   :  { %v5936_v38 = vpack.c.bf16 %v4897_v31, %v4896_v30 }
 0x61b   :  { %v6091_v39 = vpop.eup %6090 }
 0x61c   :  { %v1769_v40 = vadd.f32 1.0, %v6091_v39  ;;  %v6093_v41 = vpop.eup %6092  ;;  %v4898_v39 = vld [vmem:[%s6992_s5 + $0x30] sm:$0xff] }
 0x61d   :  { %v1847_v42 = vadd.f32 1.0, %v6093_v41  ;;  %v6670_v41 = vld [vmem:[#allocation5 + $0x8] sm:$0xff] }
 0x61e   :  { %6094 = vrcp.f32 %v1769_v40 }
 0x61f   :  { %6096 = vrcp.f32 %v1847_v42  ;;  %v6676_v42 = vld [vmem:[#allocation5 + $0x10] sm:$0xff] }
 0x628   :  { %v6095_v44 = vpop.eup %6094 }
 0x629   :  { %v1921_v45 = vmul.f32 %v6095_v44, %v1918_v43  ;;  %v6097_v49 = vpop.eup %6096  ;;  %v6686_v43 = vld [vmem:[#allocation5 + $0x20] sm:$0xff] }
 0x62a   :  { %v1924_v50 = vsub.f32 1.0, %v6097_v49  ;;  %v1926_v52 = vmul.f32 %v6097_v49, %v1683_v15 }
 0x62b   :  { %v1922_v48 = vadd.f32 %v1921_v45, %v1850_v47 }
 0x62d   :  { %6098 = vtanh.f32 %v1922_v48 }
 0x637   :  { %v6099_v51 = vpop.eup %6098 }
 0x638   :  { %v1925_v53 = vmul.f32 %v6099_v51, %v1924_v50  ;;  %v2831_v50 = vld [vmem:[%s6993_s6] sm:$0xff]  ;;  %v2832_v51 = vld [vmem:[%s6993_s6 + $0x8] sm:$0xff] }
 0x63a   :  { %v1927_v54 = vadd.f32 %v1926_v52, %v1925_v53  ;;  %v4910_v52 = vld [vmem:[%s6992_s5 + $0x40] sm:$0xff]  ;;  %v6723_v53 = vpack.c.bf16 %v2832_v51, %v2831_v50  ;;  %v2338_v51 = vld [vmem:[#allocation4 + $0x38] sm:$0xff] }
 0x63c   :  { %v1929_v55 = vmin.f32 %v1927_v54, 0.0  ;;  %5487 = vmatmul.mubr.msk.f32.vlgmr.msra.gmra.mrb[32].mxu0 %vm193_vm2, %v1927_v54  ;;  %5498 = vmatmul.mubr.msk.f32.vlgmr.msra.gmra.mrb[28].mxu1 %vm193_vm2, %v1927_v54  ;;  %vm1928_vm8 = vcmp.gt.f32.partialorder %v1927_v54, 0.0 }
 0x63d   :  { %5906 = vmatpush3.bf16.msra.mxu0 %v6417_v32  ;;  %5508 = vmatprep.mubr.msk.f32.mxu0 %vm6250_vm1, %v6251_v28 }
 0x63e   :  { %v1930_v56 = vmul.f32 1.442695, %v1929_v55  ;;  %5907 = vmatprep.subr.bf16.mxu0 %v6249_v13  ;;  %5912 = vmatpush3.bf16.msra.mxu1 %v6340_v10 }
 0x63f   :  { %5913 = vmatprep.subr.bf16.mxu1 %v6249_v13  ;;  %5519 = vmatprep.mubr.msk.f32.mxu1 %vm6250_vm1, %v6251_v28 }
 0x640   :  { %6100 = vpow2.f32 %v1930_v56  ;;  %v4912_v56 = vld [vmem:[%s6992_s5 + $0x50] sm:$0xff] }
 0x641   :  { %5909 = vmatpush3.bf16.msra.mxu0 %v6435_v36 }
 0x642   :  { %5916 = vmatprep.subr.bf16.mxu0 %v6249_v13  ;;  %5915 = vmatpush3.bf16.msra.mxu1 %v6364_v19  ;;  %v2431_v19 = vld [vmem:[%s6992_s5] sm:$0xff] }
 0x643   :  { %5922 = vmatprep.subr.bf16.mxu1 %v6249_v13 }
 0x644   :  { %5509 = vmatmul.mubr.msk.f32.vlgmr.msra.gmra.mrb[34].mxu0 %vm193_vm2, %v1927_v54 }
 0x645   :  { %5918 = vmatpush3.bf16.msra.mxu0 %v6407_v29  ;;  %5530 = vmatprep.mubr.msk.f32.mxu0 %vm6250_vm1, %v6251_v28  ;;  %v2432_v29 = vld [vmem:[%s6992_s5 + $0x8] sm:$0xff] }
 0x646   :  { %5919 = vmatprep.subr.bf16.mxu0 %v6249_v13  ;;  %v5928_v59 = vpack.c.bf16 %v2432_v29, %v2431_v19 }
 0x649   :  { %5921 = vmatpush3.bf16.msra.mxu0 %v6427_v35 }
 0x64a   :  { %v6101_v10 = vpop.eup %6100  ;;  %5929 = vmatprep.subr.bf16.mxu0 %v5928_v59 }
 0x64b   :  { %v4874_v57 = vadd.f32 -1.0, %v6101_v10  ;;  %v4913_v10 = vld [vmem:[%s6992_s5 + $0x58] sm:$0xff] }
 0x64d   :  { %v1933_v58 = vsel %vm1928_vm8, %v1927_v54, %v4874_v57  ;;  %v5948_v57 = vpack.c.bf16 %v4913_v10, %v4912_v56 }
 0x64e   :  { %1934 = vst.msk [vmem:[#allocation5 + $0x28] sm:$0xff] %vm193_vm2, %v1933_v58  ;;  %v2179_v58 = vld [vmem:[#allocation2 + $0x38] sm:$0xff] }
 0x655   :  { %v6691_v45 = vld [vmem:[#allocation5 + $0x28] sm:$0xff] }
 0x70f   :  { %v2005_v61 = vpop.f32.mrb[32].mxu0  ;;  %v2083_v62 = vpop.f32.mrb[28].mxu1 }
 0x710   :  { %v2009_v35 = vadd.f32 %v2005_v61, %v1935_v60  ;;  %v5488_v63 = vpop.f32.mrb[33].mxu0  ;;  %v5499_v0 = vpop.f32.mrb[29].mxu1  ;;  %v2087_v3 = vadd.f32 %v2083_v62, %v2016_v2 }
 0x711   :  { %v6740_v0 = vld [vmem:[%s6994_s7] ss:$0 sm:$0xff] }
 0x712   :  { %v4876_v1 = vmul.f32 -1.442695, %v2009_v35  ;;  %v4878_v4 = vmul.f32 -1.442695, %v2087_v3  ;;  %v2260_v35 = vld [vmem:[#allocation3 + $0x38] sm:$0xff] }
 0x714   :  { %6102 = vpow2.f32 %v4876_v1 }
 0x715   :  { %6104 = vpow2.f32 %v4878_v4 }
 0x717   :  { %v2161_v5 = vpop.f32.mrb[34].mxu0 }
 0x718   :  { %v5510_v6 = vpop.f32.mrb[35].mxu0  ;;  %v2162_v12 = vadd.f32 %v6490_v46, %v2161_v5 }
 0x71e   :  { %v6103_v7 = vpop.eup %6102 }
 0x71f   :  { %v2013_v8 = vadd.f32 1.0, %v6103_v7  ;;  %v6105_v9 = vpop.eup %6104 }
 0x720   :  { %v2091_v11 = vadd.f32 1.0, %v6105_v9 }
 0x721   :  { %6106 = vrcp.f32 %v2013_v8 }
 0x722   :  { %6108 = vrcp.f32 %v2091_v11 }
 0x72b   :  { %v6107_v14 = vpop.eup %6106 }
 0x72c   :  { %v2165_v15 = vmul.f32 %v6107_v14, %v2162_v12  ;;  %v6109_v18 = vpop.eup %6108  ;;  %v6751_v14 = vld [vmem:[%s6994_s7 + $0x1] ss:$0 sm:$0xff] }
 0x72d   :  { %v2168_v20 = vsub.f32 1.0, %v6109_v18  ;;  %v2170_v22 = vmul.f32 %v6109_v18, %v1927_v54  ;;  %v4911_v54 = vld [vmem:[%s6992_s5 + $0x48] sm:$0xff] }
 0x72e   :  { %v2166_v17 = vadd.f32 %v2165_v15, %v2094_v16  ;;  %v5944_v55 = vpack.c.bf16 %v4911_v54, %v4910_v52 }
 0x730   :  { %6110 = vtanh.f32 %v2166_v17 }
 0x73a   :  { %v6111_v21 = vpop.eup %6110 }
 0x73b   :  { %v2169_v23 = vmul.f32 %v6111_v21, %v2168_v20 }
 0x73d   :  { %v6642_v26 = vadd.f32 %v2170_v22, %v2169_v23 }
 0x73f   :  { %v2173_v33 = vmin.f32 %v6642_v26, 0.0  ;;  %5520 = vmatmul.mubr.msk.f32.vlgmr.msra.gmra.mrb[30].mxu1 %vm193_vm2, %v6642_v26  ;;  %5531 = vmatmul.mubr.msk.f32.vlgmr.msra.gmra.mrb[36].mxu0 %vm193_vm2, %v6642_v26  ;;  %vm2172_vm9 = vcmp.gt.f32.partialorder %v6642_v26, 0.0 }
 0x740   :  { %5924 = vmatpush3.bf16.msra.mxu1 %v6417_v32  ;;  %5931 = vmatpush3.bf16.msra.mxu0 %v5928_v59  ;;  %v4899_v32 = vld [vmem:[%s6992_s5 + $0x38] sm:$0xff] }
 0x741   :  { %v2174_v37 = vmul.f32 1.442695, %v2173_v33  ;;  %5552 = vmatprep.mubr.msk.f32.mxu0 %vm193_vm2, %v6656_v34  ;;  %5925 = vmatprep.subr.bf16.mxu1 %v6249_v13  ;;  %v5940_v40 = vpack.c.bf16 %v4899_v32, %v4898_v39 }
 0x742   :  { %5933 = vmatprep.subr.bf16.mxu0 %v5932_v27  ;;  %5541 = vmatprep.mubr.msk.f32.mxu1 %vm6250_vm1, %v6251_v28 }
 0x743   :  { %6112 = vpow2.f32 %v2174_v37 }
 0x744   :  { %5927 = vmatpush3.bf16.msra.mxu1 %v6435_v36  ;;  %5935 = vmatpush3.bf16.msra.mxu0 %v5932_v27  ;;  %v6682_v36 = vld [vmem:[#allocation5 + $0x18] sm:$0xff] }
 0x745   :  { %5937 = vmatprep.subr.bf16.mxu1 %v5936_v38  ;;  %5945 = vmatprep.subr.bf16.mxu0 %v5944_v55 }
 0x747   :  { %5542 = vmatmul.mubr.msk.f32.vlgmr.msra.gmra.mrb[32].mxu1 %vm193_vm2, %v6642_v26  ;;  %5553 = vmatmul.mubr.msk.f32.vlgmr.msra.gmra.mrb[38].mxu0 %vm193_vm2, %v6670_v41 }
 0x748   :  { %5555 = vmatprep.mubr.msk.f32.mxu0 %vm193_vm2, %v6676_v42  ;;  %5939 = vmatpush3.bf16.msra.mxu1 %v5936_v38 }
 0x749   :  { %5572 = vmatprep.mubr.msk.f32.mxu1 %vm193_vm2, %v6656_v34  ;;  %5941 = vmatprep.subr.bf16.mxu1 %v5940_v40 }
 0x74a   :  { %5947 = vmatpush3.bf16.msra.mxu0 %v5944_v55 }
 0x74b   :  { %5556 = vmatmul.mubr.msk.f32.gmra.mrb[40].mxu0 %vm193_vm2, %v6682_v36  ;;  %5949 = vmatprep.subr.bf16.mxu0 %v5948_v57 }
 0x74c   :  { %5558 = vmatprep.mubr.msk.f32.mxu0 %vm193_vm2, %v6686_v43  ;;  %5943 = vmatpush3.bf16.msra.mxu1 %v5940_v40 }
 0x74d   :  { %v6113_v44 = vpop.eup %6112  ;;  %5952 = vmatprep.subr.bf16.mxu1 %v6249_v13 }
 0x74e   :  { %v4880_v47 = vadd.f32 -1.0, %v6113_v44  ;;  %5951 = vmatpush3.bf16.msra.mxu0 %v5948_v57 }
 0x74f   :  { %5559 = vmatmul.mubr.msk.f32.gmra.mrb[42].mxu0 %vm193_vm2, %v6691_v45  ;;  %5573 = vmatmul.mubr.msk.f32.vlgmr.msra.gmra.mrb[34].mxu1 %vm193_vm2, %v6670_v41 }
 0x750   :  { %5575 = vmatprep.mubr.msk.f32.mxu1 %vm193_vm2, %v6676_v42  ;;  %v2177_v48 = vsel %vm2172_vm9, %v6642_v26, %v4880_v47  ;;  %5954 = vmatpush3.bf16.msra.mxu1 %v6723_v53 }
 0x751   :  { %2178 = vst.msk [vmem:[#allocation5 + $0x30] sm:$0xff] %vm193_vm2, %v2177_v48  ;;  %5955 = vmatprep.subr.bf16.mxu1 %v6249_v13  ;;  %5964 = vmatprep.subr.bf16.mxu0 %v6249_v13 }
 0x753   :  { %5576 = vmatmul.mubr.msk.f32.gmra.mrb[36].mxu1 %vm193_vm2, %v6682_v36 }
 0x754   :  { %5578 = vmatprep.mubr.msk.f32.mxu1 %vm193_vm2, %v6686_v43 }
 0x757   :  { %5579 = vmatmul.mubr.msk.f32.gmra.mrb[38].mxu1 %vm193_vm2, %v6691_v45 }
 0x758   :  { %v6708_v49 = vld [vmem:[#allocation5 + $0x30] sm:$0xff] }
 0x759   :  { %5561 = vmatprep.mubr.msk.f32.mxu0 %vm193_vm2, %v6708_v49  ;;  %5581 = vmatprep.mubr.msk.f32.mxu1 %vm193_vm2, %v6708_v49 }
 0x812   :  { %v2249_v19 = vpop.f32.mrb[30].mxu1  ;;  %v2327_v29 = vpop.f32.mrb[36].mxu0 }
 0x813   :  { %v2253_v59 = vadd.f32 %v2249_v19, %v2179_v58  ;;  %v5521_v60 = vpop.f32.mrb[31].mxu1  ;;  %v5532_v61 = vpop.f32.mrb[37].mxu0  ;;  %v2331_v63 = vadd.f32 %v2327_v29, %v2260_v35 }
 0x814   :  { %v4924_v61 = vld [vmem:[%s6993_s6 + $0x10] sm:$0xff] }
 0x815   :  { %v4882_v62 = vmul.f32 -1.442695, %v2253_v59  ;;  %v4884_v1 = vmul.f32 -1.442695, %v2331_v63  ;;  %v4926_v63 = vld [vmem:[%s6993_s6 + $0x20] sm:$0xff] }
 0x817   :  { %6114 = vpow2.f32 %v4882_v62  ;;  %v4925_v62 = vld [vmem:[%s6993_s6 + $0x18] sm:$0xff] }
 0x818   :  { %6116 = vpow2.f32 %v4884_v1  ;;  %v6786_v35 = vpack.c.bf16 %v4925_v62, %v4924_v61  ;;  %v4927_v1 = vld [vmem:[%s6993_s6 + $0x28] sm:$0xff] }
 0x81a   :  { %v2405_v2 = vpop.f32.mrb[32].mxu1  ;;  %v5554_v3 = vpop.f32.mrb[38].mxu0 }
 0x81b   :  { %v2538_v4 = vadd.f32 %v5554_v3, %v6740_v0  ;;  %v5543_v5 = vpop.f32.mrb[33].mxu1  ;;  %v2532_v6 = vpop.f32.mrb[39].mxu0  ;;  %v2406_v47 = vadd.f32 %v6490_v46, %v2405_v2 }
 0x81c   :  { %v2533_v7 = vadd.f32 %v6740_v0, %v2532_v6 }
 0x81d   :  { %2572 = vst.msk [vmem:[#allocation6 + $0x8] sm:$0xff] %vm63_vm0, %v2538_v4  ;;  %v4915_v4 = vld [vmem:[%s6994_s7 + $0x2] ss:$0 sm:$0xff] }
 0x81e   :  { %2571 = vst.msk [vmem:[#allocation6] sm:$0xff] %vm63_vm0, %v2533_v7  ;;  %v5557_v8 = vpop.f32.mrb[40].mxu0 }
 0x81f   :  { %v2548_v9 = vadd.f32 %v5557_v8, %v6740_v0  ;;  %v2542_v11 = vpop.f32.mrb[41].mxu0 }
 0x820   :  { %v2543_v12 = vadd.f32 %v6740_v0, %v2542_v11 }
 0x821   :  { %v6115_v15 = vpop.eup %6114  ;;  %2574 = vst.msk [vmem:[#allocation6 + $0x18] sm:$0xff] %vm63_vm0, %v2548_v9 }
 0x822   :  { %v2257_v16 = vadd.f32 1.0, %v6115_v15  ;;  %2573 = vst.msk [vmem:[#allocation6 + $0x10] sm:$0xff] %vm63_vm0, %v2543_v12  ;;  %v5560_v17 = vpop.f32.mrb[42].mxu0  ;;  %v5574_v18 = vpop.f32.mrb[34].mxu1 }
 0x823   :  { %v2558_v20 = vadd.f32 %v5560_v17, %v6740_v0  ;;  %v2664_v21 = vadd.f32 %v5574_v18, %v6751_v14  ;;  %v2552_v22 = vpop.f32.mrb[43].mxu0  ;;  %v2658_v23 = vpop.f32.mrb[35].mxu1 }
 0x824   :  { %6118 = vrcp.f32 %v2257_v16  ;;  %v2553_v24 = vadd.f32 %v6740_v0, %v2552_v22  ;;  %v2659_v25 = vadd.f32 %v6751_v14, %v2658_v23  ;;  %v6117_v33 = vpop.eup %6116 }
 0x825   :  { %2576 = vst.msk [vmem:[#allocation6 + $0x28] sm:$0xff] %vm63_vm0, %v2558_v20  ;;  %2698 = vst.msk [vmem:[#allocation7 + $0x8] sm:$0xff] %vm63_vm0, %v2664_v21  ;;  %v2335_v39 = vadd.f32 1.0, %v6117_v33  ;;  %v2840_v6 = vld [vmem:[#allocation6] sm:$0xff] }
 0x826   :  { %2575 = vst.msk [vmem:[#allocation6 + $0x20] sm:$0xff] %vm63_vm0, %v2553_v24  ;;  %2697 = vst.msk [vmem:[#allocation7] sm:$0xff] %vm63_vm0, %v2659_v25  ;;  %v5577_v27 = vpop.f32.mrb[36].mxu1 }
 0x827   :  { %v2674_v30 = vadd.f32 %v5577_v27, %v6751_v14  ;;  %v2668_v31 = vpop.f32.mrb[37].mxu1  ;;  %6120 = vrcp.f32 %v2335_v39 }
 0x828   :  { %v2669_v37 = vadd.f32 %v6751_v14, %v2668_v31 }
 0x829   :  { %2700 = vst.msk [vmem:[#allocation7 + $0x18] sm:$0xff] %vm63_vm0, %v2674_v30 }
 0x82a   :  { %2699 = vst.msk [vmem:[#allocation7 + $0x10] sm:$0xff] %vm63_vm0, %v2669_v37  ;;  %v5580_v38 = vpop.f32.mrb[38].mxu1 }
 0x82b   :  { %v2684_v32 = vadd.f32 %v5580_v38, %v6751_v14  ;;  %v2678_v40 = vpop.f32.mrb[39].mxu1 }
 0x82c   :  { %v2679_v44 = vadd.f32 %v6751_v14, %v2678_v40 }
 0x82d   :  { %2702 = vst.msk [vmem:[#allocation7 + $0x28] sm:$0xff] %vm63_vm0, %v2684_v32  ;;  %v2920_v16 = vld [vmem:[#allocation7] sm:$0xff] }
 0x82e   :  { %v6119_v48 = vpop.eup %6118  ;;  %2701 = vst.msk [vmem:[#allocation7 + $0x20] sm:$0xff] %vm63_vm0, %v2679_v44 }
 0x82f   :  { %v2409_v50 = vmul.f32 %v6119_v48, %v2406_v47 }
 0x831   :  { %v2410_v52 = vadd.f32 %v2409_v50, %v2338_v51  ;;  %v6121_v54 = vpop.eup %6120  ;;  %v6850_v50 = vld [vmem:[%s6995_s8] ss:$0 sm:$0xff] }
 0x832   :  { %v2412_v55 = vsub.f32 1.0, %v6121_v54  ;;  %v2414_v10 = vmul.f32 %v6121_v54, %v6642_v26 }
 0x833   :  { %6122 = vtanh.f32 %v2410_v52 }
 0x83d   :  { %v6123_v56 = vpop.eup %6122 }
 0x83e   :  { %v2413_v57 = vmul.f32 %v6123_v56, %v2412_v55 }
 0x840   :  { %v2415_v58 = vadd.f32 %v2414_v10, %v2413_v57 }
 0x842   :  { %v2417_v19 = vmin.f32 %v2415_v58, 0.0  ;;  %vm2416_vm10 = vcmp.gt.f32.partialorder %v2415_v58, 0.0 }
 0x844   :  { %v2418_v29 = vmul.f32 1.442695, %v2417_v19 }
 0x846   :  { %6124 = vpow2.f32 %v2418_v29 }
 0x850   :  { %v6125_v46 = vpop.eup %6124 }
 0x851   :  { %v4886_v59 = vadd.f32 -1.0, %v6125_v46 }
 0x853   :  { %v2421_v60 = vsel %vm2416_vm10, %v2415_v58, %v4886_v59 }
 0x854   :  { %2422 = vst.msk [vmem:[#allocation5 + $0x38] sm:$0xff] %vm193_vm2, %v2421_v60 }
 0x85b   :  { %v2430_v26 = vld [vmem:[#allocation5 + $0x38] sm:$0xff] }
 0x85c   :  { %5562 = vmatmul.mubr.msk.f32.gmra.mrb[44].mxu0 %vm193_vm2, %v2430_v26  ;;  %5582 = vmatmul.mubr.msk.f32.gmra.mrb[40].mxu1 %vm193_vm2, %v2430_v26 }
 0x85d   :  { %5592 = vmatprep.mubr.msk.f32.mxu0 %vm193_vm2, %v6656_v34  ;;  %5608 = vmatprep.mubr.msk.f32.mxu1 %vm6250_vm1, %v6251_v28  ;;  %v6800_v34 = vpack.c.bf16 %v4927_v1, %v4926_v63  ;;  %v3089_v1 = vld [vmem:[#allocation6 + $0x8] sm:$0xff] }
 0x860   :  { %5593 = vmatmul.mubr.msk.f32.vlgmr.msra.gmra.mrb[46].mxu0 %vm193_vm2, %v6670_v41  ;;  %5609 = vmatmul.mubr.f32.vlgmr.msra.gmra.mrb[42].mxu1 %v6251_v28 }
 0x861   :  { %5595 = vmatprep.mubr.msk.f32.mxu0 %vm193_vm2, %v6676_v42  ;;  %5957 = vmatpush3.bf16.msra.mxu1 %v6786_v35 }
 0x862   :  { %5615 = vmatprep.mubr.msk.f32.mxu1 %vm6250_vm1, %v6251_v28  ;;  %5958 = vmatprep.subr.bf16.mxu1 %v6249_v13 }
 0x863   :  { %5966 = vmatpush3.bf16.msra.mxu0 %v6786_v35 }
 0x864   :  { %5596 = vmatmul.mubr.msk.f32.gmra.mrb[48].mxu0 %vm193_vm2, %v6682_v36  ;;  %5616 = vmatmul.mubr.f32.vlgmr.msra.gmra.mrb[44].mxu1 %v6251_v28 }
 0x865   :  { %5598 = vmatprep.mubr.msk.f32.mxu0 %vm193_vm2, %v6686_v43  ;;  %5960 = vmatpush3.bf16.msra.mxu1 %v6800_v34 }
 0x866   :  { %5622 = vmatprep.mubr.msk.f32.mxu1 %vm6250_vm1, %v6251_v28  ;;  %5961 = vmatprep.subr.bf16.mxu1 %v6249_v13 }
 0x867   :  { %5970 = vmatprep.subr.bf16.mxu0 %v6249_v13 }
 0x868   :  { %5599 = vmatmul.mubr.msk.f32.gmra.mrb[50].mxu0 %vm193_vm2, %v6691_v45  ;;  %5623 = vmatmul.mubr.f32.vlgmr.msra.gmra.mrb[46].mxu1 %v6251_v28 }
 0x869   :  { %5601 = vmatprep.mubr.msk.f32.mxu0 %vm193_vm2, %v6708_v49  ;;  %5963 = vmatpush3.bf16.msra.mxu1 %v6723_v53 }
 0x86a   :  { %5629 = vmatprep.mubr.msk.f32.mxu1 %vm6250_vm1, %v6251_v28  ;;  %5967 = vmatprep.subr.bf16.mxu1 %v6249_v13 }
 0x86c   :  { %5602 = vmatmul.mubr.msk.f32.gmra.mrb[52].mxu0 %vm193_vm2, %v2430_v26 }
 0x86d   :  { %5636 = vmatprep.mubr.msk.f32.mxu0 %vm6250_vm1, %v6251_v28 }
 0x92f   :  { %v5563_v41 = vpop.f32.mrb[44].mxu0  ;;  %v5583_v42 = vpop.f32.mrb[40].mxu1 }
 0x930   :  { %v2568_v36 = vadd.f32 %v5563_v41, %v6740_v0  ;;  %v2694_v43 = vadd.f32 %v5583_v42, %v6751_v14  ;;  %v2562_v45 = vpop.f32.mrb[45].mxu0  ;;  %v2688_v49 = vpop.f32.mrb[41].mxu1 }
 0x931   :  { %v2563_v2 = vadd.f32 %v6740_v0, %v2562_v45  ;;  %v2689_v3 = vadd.f32 %v6751_v14, %v2688_v49 }
 0x932   :  { %2578 = vst.msk [vmem:[#allocation6 + $0x38] sm:$0xff] %vm63_vm0, %v2568_v36  ;;  %2704 = vst.msk [vmem:[#allocation7 + $0x38] sm:$0xff] %vm63_vm0, %v2694_v43 }
 0x933   :  { %2577 = vst.msk [vmem:[#allocation6 + $0x30] sm:$0xff] %vm63_vm0, %v2563_v2  ;;  %2703 = vst.msk [vmem:[#allocation7 + $0x30] sm:$0xff] %vm63_vm0, %v2689_v3  ;;  %v5594_v5 = vpop.f32.mrb[46].mxu0  ;;  %v2909_v7 = vpop.f32.mrb[42].mxu1  ;;  %v3170_v2 = vld [vmem:[#allocation7 + $0x8] sm:$0xff] }
 0x934   :  { %v2790_v8 = vadd.f32 %v5594_v5, %v4915_v4  ;;  %v2913_v9 = vadd.f32 %v2909_v7, %v2840_v6  ;;  %v2784_v0 = vpop.f32.mrb[47].mxu0  ;;  %v5610_v11 = vpop.f32.mrb[43].mxu1 }
 0x935   :  { %v2785_v12 = vadd.f32 %v4915_v4, %v2784_v0 }
 0x936   :  { %2824 = vst.msk [vmem:[#allocation8 + $0x8] sm:$0xff] %vm63_vm0, %v2790_v8  ;;  %v4928_v14 = vmul.f32 -1.442695, %v2913_v9 }
 0x937   :  { %2823 = vst.msk [vmem:[#allocation8] sm:$0xff] %vm63_vm0, %v2785_v12  ;;  %v5597_v15 = vpop.f32.mrb[48].mxu0  ;;  %v2987_v17 = vpop.f32.mrb[44].mxu1 }
 0x938   :  { %6126 = vpow2.f32 %v4928_v14  ;;  %v2800_v18 = vadd.f32 %v5597_v15, %v4915_v4  ;;  %v2991_v20 = vadd.f32 %v2987_v17, %v2920_v16  ;;  %v2794_v21 = vpop.f32.mrb[49].mxu0  ;;  %v5617_v22 = vpop.f32.mrb[45].mxu1 }
 0x939   :  { %v2795_v23 = vadd.f32 %v4915_v4, %v2794_v21 }
 0x93a   :  { %2826 = vst.msk [vmem:[#allocation8 + $0x18] sm:$0xff] %vm63_vm0, %v2800_v18  ;;  %v4929_v24 = vmul.f32 -1.442695, %v2991_v20 }
 0x93b   :  { %2825 = vst.msk [vmem:[#allocation8 + $0x10] sm:$0xff] %vm63_vm0, %v2795_v23  ;;  %v5600_v25 = vpop.f32.mrb[50].mxu0  ;;  %v3071_v27 = vpop.f32.mrb[46].mxu1 }
 0x93c   :  { %v2810_v30 = vadd.f32 %v5600_v25, %v4915_v4  ;;  %v2804_v31 = vpop.f32.mrb[51].mxu0  ;;  %v5624_v33 = vpop.f32.mrb[47].mxu1  ;;  %6128 = vpow2.f32 %v4929_v24  ;;  %v3072_v52 = vadd.f32 %v6850_v50, %v3071_v27 }
 0x93d   :  { %v2805_v37 = vadd.f32 %v4915_v4, %v2804_v31  ;;  %v3248_v15 = vld [vmem:[#allocation8 + $0x8] sm:$0xff]  ;;  %v3333_v33 = vld [vmem:[#allocation6 + $0x10] sm:$0xff] }
 0x93e   :  { %2828 = vst.msk [vmem:[#allocation8 + $0x28] sm:$0xff] %vm63_vm0, %v2810_v30  ;;  %v2998_v56 = vld [vmem:[#allocation8] sm:$0xff] }
 0x93f   :  { %2827 = vst.msk [vmem:[#allocation8 + $0x20] sm:$0xff] %vm63_vm0, %v2805_v37  ;;  %v5603_v38 = vpop.f32.mrb[52].mxu0 }
 0x940   :  { %v2820_v39 = vadd.f32 %v5603_v38, %v4915_v4  ;;  %v2814_v32 = vpop.f32.mrb[53].mxu0 }
 0x941   :  { %v2815_v40 = vadd.f32 %v4915_v4, %v2814_v32 }
 0x942   :  { %v6127_v44 = vpop.eup %6126  ;;  %2830 = vst.msk [vmem:[#allocation8 + $0x38] sm:$0xff] %vm63_vm0, %v2820_v39 }
 0x943   :  { %v2917_v47 = vadd.f32 1.0, %v6127_v44  ;;  %2829 = vst.msk [vmem:[#allocation8 + $0x30] sm:$0xff] %vm63_vm0, %v2815_v40 }
 0x945   :  { %6130 = vrcp.f32 %v2917_v47  ;;  %v3414_v47 = vld [vmem:[#allocation7 + $0x10] sm:$0xff] }
 0x946   :  { %v6129_v48 = vpop.eup %6128 }
 0x947   :  { %v2995_v51 = vadd.f32 1.0, %v6129_v48 }
 0x949   :  { %6132 = vrcp.f32 %v2995_v51 }
 0x94f   :  { %v6131_v54 = vpop.eup %6130 }
 0x950   :  { %v3075_v55 = vmul.f32 %v6131_v54, %v3072_v52 }
 0x952   :  { %v3076_v10 = vadd.f32 %v3075_v55, %v2998_v56 }
 0x953   :  { %v6133_v57 = vpop.eup %6132 }
 0x954   :  { %6134 = vtanh.f32 %v3076_v10  ;;  %v3078_v58 = vsub.f32 1.0, %v6133_v57  ;;  %v3080_v29 = vmul.f32 0.0, %v6133_v57 }
 0x95e   :  { %v6135_v19 = vpop.eup %6134 }
 0x95f   :  { %v3079_v46 = vmul.f32 %v6135_v19, %v3078_v58 }
 0x961   :  { %v3081_v59 = vadd.f32 %v3080_v29, %v3079_v46  ;;  %v3492_v46 = vld [vmem:[#allocation8 + $0x10] sm:$0xff] }
 0x963   :  { %v3083_v60 = vmin.f32 %v3081_v59, 0.0  ;;  %5630 = vmatmul.mubr.msk.f32.vlgmr.msra.gmra.mrb[48].mxu1 %vm63_vm0, %v3081_v59  ;;  %5637 = vmatmul.mubr.msk.f32.vlgmr.msra.gmra.mrb[54].mxu0 %vm63_vm0, %v3081_v59  ;;  %vm3082_vm11 = vcmp.gt.f32.partialorder %v3081_v59, 0.0 }
 0x964   :  { %5969 = vmatpush3.bf16.msra.mxu1 %v6800_v34  ;;  %5643 = vmatprep.mubr.msk.f32.mxu1 %vm6250_vm1, %v6251_v28 }
 0x965   :  { %v3084_v61 = vmul.f32 1.442695, %v3083_v60  ;;  %5973 = vmatprep.subr.bf16.mxu1 %v6249_v13  ;;  %5972 = vmatpush3.bf16.msra.mxu0 %v6723_v53 }
 0x966   :  { %5650 = vmatprep.mubr.msk.f32.mxu0 %vm6250_vm1, %v6251_v28  ;;  %5976 = vmatprep.subr.bf16.mxu0 %v6249_v13 }
 0x967   :  { %6136 = vpow2.f32 %v3084_v61  ;;  %5644 = vmatmul.mubr.msk.f32.vlgmr.msra.gmra.mrb[50].mxu1 %vm63_vm0, %v3081_v59 }
 0x968   :  { %5975 = vmatpush3.bf16.msra.mxu1 %v6786_v35  ;;  %5657 = vmatprep.mubr.msk.f32.mxu1 %vm6250_vm1, %v6251_v28 }
 0x969   :  { %5979 = vmatprep.subr.bf16.mxu1 %v6249_v13 }
 0x971   :  { %v6137_v62 = vpop.eup %6136 }
 0x972   :  { %v4931_v26 = vadd.f32 -1.0, %v6137_v62 }
 0x974   :  { %v3087_v63 = vsel %vm3082_vm11, %v3081_v59, %v4931_v26 }
 0x975   :  { %3088 = vst.msk [vmem:[%s6996_s9] sm:$0xff] %vm63_vm0, %v3087_v63 }
 0xa36   :  { %v3159_v41 = vpop.f32.mrb[48].mxu1  ;;  %v3237_v42 = vpop.f32.mrb[54].mxu0 }
 0xa37   :  { %v3163_v36 = vadd.f32 %v3159_v41, %v3089_v1  ;;  %v5631_v43 = vpop.f32.mrb[49].mxu1  ;;  %v5638_v45 = vpop.f32.mrb[55].mxu0  ;;  %v3241_v3 = vadd.f32 %v3237_v42, %v3170_v2 }
 0xa39   :  { %v4933_v49 = vmul.f32 -1.442695, %v3163_v36  ;;  %v4935_v6 = vmul.f32 -1.442695, %v3241_v3 }
 0xa3a   :  { %v3315_v4 = vpop.f32.mrb[50].mxu1 }
 0xa3b   :  { %6138 = vpow2.f32 %v4933_v49  ;;  %v5645_v5 = vpop.f32.mrb[51].mxu1  ;;  %v3316_v11 = vadd.f32 %v6850_v50, %v3315_v4  ;;  %v3577_v49 = vld [vmem:[#allocation6 + $0x18] sm:$0xff] }
 0xa3c   :  { %6140 = vpow2.f32 %v4935_v6 }
 0xa45   :  { %v6139_v7 = vpop.eup %6138 }
 0xa46   :  { %v3167_v8 = vadd.f32 1.0, %v6139_v7  ;;  %v6141_v9 = vpop.eup %6140 }
 0xa47   :  { %v3245_v0 = vadd.f32 1.0, %v6141_v9 }
 0xa48   :  { %6142 = vrcp.f32 %v3167_v8  ;;  %v3658_v8 = vld [vmem:[#allocation7 + $0x18] sm:$0xff] }
 0xa49   :  { %6144 = vrcp.f32 %v3245_v0 }
 0xa52   :  { %v6143_v12 = vpop.eup %6142 }
 0xa53   :  { %v3319_v14 = vmul.f32 %v6143_v12, %v3316_v11  ;;  %v6145_v17 = vpop.eup %6144 }
 0xa54   :  { %v3322_v18 = vsub.f32 1.0, %v6145_v17  ;;  %v3324_v21 = vmul.f32 %v6145_v17, %v3081_v59 }
 0xa55   :  { %v3320_v16 = vadd.f32 %v3319_v14, %v3248_v15 }
 0xa57   :  { %6146 = vtanh.f32 %v3320_v16 }
 0xa61   :  { %v6147_v20 = vpop.eup %6146 }
 0xa62   :  { %v3323_v22 = vmul.f32 %v6147_v20, %v3322_v18 }
 0xa64   :  { %v3325_v23 = vadd.f32 %v3324_v21, %v3323_v22  ;;  %v3736_v22 = vld [vmem:[#allocation8 + $0x18] sm:$0xff] }
 0xa66   :  { %v3327_v24 = vmin.f32 %v3325_v23, 0.0  ;;  %5651 = vmatmul.mubr.msk.f32.vlgmr.msra.gmra.mrb[56].mxu0 %vm63_vm0, %v3325_v23  ;;  %5658 = vmatmul.mubr.msk.f32.vlgmr.msra.gmra.mrb[52].mxu1 %vm63_vm0, %v3325_v23  ;;  %vm3326_vm12 = vcmp.gt.f32.partialorder %v3325_v23, 0.0 }
 0xa67   :  { %5978 = vmatpush3.bf16.msra.mxu0 %v6800_v34  ;;  %5664 = vmatprep.mubr.msk.f32.mxu0 %vm6250_vm1, %v6251_v28 }
 0xa68   :  { %v3328_v25 = vmul.f32 1.442695, %v3327_v24  ;;  %5982 = vmatprep.subr.bf16.mxu0 %v6249_v13  ;;  %5981 = vmatpush3.bf16.msra.mxu1 %v6723_v53 }
 0xa69   :  { %5671 = vmatprep.mubr.msk.f32.mxu1 %vm6250_vm1, %v6251_v28  ;;  %5985 = vmatprep.subr.bf16.mxu1 %v6249_v13 }
 0xa6a   :  { %6148 = vpow2.f32 %v3328_v25  ;;  %5665 = vmatmul.mubr.msk.f32.vlgmr.msra.gmra.mrb[58].mxu0 %vm63_vm0, %v3325_v23 }
 0xa6b   :  { %5984 = vmatpush3.bf16.msra.mxu0 %v6786_v35  ;;  %5678 = vmatprep.mubr.msk.f32.mxu0 %vm6250_vm1, %v6251_v28 }
 0xa6c   :  { %5988 = vmatprep.subr.bf16.mxu0 %v6249_v13 }
 0xa74   :  { %v6149_v27 = vpop.eup %6148 }
 0xa75   :  { %v4937_v30 = vadd.f32 -1.0, %v6149_v27 }
 0xa77   :  { %v3331_v31 = vsel %vm3326_vm12, %v3325_v23, %v4937_v30 }
 0xa78   :  { %3332 = vst.msk [vmem:[%s6996_s9 + $0x8] sm:$0xff] %vm63_vm0, %v3331_v31 }
 0xb39   :  { %v3403_v37 = vpop.f32.mrb[56].mxu0  ;;  %v3481_v38 = vpop.f32.mrb[52].mxu1 }
 0xb3a   :  { %v3407_v39 = vadd.f32 %v3403_v37, %v3333_v33  ;;  %v5652_v32 = vpop.f32.mrb[57].mxu0  ;;  %v5659_v40 = vpop.f32.mrb[53].mxu1  ;;  %v3485_v48 = vadd.f32 %v3481_v38, %v3414_v47 }
 0xb3c   :  { %v4939_v44 = vmul.f32 -1.442695, %v3407_v39  ;;  %v4941_v54 = vmul.f32 -1.442695, %v3485_v48 }
 0xb3d   :  { %v3559_v51 = vpop.f32.mrb[58].mxu0 }
 0xb3e   :  { %6150 = vpow2.f32 %v4939_v44  ;;  %v5666_v52 = vpop.f32.mrb[59].mxu0  ;;  %v3560_v58 = vadd.f32 %v6850_v50, %v3559_v51  ;;  %v3821_v44 = vld [vmem:[#allocation6 + $0x20] sm:$0xff] }
 0xb3f   :  { %6152 = vpow2.f32 %v4941_v54 }
 0xb48   :  { %v6151_v55 = vpop.eup %6150 }
 0xb49   :  { %v3411_v56 = vadd.f32 1.0, %v6151_v55  ;;  %v6153_v10 = vpop.eup %6152 }
 0xb4a   :  { %v3489_v57 = vadd.f32 1.0, %v6153_v10 }
 0xb4b   :  { %6154 = vrcp.f32 %v3411_v56  ;;  %v3902_v56 = vld [vmem:[#allocation7 + $0x20] sm:$0xff] }
 0xb4c   :  { %6156 = vrcp.f32 %v3489_v57 }
 0xb55   :  { %v6155_v19 = vpop.eup %6154 }
 0xb56   :  { %v3563_v29 = vmul.f32 %v6155_v19, %v3560_v58  ;;  %v6157_v60 = vpop.eup %6156 }
 0xb57   :  { %v3566_v61 = vsub.f32 1.0, %v6157_v60  ;;  %v3568_v26 = vmul.f32 %v6157_v60, %v3325_v23 }
 0xb58   :  { %v3564_v59 = vadd.f32 %v3563_v29, %v3492_v46 }
 0xb5a   :  { %6158 = vtanh.f32 %v3564_v59 }
 0xb64   :  { %v6159_v62 = vpop.eup %6158 }
 0xb65   :  { %v3567_v63 = vmul.f32 %v6159_v62, %v3566_v61 }
 0xb67   :  { %v3569_v1 = vadd.f32 %v3568_v26, %v3567_v63  ;;  %v3980_v63 = vld [vmem:[#allocation8 + $0x20] sm:$0xff] }
 0xb69   :  { %v3571_v41 = vmin.f32 %v3569_v1, 0.0  ;;  %5672 = vmatmul.mubr.msk.f32.vlgmr.msra.gmra.mrb[54].mxu1 %vm63_vm0, %v3569_v1  ;;  %5679 = vmatmul.mubr.msk.f32.vlgmr.msra.gmra.mrb[60].mxu0 %vm63_vm0, %v3569_v1  ;;  %vm3570_vm13 = vcmp.gt.f32.partialorder %v3569_v1, 0.0 }
 0xb6a   :  { %5987 = vmatpush3.bf16.msra.mxu1 %v6800_v34  ;;  %5685 = vmatprep.mubr.msk.f32.mxu1 %vm6250_vm1, %v6251_v28 }
 0xb6b   :  { %v3572_v42 = vmul.f32 1.442695, %v3571_v41  ;;  %5991 = vmatprep.subr.bf16.mxu1 %v6249_v13  ;;  %5990 = vmatpush3.bf16.msra.mxu0 %v6723_v53 }
 0xb6c   :  { %5692 = vmatprep.mubr.msk.f32.mxu0 %vm6250_vm1, %v6251_v28  ;;  %5994 = vmatprep.subr.bf16.mxu0 %v6249_v13 }
 0xb6d   :  { %6160 = vpow2.f32 %v3572_v42  ;;  %5686 = vmatmul.mubr.msk.f32.vlgmr.msra.gmra.mrb[56].mxu1 %vm63_vm0, %v3569_v1 }
 0xb6e   :  { %5993 = vmatpush3.bf16.msra.mxu1 %v6786_v35  ;;  %5699 = vmatprep.mubr.msk.f32.mxu1 %vm6250_vm1, %v6251_v28 }
 0xb6f   :  { %5997 = vmatprep.subr.bf16.mxu1 %v6249_v13 }
 0xb77   :  { %v6161_v36 = vpop.eup %6160 }
 0xb78   :  { %v4943_v43 = vadd.f32 -1.0, %v6161_v36 }
 0xb7a   :  { %v3575_v45 = vsel %vm3570_vm13, %v3569_v1, %v4943_v43 }
 0xb7b   :  { %3576 = vst.msk [vmem:[%s6996_s9 + $0x10] sm:$0xff] %vm63_vm0, %v3575_v45 }
 0xc3c   :  { %v3647_v2 = vpop.f32.mrb[54].mxu1  ;;  %v3725_v3 = vpop.f32.mrb[60].mxu0 }
 0xc3d   :  { %v3651_v4 = vadd.f32 %v3647_v2, %v3577_v49  ;;  %v5673_v5 = vpop.f32.mrb[55].mxu1  ;;  %v5680_v6 = vpop.f32.mrb[61].mxu0  ;;  %v3729_v9 = vadd.f32 %v3725_v3, %v3658_v8 }
 0xc3f   :  { %v4945_v7 = vmul.f32 -1.442695, %v3651_v4  ;;  %v4947_v12 = vmul.f32 -1.442695, %v3729_v9 }
 0xc40   :  { %v3803_v0 = vpop.f32.mrb[56].mxu1 }
 0xc41   :  { %6162 = vpow2.f32 %v4945_v7  ;;  %v5687_v11 = vpop.f32.mrb[57].mxu1  ;;  %v3804_v18 = vadd.f32 %v6850_v50, %v3803_v0  ;;  %v4065_v7 = vld [vmem:[#allocation6 + $0x28] sm:$0xff] }
 0xc42   :  { %6164 = vpow2.f32 %v4947_v12 }
 0xc4b   :  { %v6163_v14 = vpop.eup %6162 }
 0xc4c   :  { %v3655_v15 = vadd.f32 1.0, %v6163_v14  ;;  %v6165_v16 = vpop.eup %6164 }
 0xc4d   :  { %v3733_v17 = vadd.f32 1.0, %v6165_v16 }
 0xc4e   :  { %6166 = vrcp.f32 %v3655_v15  ;;  %v4146_v15 = vld [vmem:[#allocation7 + $0x28] sm:$0xff] }
 0xc4f   :  { %6168 = vrcp.f32 %v3733_v17 }
 0xc58   :  { %v6167_v20 = vpop.eup %6166 }
 0xc59   :  { %v3807_v21 = vmul.f32 %v6167_v20, %v3804_v18  ;;  %v6169_v24 = vpop.eup %6168 }
 0xc5a   :  { %v3810_v25 = vsub.f32 1.0, %v6169_v24  ;;  %v3812_v30 = vmul.f32 %v6169_v24, %v3569_v1 }
 0xc5b   :  { %v3808_v23 = vadd.f32 %v3807_v21, %v3736_v22 }
 0xc5d   :  { %6170 = vtanh.f32 %v3808_v23 }
 0xc67   :  { %v6171_v27 = vpop.eup %6170 }
 0xc68   :  { %v3811_v31 = vmul.f32 %v6171_v27, %v3810_v25 }
 0xc6a   :  { %v3813_v33 = vadd.f32 %v3812_v30, %v3811_v31  ;;  %v4224_v31 = vld [vmem:[#allocation8 + $0x28] sm:$0xff] }
 0xc6c   :  { %v3815_v37 = vmin.f32 %v3813_v33, 0.0  ;;  %5693 = vmatmul.mubr.msk.f32.vlgmr.msra.gmra.mrb[62].mxu0 %vm63_vm0, %v3813_v33  ;;  %5700 = vmatmul.mubr.msk.f32.vlgmr.msra.gmra.mrb[58].mxu1 %vm63_vm0, %v3813_v33  ;;  %vm3814_vm14 = vcmp.gt.f32.partialorder %v3813_v33, 0.0 }
 0xc6d   :  { %5996 = vmatpush3.bf16.msra.mxu0 %v6800_v34  ;;  %5706 = vmatprep.mubr.msk.f32.mxu0 %vm6250_vm1, %v6251_v28 }
 0xc6e   :  { %v3816_v38 = vmul.f32 1.442695, %v3815_v37  ;;  %6000 = vmatprep.subr.bf16.mxu0 %v6249_v13  ;;  %5999 = vmatpush3.bf16.msra.mxu1 %v6723_v53 }
 0xc6f   :  { %5713 = vmatprep.mubr.msk.f32.mxu1 %vm6250_vm1, %v6251_v28  ;;  %6003 = vmatprep.subr.bf16.mxu1 %v6249_v13 }
 0xc70   :  { %6172 = vpow2.f32 %v3816_v38  ;;  %5707 = vmatmul.mubr.msk.f32.vlgmr.msra.gmra.mrb[64].mxu0 %vm63_vm0, %v3813_v33 }
 0xc71   :  { %6002 = vmatpush3.bf16.msra.mxu0 %v6786_v35  ;;  %5720 = vmatprep.mubr.msk.f32.mxu0 %vm6250_vm1, %v6251_v28 }
 0xc72   :  { %6006 = vmatprep.subr.bf16.mxu0 %v6249_v13 }
 0xc7a   :  { %v6173_v39 = vpop.eup %6172 }
 0xc7b   :  { %v4949_v32 = vadd.f32 -1.0, %v6173_v39 }
 0xc7d   :  { %v3819_v40 = vsel %vm3814_vm14, %v3813_v33, %v4949_v32 }
 0xc7e   :  { %3820 = vst.msk [vmem:[%s6996_s9 + $0x18] sm:$0xff] %vm63_vm0, %v3819_v40 }
 0xd3f   :  { %v3891_v47 = vpop.f32.mrb[62].mxu0  ;;  %v3969_v48 = vpop.f32.mrb[58].mxu1 }
 0xd40   :  { %v3895_v51 = vadd.f32 %v3891_v47, %v3821_v44  ;;  %v5694_v52 = vpop.f32.mrb[63].mxu0  ;;  %v5701_v54 = vpop.f32.mrb[59].mxu1  ;;  %v3973_v10 = vadd.f32 %v3969_v48, %v3902_v56 }
 0xd42   :  { %v4951_v55 = vmul.f32 -1.442695, %v3895_v51  ;;  %v4953_v19 = vmul.f32 -1.442695, %v3973_v10 }
 0xd43   :  { %v4047_v57 = vpop.f32.mrb[64].mxu0 }
 0xd44   :  { %6174 = vpow2.f32 %v4951_v55  ;;  %v5708_v58 = vpop.f32.mrb[65].mxu0  ;;  %v4048_v61 = vadd.f32 %v6850_v50, %v4047_v57 }
 0xd45   :  { %6176 = vpow2.f32 %v4953_v19 }
 0xd4e   :  { %v6175_v29 = vpop.eup %6174 }
 0xd4f   :  { %v3899_v46 = vadd.f32 1.0, %v6175_v29  ;;  %v6177_v59 = vpop.eup %6176 }
 0xd50   :  { %v3977_v60 = vadd.f32 1.0, %v6177_v59 }
 0xd51   :  { %6178 = vrcp.f32 %v3899_v46 }
 0xd52   :  { %6180 = vrcp.f32 %v3977_v60 }
 0xd5b   :  { %v6179_v62 = vpop.eup %6178 }
 0xd5c   :  { %v4051_v26 = vmul.f32 %v6179_v62, %v4048_v61  ;;  %v6181_v41 = vpop.eup %6180 }
 0xd5d   :  { %v4054_v42 = vsub.f32 1.0, %v6181_v41  ;;  %v4056_v43 = vmul.f32 %v6181_v41, %v3813_v33 }
 0xd5e   :  { %v4052_v1 = vadd.f32 %v4051_v26, %v3980_v63 }
 0xd60   :  { %6182 = vtanh.f32 %v4052_v1 }
 0xd6a   :  { %v6183_v36 = vpop.eup %6182 }
 0xd6b   :  { %v4055_v45 = vmul.f32 %v6183_v36, %v4054_v42  ;;  %v4468_v42 = vld [vmem:[#allocation8 + $0x30] sm:$0xff] }
 0xd6d   :  { %v4057_v49 = vadd.f32 %v4056_v43, %v4055_v45 }
 0xd6f   :  { %v4059_v2 = vmin.f32 %v4057_v49, 0.0  ;;  %5714 = vmatmul.mubr.msk.f32.vlgmr.msra.gmra.mrb[60].mxu1 %vm63_vm0, %v4057_v49  ;;  %5721 = vmatmul.mubr.msk.f32.vlgmr.msra.gmra.mrb[66].mxu0 %vm63_vm0, %v4057_v49  ;;  %vm4058_vm15 = vcmp.gt.f32.partialorder %v4057_v49, 0.0 }
 0xd70   :  { %6005 = vmatpush3.bf16.msra.mxu1 %v6800_v34  ;;  %5727 = vmatprep.mubr.msk.f32.mxu1 %vm6250_vm1, %v6251_v28 }
 0xd71   :  { %v4060_v3 = vmul.f32 1.442695, %v4059_v2  ;;  %6009 = vmatprep.subr.bf16.mxu1 %v6249_v13  ;;  %6008 = vmatpush3.bf16.msra.mxu0 %v6723_v53 }
 0xd72   :  { %5734 = vmatprep.mubr.msk.f32.mxu0 %vm6250_vm1, %v6251_v28  ;;  %6012 = vmatprep.subr.bf16.mxu0 %v6249_v13 }
 0xd73   :  { %6184 = vpow2.f32 %v4060_v3  ;;  %5728 = vmatmul.mubr.msk.f32.vlgmr.msra.gmra.mrb[62].mxu1 %vm63_vm0, %v4057_v49 }
 0xd74   :  { %6011 = vmatpush3.bf16.msra.mxu1 %v6786_v35  ;;  %5741 = vmatprep.mubr.msk.f32.mxu1 %vm6250_vm1, %v6251_v28 }
 0xd75   :  { %6015 = vmatprep.subr.bf16.mxu1 %v6249_v13 }
 0xd7d   :  { %v6185_v4 = vpop.eup %6184 }
 0xd7e   :  { %v4955_v5 = vadd.f32 -1.0, %v6185_v4 }
 0xd80   :  { %v4063_v6 = vsel %vm4058_vm15, %v4057_v49, %v4955_v5 }
 0xd81   :  { %4064 = vst.msk [vmem:[%s6996_s9 + $0x20] sm:$0xff] %vm63_vm0, %v4063_v6 }
 0xe42   :  { %v4135_v8 = vpop.f32.mrb[60].mxu1  ;;  %v4213_v9 = vpop.f32.mrb[66].mxu0 }
 0xe43   :  { %v4139_v0 = vadd.f32 %v4135_v8, %v4065_v7  ;;  %v5715_v11 = vpop.f32.mrb[61].mxu1  ;;  %v5722_v12 = vpop.f32.mrb[67].mxu0  ;;  %v4217_v16 = vadd.f32 %v4213_v9, %v4146_v15 }
 0xe45   :  { %v4957_v14 = vmul.f32 -1.442695, %v4139_v0  ;;  %v4959_v20 = vmul.f32 -1.442695, %v4217_v16  ;;  %v4553_v0 = vld [vmem:[#allocation6 + $0x38] sm:$0xff] }
 0xe46   :  { %v4291_v17 = vpop.f32.mrb[62].mxu1  ;;  %v4634_v16 = vld [vmem:[#allocation7 + $0x38] sm:$0xff] }
 0xe47   :  { %6186 = vpow2.f32 %v4957_v14  ;;  %v5729_v18 = vpop.f32.mrb[63].mxu1  ;;  %v4292_v25 = vadd.f32 %v6850_v50, %v4291_v17 }
 0xe48   :  { %6188 = vpow2.f32 %v4959_v20 }
 0xe51   :  { %v6187_v21 = vpop.eup %6186 }
 0xe52   :  { %v4143_v22 = vadd.f32 1.0, %v6187_v21  ;;  %v6189_v23 = vpop.eup %6188 }
 0xe53   :  { %v4221_v24 = vadd.f32 1.0, %v6189_v23 }
 0xe54   :  { %6190 = vrcp.f32 %v4143_v22 }
 0xe55   :  { %6192 = vrcp.f32 %v4221_v24 }
 0xe5e   :  { %v6191_v27 = vpop.eup %6190 }
 0xe5f   :  { %v4295_v30 = vmul.f32 %v6191_v27, %v4292_v25  ;;  %v6193_v37 = vpop.eup %6192 }
 0xe60   :  { %v4298_v38 = vsub.f32 1.0, %v6193_v37  ;;  %v4300_v32 = vmul.f32 %v6193_v37, %v4057_v49 }
 0xe61   :  { %v4296_v33 = vadd.f32 %v4295_v30, %v4224_v31 }
 0xe63   :  { %6194 = vtanh.f32 %v4296_v33  ;;  %v4712_v33 = vld [vmem:[#allocation8 + $0x38] sm:$0xff] }
 0xe6d   :  { %v6195_v39 = vpop.eup %6194 }
 0xe6e   :  { %v4299_v40 = vmul.f32 %v6195_v39, %v4298_v38 }
 0xe70   :  { %v4301_v44 = vadd.f32 %v4300_v32, %v4299_v40 }
 0xe72   :  { %v4303_v47 = vmin.f32 %v4301_v44, 0.0  ;;  %5735 = vmatmul.mubr.msk.f32.vlgmr.msra.gmra.mrb[68].mxu0 %vm63_vm0, %v4301_v44  ;;  %5742 = vmatmul.mubr.msk.f32.vlgmr.msra.gmra.mrb[64].mxu1 %vm63_vm0, %v4301_v44  ;;  %vm4302_vm2 = vcmp.gt.f32.partialorder %v4301_v44, 0.0 }
 0xe73   :  { %6014 = vmatpush3.bf16.msra.mxu0 %v6800_v34  ;;  %5748 = vmatprep.mubr.msk.f32.mxu0 %vm6250_vm1, %v6251_v28 }
 0xe74   :  { %v4304_v48 = vmul.f32 1.442695, %v4303_v47  ;;  %6018 = vmatprep.subr.bf16.mxu0 %v6249_v13  ;;  %6017 = vmatpush3.bf16.msra.mxu1 %v6723_v53  ;;  %v4309_v53 = vld [vmem:[#allocation6 + $0x30] sm:$0xff] }
 0xe75   :  { %5755 = vmatprep.mubr.msk.f32.mxu1 %vm6250_vm1, %v6251_v28  ;;  %6021 = vmatprep.subr.bf16.mxu1 %v6249_v13 }
 0xe76   :  { %6196 = vpow2.f32 %v4304_v48  ;;  %5749 = vmatmul.mubr.msk.f32.vlgmr.msra.gmra.mrb[70].mxu0 %vm63_vm0, %v4301_v44 }
 0xe77   :  { %6020 = vmatpush3.bf16.msra.mxu0 %v6786_v35  ;;  %5762 = vmatprep.mubr.msk.f32.mxu0 %vm6250_vm1, %v6251_v28  ;;  %v4390_v35 = vld [vmem:[#allocation7 + $0x30] sm:$0xff] }
 0xe80   :  { %v6197_v51 = vpop.eup %6196 }
 0xe81   :  { %v4961_v52 = vadd.f32 -1.0, %v6197_v51 }
 0xe83   :  { %v4307_v54 = vsel %vm4302_vm2, %v4301_v44, %v4961_v52 }
 0xe84   :  { %4308 = vst.msk [vmem:[%s6996_s9 + $0x28] sm:$0xff] %vm63_vm0, %v4307_v54 }
 0xf45   :  { %v4379_v55 = vpop.f32.mrb[68].mxu0  ;;  %v4457_v13 = vpop.f32.mrb[64].mxu1 }
 0xf46   :  { %v4383_v56 = vadd.f32 %v4379_v55, %v4309_v53  ;;  %v5736_v10 = vpop.f32.mrb[69].mxu0  ;;  %v5743_v57 = vpop.f32.mrb[65].mxu1  ;;  %v4461_v19 = vadd.f32 %v4457_v13, %v4390_v35 }
 0xf48   :  { %v4963_v58 = vmul.f32 -1.442695, %v4383_v56  ;;  %v4965_v59 = vmul.f32 -1.442695, %v4461_v19 }
 0xf49   :  { %v4535_v29 = vpop.f32.mrb[70].mxu0 }
 0xf4a   :  { %6198 = vpow2.f32 %v4963_v58  ;;  %v5750_v46 = vpop.f32.mrb[71].mxu0  ;;  %v4536_v63 = vadd.f32 %v6850_v50, %v4535_v29 }
 0xf4b   :  { %6200 = vpow2.f32 %v4965_v59 }
 0xf54   :  { %v6199_v60 = vpop.eup %6198 }
 0xf55   :  { %v4387_v61 = vadd.f32 1.0, %v6199_v60  ;;  %v6201_v62 = vpop.eup %6200 }
 0xf56   :  { %v4465_v26 = vadd.f32 1.0, %v6201_v62 }
 0xf57   :  { %6202 = vrcp.f32 %v4387_v61 }
 0xf58   :  { %6204 = vrcp.f32 %v4465_v26 }
 0xf61   :  { %v6203_v1 = vpop.eup %6202 }
 0xf62   :  { %v4539_v41 = vmul.f32 %v6203_v1, %v4536_v63  ;;  %v6205_v43 = vpop.eup %6204 }
 0xf63   :  { %v4542_v45 = vsub.f32 1.0, %v6205_v43  ;;  %v4544_v2 = vmul.f32 %v6205_v43, %v4301_v44 }
 0xf64   :  { %v4540_v36 = vadd.f32 %v4539_v41, %v4468_v42 }
 0xf66   :  { %6206 = vtanh.f32 %v4540_v36 }
 0xf70   :  { %v6207_v49 = vpop.eup %6206 }
 0xf71   :  { %v4543_v3 = vmul.f32 %v6207_v49, %v4542_v45 }
 0xf73   :  { %v4545_v4 = vadd.f32 %v4544_v2, %v4543_v3 }
 0xf75   :  { %v4547_v5 = vmin.f32 %v4545_v4, 0.0  ;;  %5756 = vmatmul.mubr.msk.f32.vlgmr.msra.gmra.mrb[66].mxu1 %vm63_vm0, %v4545_v4  ;;  %5763 = vmatmul.mubr.msk.f32.vlgmr.msra.gmra.mrb[72].mxu0 %vm63_vm0, %v4545_v4  ;;  %vm4546_vm3 = vcmp.gt.f32.partialorder %v4545_v4, 0.0 }
 0xf76   :  { %6023 = vmatpush3.bf16.msra.mxu1 %v6800_v34  ;;  %5769 = vmatprep.mubr.msk.f32.mxu1 %vm6250_vm1, %v6251_v28 }
 0xf77   :  { %v4548_v6 = vmul.f32 1.442695, %v4547_v5 }
 0xf79   :  { %6208 = vpow2.f32 %v4548_v6  ;;  %5770 = vmatmul.mubr.msk.f32.vlgmr.msra.gmra.mrb[68].mxu1 %vm63_vm0, %v4545_v4 }
 0xf83   :  { %v6209_v7 = vpop.eup %6208 }
 0xf84   :  { %v4967_v8 = vadd.f32 -1.0, %v6209_v7 }
 0xf86   :  { %v4551_v9 = vsel %vm4546_vm3, %v4545_v4, %v4967_v8 }
 0xf87   :  { %4552 = vst.msk [vmem:[%s6996_s9 + $0x30] sm:$0xff] %vm63_vm0, %v4551_v9 }
0x1048   :  { %v4623_v11 = vpop.f32.mrb[66].mxu1  ;;  %v4701_v12 = vpop.f32.mrb[72].mxu0 }
0x1049   :  { %v4627_v34 = vadd.f32 %v4623_v11, %v4553_v0  ;;  %v5757_v14 = vpop.f32.mrb[67].mxu1  ;;  %v5764_v15 = vpop.f32.mrb[73].mxu0  ;;  %v4705_v17 = vadd.f32 %v4701_v12, %v4634_v16 }
0x104b   :  { %v4969_v28 = vmul.f32 -1.442695, %v4627_v34  ;;  %v4971_v21 = vmul.f32 -1.442695, %v4705_v17 }
0x104c   :  { %v4779_v18 = vpop.f32.mrb[68].mxu1 }
0x104d   :  { %6210 = vpow2.f32 %v4969_v28  ;;  %v5771_v20 = vpop.f32.mrb[69].mxu1  ;;  %v4780_v27 = vadd.f32 %v6850_v50, %v4779_v18 }
0x104e   :  { %6212 = vpow2.f32 %v4971_v21 }
0x1057   :  { %v6211_v22 = vpop.eup %6210 }
0x1058   :  { %v4631_v23 = vadd.f32 1.0, %v6211_v22  ;;  %v6213_v24 = vpop.eup %6212 }
0x1059   :  { %v4709_v25 = vadd.f32 1.0, %v6213_v24 }
0x105a   :  { %6214 = vrcp.f32 %v4631_v23 }
0x105b   :  { %6216 = vrcp.f32 %v4709_v25 }
0x1064   :  { %v6215_v30 = vpop.eup %6214 }
0x1065   :  { %v4783_v31 = vmul.f32 %v6215_v30, %v4780_v27  ;;  %v6217_v38 = vpop.eup %6216 }
0x1066   :  { %v4786_v39 = vsub.f32 1.0, %v6217_v38  ;;  %v4788_v40 = vmul.f32 %v6217_v38, %v4545_v4 }
0x1067   :  { %v4784_v37 = vadd.f32 %v4783_v31, %v4712_v33 }
0x1069   :  { %6218 = vtanh.f32 %v4784_v37 }
0x1073   :  { %v6219_v32 = vpop.eup %6218 }
0x1074   :  { %v4787_v44 = vmul.f32 %v6219_v32, %v4786_v39 }
0x1076   :  { %v4789_v47 = vadd.f32 %v4788_v40, %v4787_v44 }
0x1078   :  { %v4791_v48 = vmin.f32 %v4789_v47, 0.0  ;;  %vm4790_vm1 = vcmp.gt.f32.partialorder %v4789_v47, 0.0 }
0x107a   :  { %v4792_v51 = vmul.f32 1.442695, %v4791_v48 }
0x107c   :  { %6220 = vpow2.f32 %v4792_v51 }
0x1086   :  { %v6221_v52 = vpop.eup %6220 }
0x1087   :  { %v4973_v54 = vadd.f32 -1.0, %v6221_v52 }
0x1089   :  { %v4795_v53 = vsel %vm4790_vm1, %v4789_v47, %v4973_v54 }
0x108a   :  { %4796 = vst.msk [vmem:[%s6996_s9 + $0x38] sm:$0xff] %vm63_vm0, %v4795_v53 }
0x108b   :  { %4801 = vsyncpa [#allocation10], 1 }

</bundles_post_ra>
